<compile_context>
chip_gen: v7x
topology: tpu7x:2x2x1
jax: 0.10.0
libtpu: 0.0.40
codegen_flags: <defaults>
</compile_context>

<pallas_src>
import functools

import jax
import jax.numpy as jnp
from jax import lax
from jax.experimental import pallas as pl
from jax.experimental.pallas import tpu as pltpu


def _round_up(x, m):
    return ((x + m - 1) // m) * m


def lstm_mlp_kernel(tok_ref, embT_ref, wih_ref, whh_ref, b_ref,
                    w1_ref, b1_ref, w2_ref, b2_ref, w3_ref, b3_ref,
                    out_ref, *, matmul_dtype=jnp.float32):
    T, Bblk = tok_ref.shape
    E, V = embT_ref.shape            # embedding table, transposed & vocab-padded
    G, H = whh_ref.shape             # (4H, H)

    # ---- hoisted loop-invariant loads / casts / broadcasts ------------------
    embT = embT_ref[...].astype(matmul_dtype)        # (E, V)
    wihT = wih_ref[...].astype(matmul_dtype)         # (4H, E)
    whhT = whh_ref[...].astype(matmul_dtype)         # (4H, H)
    bias = jnp.broadcast_to(b_ref[...], (G, Bblk))   # (4H, B) hoisted broadcast

    vocab_iota = lax.broadcasted_iota(jnp.int32, (V, Bblk), 0)
    row = lax.broadcasted_iota(jnp.int32, (G, Bblk), 0)
    g_mask = (row >= 2 * H) & (row < 3 * H)          # 'g' gate rows (tanh)
    g_scale = jnp.where(g_mask, 2.0, 1.0)            # pre-scale for tanh-via-sigmoid

    # ---- in-kernel embedding gather + input projection (off critical path) --
    # One-hot selection is exact; vocab is tiny so it maps to MXU matmuls.
    # TODO(synk): for a large vocabulary this should become a DMA gather.
    gx = []
    for t in range(T):
        tok_t = tok_ref[pl.ds(t, 1), :]                                  # (1, B) int32
        onehot_t = (vocab_iota == tok_t).astype(matmul_dtype)            # (V, B)
        x_t = jnp.dot(embT, onehot_t, preferred_element_type=jnp.float32)  # (E, B)
        gx.append(jnp.dot(wihT, x_t.astype(matmul_dtype),
                          preferred_element_type=jnp.float32) + bias)      # (4H, B)

    hT = jnp.zeros((H, Bblk), jnp.float32)           # h0 = c0 = 0
    cT = jnp.zeros((H, Bblk), jnp.float32)
    accT = jnp.zeros((H, Bblk), jnp.float32)

    # ---- statically unrolled recurrence (only Whh @ h on the serial path) ---
    for t in range(T):
        gT = gx[t] + jnp.dot(whhT, hT.astype(matmul_dtype),
                             preferred_element_type=jnp.float32)          # (4H, B)
        # single EUP pass: sigmoid everywhere; tanh(x) = 2*sigmoid(2x)-1 on g rows
        s = jax.nn.sigmoid(gT * g_scale)
        act = jnp.where(g_mask, 2.0 * s - 1.0, s)
        # PyTorch nn.LSTM gate order along sublanes: i, f, g, o
        i_g = act[0 * H:1 * H, :]
        f_g = act[1 * H:2 * H, :]
        g_g = act[2 * H:3 * H, :]
        o_g = act[3 * H:4 * H, :]
        cT = f_g * cT + i_g * g_g
        hT = o_g * jnp.tanh(cT)
        accT = accT + hT

    pooledT = accT * (1.0 / T)                       # out.mean(dim=1), transposed

    # TODO(synk): nn.Dropout layers are identity here (eval-mode semantics).
    z1 = jnp.maximum(
        jnp.dot(w1_ref[...].astype(matmul_dtype), pooledT.astype(matmul_dtype),
                preferred_element_type=jnp.float32) + b1_ref[...], 0.0)   # (32, B)
    z2 = jnp.maximum(
        jnp.dot(w2_ref[...].astype(matmul_dtype), z1.astype(matmul_dtype),
                preferred_element_type=jnp.float32) + b2_ref[...], 0.0)   # (16, B)
    logitsT = jnp.dot(w3_ref[...].astype(matmul_dtype), z2.astype(matmul_dtype),
                      preferred_element_type=jnp.float32) + b3_ref[...]   # (2, B)

    # LogSoftmax over the class axis (sublanes, size 2); the store is lane-dense.
    m = jnp.max(logitsT, axis=0, keepdims=True)
    lse = m + jnp.log(jnp.sum(jnp.exp(logitsT - m), axis=0, keepdims=True))
    out_ref[...] = logitsT - lse


def _full_spec(x):
    """Whole-array VMEM-resident block (weights / biases / table)."""
    return pl.BlockSpec(x.shape, lambda i: (0,) * x.ndim)


def _pick_batch_block(B_pad):
    try:
        kind = jax.devices()[0].device_kind.lower()
    except Exception:
        kind = ""
    # v5e: M=128 already matches the 4x128^2 MXU; larger blocks just add pressure.
    cap = 128 if "v5" in kind else 256
    # v7x has 2 TensorCores: prefer >= 2 blocks so the parallel axis can shard.
    if "v7" in kind and B_pad <= 256:
        cap = 128
    return max(8, min(B_pad, cap))


def lstm_forward(X, params, *, matmul_dtype=jnp.float32, batch_block=None):
    (embT, wih, whh, b, w1, b1, w2, b2, w3, b3) = params
    B, T = X.shape
    E, V = embT.shape
    G, H = whh.shape

    # Pad vocab (matmul K dim) to a lane multiple; padded columns are all-zero
    # and never selected by the one-hot, so the gather stays exact.
    V_pad = _round_up(V, 128)
    if V_pad != V:
        embT = jnp.pad(embT, ((0, 0), (0, V_pad - V)))

    # Batch maps to lanes: pad to >= 8, then to a multiple of the batch block.
    B_pad = _round_up(B, 8)
    blk = batch_block if batch_block is not None else _pick_batch_block(B_pad)
    B_pad = _round_up(B_pad, blk)

    # Time-major int32 token ids; only these (not a (B,T,E) f32 tensor) hit HBM.
    tok_tm = jnp.transpose(X, (1, 0)).astype(jnp.int32)       # (T, B)
    if B_pad != B:
        tok_tm = jnp.pad(tok_tm, ((0, 0), (0, B_pad - B)))    # pad rows use token 0

    grid = (B_pad // blk,)
    kernel = functools.partial(lstm_mlp_kernel, matmul_dtype=matmul_dtype)

    n1, n2, n3 = w1.shape[0], w2.shape[0], w3.shape[0]
    cost = pl.CostEstimate(
        flops=int(2 * T * B_pad * (E * V_pad + G * E + G * H)
                  + 2 * B_pad * (n1 * H + n2 * n1 + n3 * n2)),
        transcendentals=int(T * B_pad * (G + H)),
        bytes_accessed=int(4 * (T * B_pad + E * V_pad + G * (E + H + 1)
                                + n1 * (H + 1) + n2 * (n1 + 1) + n3 * (n2 + 1)
                                + n3 * B_pad)),
    )

    outT = pl.pallas_call(
        kernel,
        out_shape=jax.ShapeDtypeStruct((n3, B_pad), jnp.float32),
        grid=grid,
        in_specs=[
            pl.BlockSpec((T, blk), lambda i: (0, i)),
            _full_spec(embT), _full_spec(wih), _full_spec(whh), _full_spec(b),
            _full_spec(w1), _full_spec(b1),
            _full_spec(w2), _full_spec(b2),
            _full_spec(w3), _full_spec(b3),
        ],
        out_specs=pl.BlockSpec((n3, blk), lambda i: (0, i)),
        compiler_params=pltpu.CompilerParams(
            dimension_semantics=("parallel",)),
        cost_estimate=cost,
    )(tok_tm, embT, wih, whh, b, w1, b1, w2, b2, w3, b3)

    return jnp.transpose(outT)[:B]                 # (B, 2) log-probabilities


def reference_forward(X, params):
    """Pure-JAX reference mirroring the PyTorch forward (eval mode)."""
    (embT, wih, whh, b, w1, b1, w2, b2, w3, b3) = params
    H = whh.shape[1]
    hp = lax.Precision.HIGHEST
    embedded = jnp.take(embT.T, X, axis=0)                     # (B, T, E)
    B, T, _ = embedded.shape

    def step(carry, x_t):
        h, c = carry
        gates = (jnp.dot(x_t, wih.T, precision=hp)
                 + jnp.dot(h, whh.T, precision=hp) + b[:, 0])
        i = jax.nn.sigmoid(gates[:, 0 * H:1 * H])
        f = jax.nn.sigmoid(gates[:, 1 * H:2 * H])
        g = jnp.tanh(gates[:, 2 * H:3 * H])
        o = jax.nn.sigmoid(gates[:, 3 * H:4 * H])
        c = f * c + i * g
        h = o * jnp.tanh(c)
        return (h, c), h

    h0 = jnp.zeros((B, H), jnp.float32)
    (_, _), hs = lax.scan(step, (h0, h0), jnp.transpose(embedded, (1, 0, 2)))
    pooled = jnp.mean(hs, axis=0)
    z1 = jax.nn.relu(jnp.dot(pooled, w1.T, precision=hp) + b1[:, 0])
    z2 = jax.nn.relu(jnp.dot(z1, w2.T, precision=hp) + b2[:, 0])
    logits = jnp.dot(z2, w3.T, precision=hp) + b3[:, 0]
    return jax.nn.log_softmax(logits, axis=1)


def init_params(key, vocab_size, embedding_dim, hidden_size):
    ks = jax.random.split(key, 10)
    scale = 0.1
    H, E = hidden_size, embedding_dim
    embT = scale * jax.random.normal(ks[0], (E, vocab_size), jnp.float32)  # emb_matrix^T
    # PyTorch-native shapes: weight_ih (4H, E), weight_hh (4H, H), Linear (out, in).
    wih = scale * jax.random.normal(ks[1], (4 * H, E), jnp.float32)
    whh = scale * jax.random.normal(ks[2], (4 * H, H), jnp.float32)
    b = scale * jax.random.normal(ks[3], (4 * H, 1), jnp.float32)          # b_ih + b_hh combined
    w1 = scale * jax.random.normal(ks[4], (32, H), jnp.float32)
    b1 = scale * jax.random.normal(ks[5], (32, 1), jnp.float32)
    w2 = scale * jax.random.normal(ks[6], (16, 32), jnp.float32)
    b2 = scale * jax.random.normal(ks[7], (16, 1), jnp.float32)
    w3 = scale * jax.random.normal(ks[8], (2, 16), jnp.float32)
    b3 = scale * jax.random.normal(ks[9], (2, 1), jnp.float32)
    return (embT, wih, whh, b, w1, b1, w2, b2, w3, b3)


if __name__ == "__main__":
    VOCAB, EMB_DIM, SEQ_LEN, HIDDEN = 50, 16, 8, 32
    BATCH = 2

    key = jax.random.PRNGKey(0)
    k_params, k_tokens = jax.random.split(key)
    params = init_params(k_params, VOCAB, EMB_DIM, HIDDEN)
    X = jax.random.randint(k_tokens, (BATCH, SEQ_LEN), 0, VOCAB, dtype=jnp.int32)

    # f32 matmul operands so the strict tolerance against the f32 reference
    # holds; pass matmul_dtype=jnp.bfloat16 on v6e/v7x for large batches
    # (loosen the tolerance accordingly).
    out = jax.block_until_ready(lstm_forward(X, params))
    ref = jax.block_until_ready(reference_forward(X, params))

    assert out.shape == (BATCH, 2)
    assert jnp.allclose(out, ref, atol=1e-5, rtol=1e-5), (out, ref)
    print("KERNEL_OK")
</pallas_src>

<mosaic_0001>
module attributes {stable_mosaic.version = 11 : i64} {
  func.func @lstm_mlp_kernel(%arg0: i32, %arg1: memref<8x8xi32, #tpu.memory_space<vmem>>, %arg2: memref<16x128xf32, #tpu.memory_space<vmem>>, %arg3: memref<128x16xf32, #tpu.memory_space<vmem>>, %arg4: memref<128x32xf32, #tpu.memory_space<vmem>>, %arg5: memref<128x1xf32, #tpu.memory_space<vmem>>, %arg6: memref<32x32xf32, #tpu.memory_space<vmem>>, %arg7: memref<32x1xf32, #tpu.memory_space<vmem>>, %arg8: memref<16x32xf32, #tpu.memory_space<vmem>>, %arg9: memref<16x1xf32, #tpu.memory_space<vmem>>, %arg10: memref<2x16xf32, #tpu.memory_space<vmem>>, %arg11: memref<2x1xf32, #tpu.memory_space<vmem>>, %arg12: memref<2x8xf32, #tpu.memory_space<vmem>>) attributes {dimension_semantics = [#tpu.dimension_semantics<parallel>], iteration_bounds = array<i64: 1>, scalar_prefetch = 0 : i64, scratch_operands = 0 : i64, tpu.core_type = #tpu.core_type<tc>, window_params = [{transform_indices = @transform_0, window_bounds = array<i64: 8, 8>}, {pipeline_mode = #tpu.pipeline_mode<synchronous>, transform_indices = @transform_1, window_bounds = array<i64: 16, 128>}, {pipeline_mode = #tpu.pipeline_mode<synchronous>, transform_indices = @transform_2, window_bounds = array<i64: 128, 16>}, {pipeline_mode = #tpu.pipeline_mode<synchronous>, transform_indices = @transform_3, window_bounds = array<i64: 128, 32>}, {pipeline_mode = #tpu.pipeline_mode<synchronous>, transform_indices = @transform_4, window_bounds = array<i64: 128, 1>}, {pipeline_mode = #tpu.pipeline_mode<synchronous>, transform_indices = @transform_5, window_bounds = array<i64: 32, 32>}, {pipeline_mode = #tpu.pipeline_mode<synchronous>, transform_indices = @transform_6, window_bounds = array<i64: 32, 1>}, {pipeline_mode = #tpu.pipeline_mode<synchronous>, transform_indices = @transform_7, window_bounds = array<i64: 16, 32>}, {pipeline_mode = #tpu.pipeline_mode<synchronous>, transform_indices = @transform_8, window_bounds = array<i64: 16, 1>}, {pipeline_mode = #tpu.pipeline_mode<synchronous>, transform_indices = @transform_9, window_bounds = array<i64: 2, 16>}, {pipeline_mode = #tpu.pipeline_mode<synchronous>, transform_indices = @transform_10, window_bounds = array<i64: 2, 1>}, {transform_indices = @transform_11, window_bounds = array<i64: 2, 8>}]} {
    %c0 = arith.constant 0 : index
    %c0_0 = arith.constant 0 : index
    %0 = vector.load %arg2[%c0, %c0_0] : memref<16x128xf32, #tpu.memory_space<vmem>>, vector<16x128xf32>
    %c0_1 = arith.constant 0 : index
    %c0_2 = arith.constant 0 : index
    %1 = vector.load %arg3[%c0_1, %c0_2] : memref<128x16xf32, #tpu.memory_space<vmem>>, vector<128x16xf32>
    %c0_3 = arith.constant 0 : index
    %c0_4 = arith.constant 0 : index
    %2 = vector.load %arg4[%c0_3, %c0_4] : memref<128x32xf32, #tpu.memory_space<vmem>>, vector<128x32xf32>
    %c0_5 = arith.constant 0 : index
    %c0_6 = arith.constant 0 : index
    %3 = vector.load %arg5[%c0_5, %c0_6] : memref<128x1xf32, #tpu.memory_space<vmem>>, vector<128x1xf32>
    %4 = vector.shape_cast %3 : vector<128x1xf32> to vector<128x1xf32>
    %5 = vector.broadcast %4 : vector<128x1xf32> to vector<128x8xf32>
    %6 = tpu.iota {dimensions = array<i32: 0>} : vector<128x8xi32>
    %7 = tpu.iota {dimensions = array<i32: 0>} : vector<128x8xi32>
    %c64_i32 = arith.constant 64 : i32
    %8 = vector.broadcast %c64_i32 : i32 to vector<128x8xi32>
    %9 = arith.cmpi sge, %7, %8 : vector<128x8xi32>
    %c96_i32 = arith.constant 96 : i32
    %10 = vector.broadcast %c96_i32 : i32 to vector<128x8xi32>
    %11 = arith.cmpi slt, %7, %10 : vector<128x8xi32>
    %12 = arith.andi %9, %11 : vector<128x8xi1>
    %cst = arith.constant 2.000000e+00 : f32
    %cst_7 = arith.constant 1.000000e+00 : f32
    %13 = vector.broadcast %cst : f32 to vector<128x8xf32>
    %14 = vector.broadcast %cst_7 : f32 to vector<128x8xf32>
    %15 = arith.select %12, %13, %14 : vector<128x8xi1>, vector<128x8xf32>
    %c0_8 = arith.constant 0 : index
    %c0_9 = arith.constant 0 : index
    %16 = vector.load %arg1[%c0_8, %c0_9] : memref<8x8xi32, #tpu.memory_space<vmem>>, vector<1x8xi32>
    %17 = vector.broadcast %16 : vector<1x8xi32> to vector<128x8xi32>
    %18 = arith.cmpi eq, %6, %17 : vector<128x8xi32>
    %19 = arith.extui %18 : vector<128x8xi1> to vector<128x8xi32>
    %20 = arith.sitofp %19 : vector<128x8xi32> to vector<128x8xf32>
    %cst_10 = arith.constant dense<0.000000e+00> : vector<16x8xf32>
    %21 = tpu.matmul %0, %20, %cst_10 {dimension_numbers = #tpu.dot_dimension_numbers<[1], [0], [0], [1], [0, 0, 1, 1], [], []>} : vector<16x128xf32>, vector<128x8xf32>, vector<16x8xf32> -> vector<16x8xf32>
    %cst_11 = arith.constant dense<0.000000e+00> : vector<128x8xf32>
    %22 = tpu.matmul %1, %21, %cst_11 {dimension_numbers = #tpu.dot_dimension_numbers<[1], [0], [0], [1], [0, 0, 1, 1], [], []>} : vector<128x16xf32>, vector<16x8xf32>, vector<128x8xf32> -> vector<128x8xf32>
    %23 = arith.addf %22, %5 : vector<128x8xf32>
    %c1 = arith.constant 1 : index
    %c0_12 = arith.constant 0 : index
    %24 = vector.load %arg1[%c1, %c0_12] : memref<8x8xi32, #tpu.memory_space<vmem>>, vector<1x8xi32>
    %25 = vector.broadcast %24 : vector<1x8xi32> to vector<128x8xi32>
    %26 = arith.cmpi eq, %6, %25 : vector<128x8xi32>
    %27 = arith.extui %26 : vector<128x8xi1> to vector<128x8xi32>
    %28 = arith.sitofp %27 : vector<128x8xi32> to vector<128x8xf32>
    %cst_13 = arith.constant dense<0.000000e+00> : vector<16x8xf32>
    %29 = tpu.matmul %0, %28, %cst_13 {dimension_numbers = #tpu.dot_dimension_numbers<[1], [0], [0], [1], [0, 0, 1, 1], [], []>} : vector<16x128xf32>, vector<128x8xf32>, vector<16x8xf32> -> vector<16x8xf32>
    %cst_14 = arith.constant dense<0.000000e+00> : vector<128x8xf32>
    %30 = tpu.matmul %1, %29, %cst_14 {dimension_numbers = #tpu.dot_dimension_numbers<[1], [0], [0], [1], [0, 0, 1, 1], [], []>} : vector<128x16xf32>, vector<16x8xf32>, vector<128x8xf32> -> vector<128x8xf32>
    %31 = arith.addf %30, %5 : vector<128x8xf32>
    %c2 = arith.constant 2 : index
    %c0_15 = arith.constant 0 : index
    %32 = vector.load %arg1[%c2, %c0_15] : memref<8x8xi32, #tpu.memory_space<vmem>>, vector<1x8xi32>
    %33 = vector.broadcast %32 : vector<1x8xi32> to vector<128x8xi32>
    %34 = arith.cmpi eq, %6, %33 : vector<128x8xi32>
    %35 = arith.extui %34 : vector<128x8xi1> to vector<128x8xi32>
    %36 = arith.sitofp %35 : vector<128x8xi32> to vector<128x8xf32>
    %cst_16 = arith.constant dense<0.000000e+00> : vector<16x8xf32>
    %37 = tpu.matmul %0, %36, %cst_16 {dimension_numbers = #tpu.dot_dimension_numbers<[1], [0], [0], [1], [0, 0, 1, 1], [], []>} : vector<16x128xf32>, vector<128x8xf32>, vector<16x8xf32> -> vector<16x8xf32>
    %cst_17 = arith.constant dense<0.000000e+00> : vector<128x8xf32>
    %38 = tpu.matmul %1, %37, %cst_17 {dimension_numbers = #tpu.dot_dimension_numbers<[1], [0], [0], [1], [0, 0, 1, 1], [], []>} : vector<128x16xf32>, vector<16x8xf32>, vector<128x8xf32> -> vector<128x8xf32>
    %39 = arith.addf %38, %5 : vector<128x8xf32>
    %c3 = arith.constant 3 : index
    %c0_18 = arith.constant 0 : index
    %40 = vector.load %arg1[%c3, %c0_18] : memref<8x8xi32, #tpu.memory_space<vmem>>, vector<1x8xi32>
    %41 = vector.broadcast %40 : vector<1x8xi32> to vector<128x8xi32>
    %42 = arith.cmpi eq, %6, %41 : vector<128x8xi32>
    %43 = arith.extui %42 : vector<128x8xi1> to vector<128x8xi32>
    %44 = arith.sitofp %43 : vector<128x8xi32> to vector<128x8xf32>
    %cst_19 = arith.constant dense<0.000000e+00> : vector<16x8xf32>
    %45 = tpu.matmul %0, %44, %cst_19 {dimension_numbers = #tpu.dot_dimension_numbers<[1], [0], [0], [1], [0, 0, 1, 1], [], []>} : vector<16x128xf32>, vector<128x8xf32>, vector<16x8xf32> -> vector<16x8xf32>
    %cst_20 = arith.constant dense<0.000000e+00> : vector<128x8xf32>
    %46 = tpu.matmul %1, %45, %cst_20 {dimension_numbers = #tpu.dot_dimension_numbers<[1], [0], [0], [1], [0, 0, 1, 1], [], []>} : vector<128x16xf32>, vector<16x8xf32>, vector<128x8xf32> -> vector<128x8xf32>
    %47 = arith.addf %46, %5 : vector<128x8xf32>
    %c4 = arith.constant 4 : index
    %c0_21 = arith.constant 0 : index
    %48 = vector.load %arg1[%c4, %c0_21] : memref<8x8xi32, #tpu.memory_space<vmem>>, vector<1x8xi32>
    %49 = vector.broadcast %48 : vector<1x8xi32> to vector<128x8xi32>
    %50 = arith.cmpi eq, %6, %49 : vector<128x8xi32>
    %51 = arith.extui %50 : vector<128x8xi1> to vector<128x8xi32>
    %52 = arith.sitofp %51 : vector<128x8xi32> to vector<128x8xf32>
    %cst_22 = arith.constant dense<0.000000e+00> : vector<16x8xf32>
    %53 = tpu.matmul %0, %52, %cst_22 {dimension_numbers = #tpu.dot_dimension_numbers<[1], [0], [0], [1], [0, 0, 1, 1], [], []>} : vector<16x128xf32>, vector<128x8xf32>, vector<16x8xf32> -> vector<16x8xf32>
    %cst_23 = arith.constant dense<0.000000e+00> : vector<128x8xf32>
    %54 = tpu.matmul %1, %53, %cst_23 {dimension_numbers = #tpu.dot_dimension_numbers<[1], [0], [0], [1], [0, 0, 1, 1], [], []>} : vector<128x16xf32>, vector<16x8xf32>, vector<128x8xf32> -> vector<128x8xf32>
    %55 = arith.addf %54, %5 : vector<128x8xf32>
    %c5 = arith.constant 5 : index
    %c0_24 = arith.constant 0 : index
    %56 = vector.load %arg1[%c5, %c0_24] : memref<8x8xi32, #tpu.memory_space<vmem>>, vector<1x8xi32>
    %57 = vector.broadcast %56 : vector<1x8xi32> to vector<128x8xi32>
    %58 = arith.cmpi eq, %6, %57 : vector<128x8xi32>
    %59 = arith.extui %58 : vector<128x8xi1> to vector<128x8xi32>
    %60 = arith.sitofp %59 : vector<128x8xi32> to vector<128x8xf32>
    %cst_25 = arith.constant dense<0.000000e+00> : vector<16x8xf32>
    %61 = tpu.matmul %0, %60, %cst_25 {dimension_numbers = #tpu.dot_dimension_numbers<[1], [0], [0], [1], [0, 0, 1, 1], [], []>} : vector<16x128xf32>, vector<128x8xf32>, vector<16x8xf32> -> vector<16x8xf32>
    %cst_26 = arith.constant dense<0.000000e+00> : vector<128x8xf32>
    %62 = tpu.matmul %1, %61, %cst_26 {dimension_numbers = #tpu.dot_dimension_numbers<[1], [0], [0], [1], [0, 0, 1, 1], [], []>} : vector<128x16xf32>, vector<16x8xf32>, vector<128x8xf32> -> vector<128x8xf32>
    %63 = arith.addf %62, %5 : vector<128x8xf32>
    %c6 = arith.constant 6 : index
    %c0_27 = arith.constant 0 : index
    %64 = vector.load %arg1[%c6, %c0_27] : memref<8x8xi32, #tpu.memory_space<vmem>>, vector<1x8xi32>
    %65 = vector.broadcast %64 : vector<1x8xi32> to vector<128x8xi32>
    %66 = arith.cmpi eq, %6, %65 : vector<128x8xi32>
    %67 = arith.extui %66 : vector<128x8xi1> to vector<128x8xi32>
    %68 = arith.sitofp %67 : vector<128x8xi32> to vector<128x8xf32>
    %cst_28 = arith.constant dense<0.000000e+00> : vector<16x8xf32>
    %69 = tpu.matmul %0, %68, %cst_28 {dimension_numbers = #tpu.dot_dimension_numbers<[1], [0], [0], [1], [0, 0, 1, 1], [], []>} : vector<16x128xf32>, vector<128x8xf32>, vector<16x8xf32> -> vector<16x8xf32>
    %cst_29 = arith.constant dense<0.000000e+00> : vector<128x8xf32>
    %70 = tpu.matmul %1, %69, %cst_29 {dimension_numbers = #tpu.dot_dimension_numbers<[1], [0], [0], [1], [0, 0, 1, 1], [], []>} : vector<128x16xf32>, vector<16x8xf32>, vector<128x8xf32> -> vector<128x8xf32>
    %71 = arith.addf %70, %5 : vector<128x8xf32>
    %c7 = arith.constant 7 : index
    %c0_30 = arith.constant 0 : index
    %72 = vector.load %arg1[%c7, %c0_30] : memref<8x8xi32, #tpu.memory_space<vmem>>, vector<1x8xi32>
    %73 = vector.broadcast %72 : vector<1x8xi32> to vector<128x8xi32>
    %74 = arith.cmpi eq, %6, %73 : vector<128x8xi32>
    %75 = arith.extui %74 : vector<128x8xi1> to vector<128x8xi32>
    %76 = arith.sitofp %75 : vector<128x8xi32> to vector<128x8xf32>
    %cst_31 = arith.constant dense<0.000000e+00> : vector<16x8xf32>
    %77 = tpu.matmul %0, %76, %cst_31 {dimension_numbers = #tpu.dot_dimension_numbers<[1], [0], [0], [1], [0, 0, 1, 1], [], []>} : vector<16x128xf32>, vector<128x8xf32>, vector<16x8xf32> -> vector<16x8xf32>
    %cst_32 = arith.constant dense<0.000000e+00> : vector<128x8xf32>
    %78 = tpu.matmul %1, %77, %cst_32 {dimension_numbers = #tpu.dot_dimension_numbers<[1], [0], [0], [1], [0, 0, 1, 1], [], []>} : vector<128x16xf32>, vector<16x8xf32>, vector<128x8xf32> -> vector<128x8xf32>
    %79 = arith.addf %78, %5 : vector<128x8xf32>
    %cst_33 = arith.constant 0.000000e+00 : f32
    %80 = vector.broadcast %cst_33 : f32 to vector<32x8xf32>
    %cst_34 = arith.constant 0.000000e+00 : f32
    %81 = vector.broadcast %cst_34 : f32 to vector<32x8xf32>
    %cst_35 = arith.constant 0.000000e+00 : f32
    %82 = vector.broadcast %cst_35 : f32 to vector<32x8xf32>
    %cst_36 = arith.constant dense<0.000000e+00> : vector<128x8xf32>
    %83 = tpu.matmul %2, %80, %cst_36 {dimension_numbers = #tpu.dot_dimension_numbers<[1], [0], [0], [1], [0, 0, 1, 1], [], []>} : vector<128x32xf32>, vector<32x8xf32>, vector<128x8xf32> -> vector<128x8xf32>
    %84 = arith.addf %23, %83 : vector<128x8xf32>
    %85 = arith.mulf %84, %15 : vector<128x8xf32>
    %86 = arith.negf %85 : vector<128x8xf32>
    %87 = math.exp %86 : vector<128x8xf32>
    %cst_37 = arith.constant 1.000000e+00 : f32
    %88 = vector.broadcast %cst_37 : f32 to vector<128x8xf32>
    %89 = arith.addf %88, %87 : vector<128x8xf32>
    %90 = arith.divf %88, %89 : vector<128x8xf32>
    %cst_38 = arith.constant 2.000000e+00 : f32
    %91 = vector.broadcast %cst_38 : f32 to vector<128x8xf32>
    %92 = arith.mulf %91, %90 : vector<128x8xf32>
    %cst_39 = arith.constant 1.000000e+00 : f32
    %93 = vector.broadcast %cst_39 : f32 to vector<128x8xf32>
    %94 = arith.subf %92, %93 : vector<128x8xf32>
    %95 = arith.select %12, %94, %90 : vector<128x8xi1>, vector<128x8xf32>
    %96 = vector.extract_strided_slice %95 {offsets = [0, 0], sizes = [32, 8], strides = [1, 1]} : vector<128x8xf32> to vector<32x8xf32>
    %97 = vector.extract_strided_slice %95 {offsets = [32, 0], sizes = [32, 8], strides = [1, 1]} : vector<128x8xf32> to vector<32x8xf32>
    %98 = vector.extract_strided_slice %95 {offsets = [64, 0], sizes = [32, 8], strides = [1, 1]} : vector<128x8xf32> to vector<32x8xf32>
    %99 = vector.extract_strided_slice %95 {offsets = [96, 0], sizes = [32, 8], strides = [1, 1]} : vector<128x8xf32> to vector<32x8xf32>
    %100 = arith.mulf %97, %81 : vector<32x8xf32>
    %101 = arith.mulf %96, %98 : vector<32x8xf32>
    %102 = arith.addf %100, %101 : vector<32x8xf32>
    %103 = math.tanh %102 : vector<32x8xf32>
    %104 = arith.mulf %99, %103 : vector<32x8xf32>
    %105 = arith.addf %82, %104 : vector<32x8xf32>
    %cst_40 = arith.constant dense<0.000000e+00> : vector<128x8xf32>
    %106 = tpu.matmul %2, %104, %cst_40 {dimension_numbers = #tpu.dot_dimension_numbers<[1], [0], [0], [1], [0, 0, 1, 1], [], []>} : vector<128x32xf32>, vector<32x8xf32>, vector<128x8xf32> -> vector<128x8xf32>
    %107 = arith.addf %31, %106 : vector<128x8xf32>
    %108 = arith.mulf %107, %15 : vector<128x8xf32>
    %109 = arith.negf %108 : vector<128x8xf32>
    %110 = math.exp %109 : vector<128x8xf32>
    %cst_41 = arith.constant 1.000000e+00 : f32
    %111 = vector.broadcast %cst_41 : f32 to vector<128x8xf32>
    %112 = arith.addf %111, %110 : vector<128x8xf32>
    %113 = arith.divf %111, %112 : vector<128x8xf32>
    %cst_42 = arith.constant 2.000000e+00 : f32
    %114 = vector.broadcast %cst_42 : f32 to vector<128x8xf32>
    %115 = arith.mulf %114, %113 : vector<128x8xf32>
    %cst_43 = arith.constant 1.000000e+00 : f32
    %116 = vector.broadcast %cst_43 : f32 to vector<128x8xf32>
    %117 = arith.subf %115, %116 : vector<128x8xf32>
    %118 = arith.select %12, %117, %113 : vector<128x8xi1>, vector<128x8xf32>
    %119 = vector.extract_strided_slice %118 {offsets = [0, 0], sizes = [32, 8], strides = [1, 1]} : vector<128x8xf32> to vector<32x8xf32>
    %120 = vector.extract_strided_slice %118 {offsets = [32, 0], sizes = [32, 8], strides = [1, 1]} : vector<128x8xf32> to vector<32x8xf32>
    %121 = vector.extract_strided_slice %118 {offsets = [64, 0], sizes = [32, 8], strides = [1, 1]} : vector<128x8xf32> to vector<32x8xf32>
    %122 = vector.extract_strided_slice %118 {offsets = [96, 0], sizes = [32, 8], strides = [1, 1]} : vector<128x8xf32> to vector<32x8xf32>
    %123 = arith.mulf %120, %102 : vector<32x8xf32>
    %124 = arith.mulf %119, %121 : vector<32x8xf32>
    %125 = arith.addf %123, %124 : vector<32x8xf32>
    %126 = math.tanh %125 : vector<32x8xf32>
    %127 = arith.mulf %122, %126 : vector<32x8xf32>
    %128 = arith.addf %105, %127 : vector<32x8xf32>
    %cst_44 = arith.constant dense<0.000000e+00> : vector<128x8xf32>
    %129 = tpu.matmul %2, %127, %cst_44 {dimension_numbers = #tpu.dot_dimension_numbers<[1], [0], [0], [1], [0, 0, 1, 1], [], []>} : vector<128x32xf32>, vector<32x8xf32>, vector<128x8xf32> -> vector<128x8xf32>
    %130 = arith.addf %39, %129 : vector<128x8xf32>
    %131 = arith.mulf %130, %15 : vector<128x8xf32>
    %132 = arith.negf %131 : vector<128x8xf32>
    %133 = math.exp %132 : vector<128x8xf32>
    %cst_45 = arith.constant 1.000000e+00 : f32
    %134 = vector.broadcast %cst_45 : f32 to vector<128x8xf32>
    %135 = arith.addf %134, %133 : vector<128x8xf32>
    %136 = arith.divf %134, %135 : vector<128x8xf32>
    %cst_46 = arith.constant 2.000000e+00 : f32
    %137 = vector.broadcast %cst_46 : f32 to vector<128x8xf32>
    %138 = arith.mulf %137, %136 : vector<128x8xf32>
    %cst_47 = arith.constant 1.000000e+00 : f32
    %139 = vector.broadcast %cst_47 : f32 to vector<128x8xf32>
    %140 = arith.subf %138, %139 : vector<128x8xf32>
    %141 = arith.select %12, %140, %136 : vector<128x8xi1>, vector<128x8xf32>
    %142 = vector.extract_strided_slice %141 {offsets = [0, 0], sizes = [32, 8], strides = [1, 1]} : vector<128x8xf32> to vector<32x8xf32>
    %143 = vector.extract_strided_slice %141 {offsets = [32, 0], sizes = [32, 8], strides = [1, 1]} : vector<128x8xf32> to vector<32x8xf32>
    %144 = vector.extract_strided_slice %141 {offsets = [64, 0], sizes = [32, 8], strides = [1, 1]} : vector<128x8xf32> to vector<32x8xf32>
    %145 = vector.extract_strided_slice %141 {offsets = [96, 0], sizes = [32, 8], strides = [1, 1]} : vector<128x8xf32> to vector<32x8xf32>
    %146 = arith.mulf %143, %125 : vector<32x8xf32>
    %147 = arith.mulf %142, %144 : vector<32x8xf32>
    %148 = arith.addf %146, %147 : vector<32x8xf32>
    %149 = math.tanh %148 : vector<32x8xf32>
    %150 = arith.mulf %145, %149 : vector<32x8xf32>
    %151 = arith.addf %128, %150 : vector<32x8xf32>
    %cst_48 = arith.constant dense<0.000000e+00> : vector<128x8xf32>
    %152 = tpu.matmul %2, %150, %cst_48 {dimension_numbers = #tpu.dot_dimension_numbers<[1], [0], [0], [1], [0, 0, 1, 1], [], []>} : vector<128x32xf32>, vector<32x8xf32>, vector<128x8xf32> -> vector<128x8xf32>
    %153 = arith.addf %47, %152 : vector<128x8xf32>
    %154 = arith.mulf %153, %15 : vector<128x8xf32>
    %155 = arith.negf %154 : vector<128x8xf32>
    %156 = math.exp %155 : vector<128x8xf32>
    %cst_49 = arith.constant 1.000000e+00 : f32
    %157 = vector.broadcast %cst_49 : f32 to vector<128x8xf32>
    %158 = arith.addf %157, %156 : vector<128x8xf32>
    %159 = arith.divf %157, %158 : vector<128x8xf32>
    %cst_50 = arith.constant 2.000000e+00 : f32
    %160 = vector.broadcast %cst_50 : f32 to vector<128x8xf32>
    %161 = arith.mulf %160, %159 : vector<128x8xf32>
    %cst_51 = arith.constant 1.000000e+00 : f32
    %162 = vector.broadcast %cst_51 : f32 to vector<128x8xf32>
    %163 = arith.subf %161, %162 : vector<128x8xf32>
    %164 = arith.select %12, %163, %159 : vector<128x8xi1>, vector<128x8xf32>
    %165 = vector.extract_strided_slice %164 {offsets = [0, 0], sizes = [32, 8], strides = [1, 1]} : vector<128x8xf32> to vector<32x8xf32>
    %166 = vector.extract_strided_slice %164 {offsets = [32, 0], sizes = [32, 8], strides = [1, 1]} : vector<128x8xf32> to vector<32x8xf32>
    %167 = vector.extract_strided_slice %164 {offsets = [64, 0], sizes = [32, 8], strides = [1, 1]} : vector<128x8xf32> to vector<32x8xf32>
    %168 = vector.extract_strided_slice %164 {offsets = [96, 0], sizes = [32, 8], strides = [1, 1]} : vector<128x8xf32> to vector<32x8xf32>
    %169 = arith.mulf %166, %148 : vector<32x8xf32>
    %170 = arith.mulf %165, %167 : vector<32x8xf32>
    %171 = arith.addf %169, %170 : vector<32x8xf32>
    %172 = math.tanh %171 : vector<32x8xf32>
    %173 = arith.mulf %168, %172 : vector<32x8xf32>
    %174 = arith.addf %151, %173 : vector<32x8xf32>
    %cst_52 = arith.constant dense<0.000000e+00> : vector<128x8xf32>
    %175 = tpu.matmul %2, %173, %cst_52 {dimension_numbers = #tpu.dot_dimension_numbers<[1], [0], [0], [1], [0, 0, 1, 1], [], []>} : vector<128x32xf32>, vector<32x8xf32>, vector<128x8xf32> -> vector<128x8xf32>
    %176 = arith.addf %55, %175 : vector<128x8xf32>
    %177 = arith.mulf %176, %15 : vector<128x8xf32>
    %178 = arith.negf %177 : vector<128x8xf32>
    %179 = math.exp %178 : vector<128x8xf32>
    %cst_53 = arith.constant 1.000000e+00 : f32
    %180 = vector.broadcast %cst_53 : f32 to vector<128x8xf32>
    %181 = arith.addf %180, %179 : vector<128x8xf32>
    %182 = arith.divf %180, %181 : vector<128x8xf32>
    %cst_54 = arith.constant 2.000000e+00 : f32
    %183 = vector.broadcast %cst_54 : f32 to vector<128x8xf32>
    %184 = arith.mulf %183, %182 : vector<128x8xf32>
    %cst_55 = arith.constant 1.000000e+00 : f32
    %185 = vector.broadcast %cst_55 : f32 to vector<128x8xf32>
    %186 = arith.subf %184, %185 : vector<128x8xf32>
    %187 = arith.select %12, %186, %182 : vector<128x8xi1>, vector<128x8xf32>
    %188 = vector.extract_strided_slice %187 {offsets = [0, 0], sizes = [32, 8], strides = [1, 1]} : vector<128x8xf32> to vector<32x8xf32>
    %189 = vector.extract_strided_slice %187 {offsets = [32, 0], sizes = [32, 8], strides = [1, 1]} : vector<128x8xf32> to vector<32x8xf32>
    %190 = vector.extract_strided_slice %187 {offsets = [64, 0], sizes = [32, 8], strides = [1, 1]} : vector<128x8xf32> to vector<32x8xf32>
    %191 = vector.extract_strided_slice %187 {offsets = [96, 0], sizes = [32, 8], strides = [1, 1]} : vector<128x8xf32> to vector<32x8xf32>
    %192 = arith.mulf %189, %171 : vector<32x8xf32>
    %193 = arith.mulf %188, %190 : vector<32x8xf32>
    %194 = arith.addf %192, %193 : vector<32x8xf32>
    %195 = math.tanh %194 : vector<32x8xf32>
    %196 = arith.mulf %191, %195 : vector<32x8xf32>
    %197 = arith.addf %174, %196 : vector<32x8xf32>
    %cst_56 = arith.constant dense<0.000000e+00> : vector<128x8xf32>
    %198 = tpu.matmul %2, %196, %cst_56 {dimension_numbers = #tpu.dot_dimension_numbers<[1], [0], [0], [1], [0, 0, 1, 1], [], []>} : vector<128x32xf32>, vector<32x8xf32>, vector<128x8xf32> -> vector<128x8xf32>
    %199 = arith.addf %63, %198 : vector<128x8xf32>
    %200 = arith.mulf %199, %15 : vector<128x8xf32>
    %201 = arith.negf %200 : vector<128x8xf32>
    %202 = math.exp %201 : vector<128x8xf32>
    %cst_57 = arith.constant 1.000000e+00 : f32
    %203 = vector.broadcast %cst_57 : f32 to vector<128x8xf32>
    %204 = arith.addf %203, %202 : vector<128x8xf32>
    %205 = arith.divf %203, %204 : vector<128x8xf32>
    %cst_58 = arith.constant 2.000000e+00 : f32
    %206 = vector.broadcast %cst_58 : f32 to vector<128x8xf32>
    %207 = arith.mulf %206, %205 : vector<128x8xf32>
    %cst_59 = arith.constant 1.000000e+00 : f32
    %208 = vector.broadcast %cst_59 : f32 to vector<128x8xf32>
    %209 = arith.subf %207, %208 : vector<128x8xf32>
    %210 = arith.select %12, %209, %205 : vector<128x8xi1>, vector<128x8xf32>
    %211 = vector.extract_strided_slice %210 {offsets = [0, 0], sizes = [32, 8], strides = [1, 1]} : vector<128x8xf32> to vector<32x8xf32>
    %212 = vector.extract_strided_slice %210 {offsets = [32, 0], sizes = [32, 8], strides = [1, 1]} : vector<128x8xf32> to vector<32x8xf32>
    %213 = vector.extract_strided_slice %210 {offsets = [64, 0], sizes = [32, 8], strides = [1, 1]} : vector<128x8xf32> to vector<32x8xf32>
    %214 = vector.extract_strided_slice %210 {offsets = [96, 0], sizes = [32, 8], strides = [1, 1]} : vector<128x8xf32> to vector<32x8xf32>
    %215 = arith.mulf %212, %194 : vector<32x8xf32>
    %216 = arith.mulf %211, %213 : vector<32x8xf32>
    %217 = arith.addf %215, %216 : vector<32x8xf32>
    %218 = math.tanh %217 : vector<32x8xf32>
    %219 = arith.mulf %214, %218 : vector<32x8xf32>
    %220 = arith.addf %197, %219 : vector<32x8xf32>
    %cst_60 = arith.constant dense<0.000000e+00> : vector<128x8xf32>
    %221 = tpu.matmul %2, %219, %cst_60 {dimension_numbers = #tpu.dot_dimension_numbers<[1], [0], [0], [1], [0, 0, 1, 1], [], []>} : vector<128x32xf32>, vector<32x8xf32>, vector<128x8xf32> -> vector<128x8xf32>
    %222 = arith.addf %71, %221 : vector<128x8xf32>
    %223 = arith.mulf %222, %15 : vector<128x8xf32>
    %224 = arith.negf %223 : vector<128x8xf32>
    %225 = math.exp %224 : vector<128x8xf32>
    %cst_61 = arith.constant 1.000000e+00 : f32
    %226 = vector.broadcast %cst_61 : f32 to vector<128x8xf32>
    %227 = arith.addf %226, %225 : vector<128x8xf32>
    %228 = arith.divf %226, %227 : vector<128x8xf32>
    %cst_62 = arith.constant 2.000000e+00 : f32
    %229 = vector.broadcast %cst_62 : f32 to vector<128x8xf32>
    %230 = arith.mulf %229, %228 : vector<128x8xf32>
    %cst_63 = arith.constant 1.000000e+00 : f32
    %231 = vector.broadcast %cst_63 : f32 to vector<128x8xf32>
    %232 = arith.subf %230, %231 : vector<128x8xf32>
    %233 = arith.select %12, %232, %228 : vector<128x8xi1>, vector<128x8xf32>
    %234 = vector.extract_strided_slice %233 {offsets = [0, 0], sizes = [32, 8], strides = [1, 1]} : vector<128x8xf32> to vector<32x8xf32>
    %235 = vector.extract_strided_slice %233 {offsets = [32, 0], sizes = [32, 8], strides = [1, 1]} : vector<128x8xf32> to vector<32x8xf32>
    %236 = vector.extract_strided_slice %233 {offsets = [64, 0], sizes = [32, 8], strides = [1, 1]} : vector<128x8xf32> to vector<32x8xf32>
    %237 = vector.extract_strided_slice %233 {offsets = [96, 0], sizes = [32, 8], strides = [1, 1]} : vector<128x8xf32> to vector<32x8xf32>
    %238 = arith.mulf %235, %217 : vector<32x8xf32>
    %239 = arith.mulf %234, %236 : vector<32x8xf32>
    %240 = arith.addf %238, %239 : vector<32x8xf32>
    %241 = math.tanh %240 : vector<32x8xf32>
    %242 = arith.mulf %237, %241 : vector<32x8xf32>
    %243 = arith.addf %220, %242 : vector<32x8xf32>
    %cst_64 = arith.constant dense<0.000000e+00> : vector<128x8xf32>
    %244 = tpu.matmul %2, %242, %cst_64 {dimension_numbers = #tpu.dot_dimension_numbers<[1], [0], [0], [1], [0, 0, 1, 1], [], []>} : vector<128x32xf32>, vector<32x8xf32>, vector<128x8xf32> -> vector<128x8xf32>
    %245 = arith.addf %79, %244 : vector<128x8xf32>
    %246 = arith.mulf %245, %15 : vector<128x8xf32>
    %247 = arith.negf %246 : vector<128x8xf32>
    %248 = math.exp %247 : vector<128x8xf32>
    %cst_65 = arith.constant 1.000000e+00 : f32
    %249 = vector.broadcast %cst_65 : f32 to vector<128x8xf32>
    %250 = arith.addf %249, %248 : vector<128x8xf32>
    %251 = arith.divf %249, %250 : vector<128x8xf32>
    %cst_66 = arith.constant 2.000000e+00 : f32
    %252 = vector.broadcast %cst_66 : f32 to vector<128x8xf32>
    %253 = arith.mulf %252, %251 : vector<128x8xf32>
    %cst_67 = arith.constant 1.000000e+00 : f32
    %254 = vector.broadcast %cst_67 : f32 to vector<128x8xf32>
    %255 = arith.subf %253, %254 : vector<128x8xf32>
    %256 = arith.select %12, %255, %251 : vector<128x8xi1>, vector<128x8xf32>
    %257 = vector.extract_strided_slice %256 {offsets = [0, 0], sizes = [32, 8], strides = [1, 1]} : vector<128x8xf32> to vector<32x8xf32>
    %258 = vector.extract_strided_slice %256 {offsets = [32, 0], sizes = [32, 8], strides = [1, 1]} : vector<128x8xf32> to vector<32x8xf32>
    %259 = vector.extract_strided_slice %256 {offsets = [64, 0], sizes = [32, 8], strides = [1, 1]} : vector<128x8xf32> to vector<32x8xf32>
    %260 = vector.extract_strided_slice %256 {offsets = [96, 0], sizes = [32, 8], strides = [1, 1]} : vector<128x8xf32> to vector<32x8xf32>
    %261 = arith.mulf %258, %240 : vector<32x8xf32>
    %262 = arith.mulf %257, %259 : vector<32x8xf32>
    %263 = arith.addf %261, %262 : vector<32x8xf32>
    %264 = math.tanh %263 : vector<32x8xf32>
    %265 = arith.mulf %260, %264 : vector<32x8xf32>
    %266 = arith.addf %243, %265 : vector<32x8xf32>
    %cst_68 = arith.constant 1.250000e-01 : f32
    %267 = vector.broadcast %cst_68 : f32 to vector<32x8xf32>
    %268 = arith.mulf %266, %267 : vector<32x8xf32>
    %c0_69 = arith.constant 0 : index
    %c0_70 = arith.constant 0 : index
    %269 = vector.load %arg6[%c0_69, %c0_70] : memref<32x32xf32, #tpu.memory_space<vmem>>, vector<32x32xf32>
    %cst_71 = arith.constant dense<0.000000e+00> : vector<32x8xf32>
    %270 = tpu.matmul %269, %268, %cst_71 {dimension_numbers = #tpu.dot_dimension_numbers<[1], [0], [0], [1], [0, 0, 1, 1], [], []>} : vector<32x32xf32>, vector<32x8xf32>, vector<32x8xf32> -> vector<32x8xf32>
    %c0_72 = arith.constant 0 : index
    %c0_73 = arith.constant 0 : index
    %271 = vector.load %arg7[%c0_72, %c0_73] : memref<32x1xf32, #tpu.memory_space<vmem>>, vector<32x1xf32>
    %272 = vector.broadcast %271 : vector<32x1xf32> to vector<32x8xf32>
    %273 = arith.addf %270, %272 : vector<32x8xf32>
    %cst_74 = arith.constant 0.000000e+00 : f32
    %274 = vector.broadcast %cst_74 : f32 to vector<32x8xf32>
    %275 = arith.maximumf %273, %274 : vector<32x8xf32>
    %c0_75 = arith.constant 0 : index
    %c0_76 = arith.constant 0 : index
    %276 = vector.load %arg8[%c0_75, %c0_76] : memref<16x32xf32, #tpu.memory_space<vmem>>, vector<16x32xf32>
    %cst_77 = arith.constant dense<0.000000e+00> : vector<16x8xf32>
    %277 = tpu.matmul %276, %275, %cst_77 {dimension_numbers = #tpu.dot_dimension_numbers<[1], [0], [0], [1], [0, 0, 1, 1], [], []>} : vector<16x32xf32>, vector<32x8xf32>, vector<16x8xf32> -> vector<16x8xf32>
    %c0_78 = arith.constant 0 : index
    %c0_79 = arith.constant 0 : index
    %278 = vector.load %arg9[%c0_78, %c0_79] : memref<16x1xf32, #tpu.memory_space<vmem>>, vector<16x1xf32>
    %279 = vector.broadcast %278 : vector<16x1xf32> to vector<16x8xf32>
    %280 = arith.addf %277, %279 : vector<16x8xf32>
    %cst_80 = arith.constant 0.000000e+00 : f32
    %281 = vector.broadcast %cst_80 : f32 to vector<16x8xf32>
    %282 = arith.maximumf %280, %281 : vector<16x8xf32>
    %c0_81 = arith.constant 0 : index
    %c0_82 = arith.constant 0 : index
    %283 = vector.load %arg10[%c0_81, %c0_82] : memref<2x16xf32, #tpu.memory_space<vmem>>, vector<2x16xf32>
    %cst_83 = arith.constant dense<0.000000e+00> : vector<2x8xf32>
    %284 = tpu.matmul %283, %282, %cst_83 {dimension_numbers = #tpu.dot_dimension_numbers<[1], [0], [0], [1], [0, 0, 1, 1], [], []>} : vector<2x16xf32>, vector<16x8xf32>, vector<2x8xf32> -> vector<2x8xf32>
    %c0_84 = arith.constant 0 : index
    %c0_85 = arith.constant 0 : index
    %285 = vector.load %arg11[%c0_84, %c0_85] : memref<2x1xf32, #tpu.memory_space<vmem>>, vector<2x1xf32>
    %286 = vector.broadcast %285 : vector<2x1xf32> to vector<2x8xf32>
    %287 = arith.addf %284, %286 : vector<2x8xf32>
    %cst_86 = arith.constant dense<0xFF800000> : vector<8xf32>
    %288 = vector.multi_reduction <maximumf>, %287, %cst_86 [0] : vector<2x8xf32> to vector<8xf32>
    %289 = vector.shape_cast %288 : vector<8xf32> to vector<1x8xf32>
    %290 = vector.broadcast %289 : vector<1x8xf32> to vector<2x8xf32>
    %291 = arith.subf %287, %290 : vector<2x8xf32>
    %292 = math.exp %291 : vector<2x8xf32>
    %cst_87 = arith.constant dense<0.000000e+00> : vector<8xf32>
    %293 = vector.multi_reduction <add>, %292, %cst_87 [0] : vector<2x8xf32> to vector<8xf32>
    %294 = vector.shape_cast %293 : vector<8xf32> to vector<1x8xf32>
    %295 = math.log %294 : vector<1x8xf32>
    %296 = arith.addf %289, %295 : vector<1x8xf32>
    %297 = vector.broadcast %296 : vector<1x8xf32> to vector<2x8xf32>
    %298 = arith.subf %287, %297 : vector<2x8xf32>
    %c0_88 = arith.constant 0 : index
    %c0_89 = arith.constant 0 : index
    %299 = vector.load %arg12[%c0_88, %c0_89] : memref<2x8xf32, #tpu.memory_space<vmem>>, vector<2x8xf32>
    tpu.vector_store %arg12[%c0_88, %c0_89], %298 {strides = array<i32>} : memref<2x8xf32, #tpu.memory_space<vmem>>, vector<2x8xf32>,
    return
  }
  func.func @transform_0(%arg0: i32) -> (i32, i32) {
    %c0_i32 = arith.constant 0 : i32
    %c0_i32_0 = arith.constant 0 : i32
    return %c0_i32, %arg0 : i32, i32
  }
  func.func @transform_1(%arg0: i32) -> (i32, i32) {
    %c0_i32 = arith.constant 0 : i32
    %c0_i32_0 = arith.constant 0 : i32
    %c0_i32_1 = arith.constant 0 : i32
    return %c0_i32, %c0_i32_0 : i32, i32
  }
  func.func @transform_2(%arg0: i32) -> (i32, i32) {
    %c0_i32 = arith.constant 0 : i32
    %c0_i32_0 = arith.constant 0 : i32
    %c0_i32_1 = arith.constant 0 : i32
    return %c0_i32, %c0_i32_0 : i32, i32
  }
  func.func @transform_3(%arg0: i32) -> (i32, i32) {
    %c0_i32 = arith.constant 0 : i32
    %c0_i32_0 = arith.constant 0 : i32
    %c0_i32_1 = arith.constant 0 : i32
    return %c0_i32, %c0_i32_0 : i32, i32
  }
  func.func @transform_4(%arg0: i32) -> (i32, i32) {
    %c0_i32 = arith.constant 0 : i32
    %c0_i32_0 = arith.constant 0 : i32
    %c0_i32_1 = arith.constant 0 : i32
    return %c0_i32, %c0_i32_0 : i32, i32
  }
  func.func @transform_5(%arg0: i32) -> (i32, i32) {
    %c0_i32 = arith.constant 0 : i32
    %c0_i32_0 = arith.constant 0 : i32
    %c0_i32_1 = arith.constant 0 : i32
    return %c0_i32, %c0_i32_0 : i32, i32
  }
  func.func @transform_6(%arg0: i32) -> (i32, i32) {
    %c0_i32 = arith.constant 0 : i32
    %c0_i32_0 = arith.constant 0 : i32
    %c0_i32_1 = arith.constant 0 : i32
    return %c0_i32, %c0_i32_0 : i32, i32
  }
  func.func @transform_7(%arg0: i32) -> (i32, i32) {
    %c0_i32 = arith.constant 0 : i32
    %c0_i32_0 = arith.constant 0 : i32
    %c0_i32_1 = arith.constant 0 : i32
    return %c0_i32, %c0_i32_0 : i32, i32
  }
  func.func @transform_8(%arg0: i32) -> (i32, i32) {
    %c0_i32 = arith.constant 0 : i32
    %c0_i32_0 = arith.constant 0 : i32
    %c0_i32_1 = arith.constant 0 : i32
    return %c0_i32, %c0_i32_0 : i32, i32
  }
  func.func @transform_9(%arg0: i32) -> (i32, i32) {
    %c0_i32 = arith.constant 0 : i32
    %c0_i32_0 = arith.constant 0 : i32
    %c0_i32_1 = arith.constant 0 : i32
    return %c0_i32, %c0_i32_0 : i32, i32
  }
  func.func @transform_10(%arg0: i32) -> (i32, i32) {
    %c0_i32 = arith.constant 0 : i32
    %c0_i32_0 = arith.constant 0 : i32
    %c0_i32_1 = arith.constant 0 : i32
    return %c0_i32, %c0_i32_0 : i32, i32
  }
  func.func @transform_11(%arg0: i32) -> (i32, i32) {
    %c0_i32 = arith.constant 0 : i32
    %c0_i32_0 = arith.constant 0 : i32
    return %c0_i32, %arg0 : i32, i32
  }
}

</mosaic_0001>

<bundles_post_ra>
// kernel: tpu_custom_call.1
= control target key start
LH: loop header
LB: loop body
LE: loop exit
PB: predicated region body
PF: predicated region fallthrough
CT: control target
= control target key end

     0   :  { %v169_v0 = vlaneseq  ;;  %s10695_s0 = inlined_call_operand.vmem [shape: s32[8,8], index: 0, kind: input, shape index: {}]   ;;  %s10696_s1 = inlined_call_operand.vmem [shape: f32[16,128], index: 1, kind: input, shape index: {}]   ;;  %s10697_s2 = inlined_call_operand.vmem [shape: f32[128,16], index: 2, kind: input, shape index: {}]   ;;  %s10698_s3 = inlined_call_operand.vmem [shape: f32[128,32], index: 3, kind: input, shape index: {}]   ;;  %s10699_s4 = inlined_call_operand.vmem [shape: f32[128,1], index: 4, kind: input, shape index: {}]   ;;  %s10700_s5 = inlined_call_operand.vmem [shape: f32[32,32], index: 5, kind: input, shape index: {}]   ;;  %s10701_s6 = inlined_call_operand.vmem [shape: f32[32,1], index: 6, kind: input, shape index: {}]   ;;  %s10702_s7 = inlined_call_operand.vmem [shape: f32[16,32], index: 7, kind: input, shape index: {}]   ;;  %s10703_s8 = inlined_call_operand.vmem [shape: f32[16,1], index: 8, kind: input, shape index: {}]   ;;  %s10704_s9 = inlined_call_operand.vmem [shape: f32[2,16], index: 9, kind: input, shape index: {}]   ;;  %s10705_s10 = inlined_call_operand.vmem [shape: f32[2,1], index: 10, kind: input, shape index: {}]   ;;  %s10706_s11 = inlined_call_operand.hbm [shape: f32[2,8], index: 11, kind: output, shape index: {}]  }
   0x1   :  { %v9007_v1 = vld [vmem:[%s10696_s1] sm:$0xff] }
   0x2   :  { %v5639_v2 = vld [vmem:[%s10695_s0] ss:$0 sm:$0xff]  ;;  %6916 = vmatprep.mubr.f32.mxu0 %v9007_v1 }
   0x3   :  { %16 = vsyncpa [#allocation3], 0  ;;  %v9013_v3 = vshrl.u32 %v169_v0, 7  ;;  %v8938_v9 = vmov 1.0|1.0   ;;  %v9095_v20 = vld [vmem:[%s10696_s1 + $0x8] sm:$0xff] }
   0x4   :  { %v9101_v21 = vld [vmem:[%s10697_s2] sm:$0xff]  ;;  %v9123_v26 = vld [vmem:[%s10697_s2 + $0x8] sm:$0xff]  ;;  %v9129_v27 = vld [vmem:[%s10697_s2 + $0x10] sm:$0xff] }
   0x5   :  { %v9016_v4 = vadd.s32 8, %v9013_v3  ;;  %vm255_vm0 = vcmp.eq.s32.totalorder %v9013_v3, %v5639_v2  ;;  %v9020_v5 = vadd.s32 16, %v9013_v3  ;;  %v9023_v6 = vadd.s32 24, %v9013_v3  ;;  %v9110_v22 = vld [vmem:[%s10695_s0 + $0x1] ss:$0 sm:$0xff]  ;;  %v9143_v28 = vld [vmem:[%s10697_s2 + $0x18] sm:$0xff] }
   0x6   :  { %v9026_v7 = vadd.s32 32, %v9013_v3  ;;  %v9029_v8 = vadd.s32 40, %v9013_v3  ;;  %v9038_v10 = vadd.s32 48, %v9013_v3  ;;  %v9041_v11 = vadd.s32 56, %v9013_v3  ;;  %v9149_v29 = vld [vmem:[%s10697_s2 + $0x20] sm:$0xff]  ;;  %v9163_v30 = vld [vmem:[%s10697_s2 + $0x28] sm:$0xff] }
   0x7   :  { %vm256_vm1 = vcmp.eq.s32.totalorder %v9016_v4, %v5639_v2  ;;  %vm257_vm2 = vcmp.eq.s32.totalorder %v9020_v5, %v5639_v2  ;;  %vm258_vm3 = vcmp.eq.s32.totalorder %v9023_v6, %v5639_v2  ;;  %v9048_v12 = vadd.s32 64, %v9013_v3  ;;  %v9169_v31 = vld [vmem:[%s10697_s2 + $0x30] sm:$0xff]  ;;  %v9183_v32 = vld [vmem:[%s10697_s2 + $0x38] sm:$0xff]  ;;  %v9189_v33 = vld [vmem:[%s10697_s2 + $0x40] sm:$0xff] }
   0x8   :  { %vm7670_vm4 = vmpackc.low %vm256_vm1, %vm255_vm0  ;;  %vm259_vm6 = vcmp.eq.s32.totalorder %v9026_v7, %v5639_v2  ;;  %vm260_vm7 = vcmp.eq.s32.totalorder %v9029_v8, %v5639_v2  ;;  %vm261_vm9 = vcmp.eq.s32.totalorder %v9038_v10, %v5639_v2  ;;  %vm262_vm10 = vcmp.eq.s32.totalorder %v9041_v11, %v5639_v2  ;;  %v9203_v34 = vld [vmem:[%s10697_s2 + $0x48] sm:$0xff]  ;;  %v9209_v35 = vld [vmem:[%s10697_s2 + $0x50] sm:$0xff] }
   0x9   :  { %7671 = vmatprep.subr.msk.bf16.mxu0 %vm7670_vm4, %v8938_v9  ;;  %vm7674_vm5 = vmpackc.low %vm258_vm3, %vm257_vm2  ;;  %v9051_v13 = vadd.s32 72, %v9013_v3  ;;  %vm263_vm12 = vcmp.eq.s32.totalorder %v9048_v12, %v5639_v2  ;;  %v9058_v14 = vadd.s32 80, %v9013_v3  ;;  %v9061_v15 = vadd.s32 88, %v9013_v3  ;;  %v9223_v36 = vld [vmem:[%s10697_s2 + $0x58] sm:$0xff]  ;;  %v9229_v37 = vld [vmem:[%s10697_s2 + $0x60] sm:$0xff] }
   0xa   :  { %7673 = vmatpush3.bf16.msk.msra.mxu0 %vm7670_vm4, %v8938_v9  ;;  %vm7678_vm8 = vmpackc.low %vm260_vm7, %vm259_vm6  ;;  %v9068_v16 = vadd.s32 96, %v9013_v3  ;;  %v9071_v17 = vadd.s32 104, %v9013_v3  ;;  %v9078_v18 = vadd.s32 112, %v9013_v3  ;;  %v9081_v19 = vadd.s32 120, %v9013_v3  ;;  %v9243_v38 = vld [vmem:[%s10697_s2 + $0x68] sm:$0xff]  ;;  %v9249_v39 = vld [vmem:[%s10697_s2 + $0x70] sm:$0xff] }
   0xb   :  { %7675 = vmatprep.subr.msk.bf16.mxu0 %vm7674_vm5, %v8938_v9  ;;  %vm7682_vm11 = vmpackc.low %vm262_vm10, %vm261_vm9  ;;  %vm264_vm13 = vcmp.eq.s32.totalorder %v9051_v13, %v5639_v2  ;;  %vm265_vm15 = vcmp.eq.s32.totalorder %v9058_v14, %v5639_v2  ;;  %vm266_vm0 = vcmp.eq.s32.totalorder %v9061_v15, %v5639_v2  ;;  %vm577_vm9 = vcmp.eq.s32.totalorder %v9013_v3, %v9110_v22  ;;  %v9259_v40 = vld [vmem:[%s10697_s2 + $0x78] sm:$0xff]  ;;  %v5737_v41 = vld [vmem:[%s10695_s0 + $0x2] ss:$0 sm:$0xff] }
   0xc   :  { %vm7686_vm14 = vmpackc.low %vm264_vm13, %vm263_vm12  ;;  %vm267_vm2 = vcmp.eq.s32.totalorder %v9068_v16, %v5639_v2  ;;  %vm268_vm3 = vcmp.eq.s32.totalorder %v9071_v17, %v5639_v2  ;;  %vm270_vm6 = vcmp.eq.s32.totalorder %v9081_v19, %v5639_v2  ;;  %vm578_vm10 = vcmp.eq.s32.totalorder %v9016_v4, %v9110_v22  ;;  %v5786_v45 = vld [vmem:[%s10695_s0 + $0x3] ss:$0 sm:$0xff]  ;;  %v5835_v49 = vld [vmem:[%s10695_s0 + $0x4] ss:$0 sm:$0xff] }
   0xd   :  { %vm7690_vm1 = vmpackc.low %vm266_vm0, %vm265_vm15  ;;  %vm579_vm12 = vcmp.eq.s32.totalorder %v9020_v5, %v9110_v22  ;;  %vm580_vm13 = vcmp.eq.s32.totalorder %v9023_v6, %v9110_v22  ;;  %vm581_vm15 = vcmp.eq.s32.totalorder %v9026_v7, %v9110_v22  ;;  %vm582_vm0 = vcmp.eq.s32.totalorder %v9029_v8, %v9110_v22  ;;  %v5884_v53 = vld [vmem:[%s10695_s0 + $0x5] ss:$0 sm:$0xff]  ;;  %v5933_v57 = vld [vmem:[%s10695_s0 + $0x6] ss:$0 sm:$0xff] }
   0xe   :  { %7677 = vmatpush3.bf16.msk.msra.mxu0 %vm7674_vm5, %v8938_v9  ;;  %vm7694_vm4 = vmpackc.low %vm268_vm3, %vm267_vm2  ;;  %vm269_vm5 = vcmp.eq.s32.totalorder %v9078_v18, %v5639_v2  ;;  %vm583_vm2 = vcmp.eq.s32.totalorder %v9038_v10, %v9110_v22  ;;  %vm584_vm3 = vcmp.eq.s32.totalorder %v9041_v11, %v9110_v22  ;;  %v5982_v61 = vld [vmem:[%s10695_s0 + $0x7] ss:$0 sm:$0xff] }
   0xf   :  { %7679 = vmatprep.subr.msk.bf16.mxu0 %vm7678_vm8, %v8938_v9  ;;  %vm7698_vm7 = vmpackc.low %vm270_vm6, %vm269_vm5  ;;  %vm585_vm5 = vcmp.eq.s32.totalorder %v9048_v12, %v9110_v22  ;;  %vm586_vm6 = vcmp.eq.s32.totalorder %v9051_v13, %v9110_v22  ;;  %v81_v2 = vld [vmem:[%s10699_s4 + $0x40] sm:$0xff] }
  0x12   :  { %7681 = vmatpush3.bf16.msk.msra.mxu0 %vm7678_vm8, %v8938_v9  ;;  %vm378_vm8 = vcmask 130048  }
  0x13   :  { %7683 = vmatprep.subr.msk.bf16.mxu0 %vm7682_vm11, %v8938_v9  ;;  %6923 = vmatprep.mubr.msk.f32.mxu1 %vm378_vm8, %v9101_v21 }
  0x16   :  { %7685 = vmatpush3.bf16.msk.msra.mxu0 %vm7682_vm11, %v8938_v9  ;;  %vm7706_vm11 = vmpackc.low %vm578_vm10, %vm577_vm9  ;;  %vm587_vm9 = vcmp.eq.s32.totalorder %v9058_v14, %v9110_v22  ;;  %vm588_vm10 = vcmp.eq.s32.totalorder %v9061_v15, %v9110_v22 }
  0x17   :  { %7687 = vmatprep.subr.msk.bf16.mxu0 %vm7686_vm14, %v8938_v9 }
  0x1a   :  { %7689 = vmatpush3.bf16.msk.msra.mxu0 %vm7686_vm14, %v8938_v9  ;;  %vm7710_vm14 = vmpackc.low %vm580_vm13, %vm579_vm12  ;;  %vm589_vm12 = vcmp.eq.s32.totalorder %v9068_v16, %v9110_v22  ;;  %vm590_vm13 = vcmp.eq.s32.totalorder %v9071_v17, %v9110_v22 }
  0x1b   :  { %7691 = vmatprep.subr.msk.bf16.mxu0 %vm7690_vm1, %v8938_v9 }
  0x1e   :  { %7693 = vmatpush3.bf16.msk.msra.mxu0 %vm7690_vm1, %v8938_v9  ;;  %vm7714_vm1 = vmpackc.low %vm582_vm0, %vm581_vm15  ;;  %vm591_vm15 = vcmp.eq.s32.totalorder %v9078_v18, %v9110_v22  ;;  %vm592_vm0 = vcmp.eq.s32.totalorder %v9081_v19, %v9110_v22  ;;  %v5303_v22 = vld [vmem:[%s10701_s6 + $0x18] sm:$0xff] }
  0x1f   :  { %7695 = vmatprep.subr.msk.bf16.mxu0 %vm7694_vm4, %v8938_v9 }
  0x22   :  { %7697 = vmatpush3.bf16.msk.msra.mxu0 %vm7694_vm4, %v8938_v9  ;;  %vm7718_vm4 = vmpackc.low %vm584_vm3, %vm583_vm2  ;;  %vm850_vm2 = vcmp.eq.s32.totalorder %v9013_v3, %v5737_v41  ;;  %vm851_vm3 = vcmp.eq.s32.totalorder %v9016_v4, %v5737_v41 }
  0x23   :  { %7699 = vmatprep.subr.msk.bf16.mxu0 %vm7698_vm7, %v8938_v9 }
  0x26   :  { %7701 = vmatpush3.bf16.msk.msra.mxu0 %vm7698_vm7, %v8938_v9  ;;  %vm7722_vm7 = vmpackc.low %vm586_vm6, %vm585_vm5  ;;  %vm852_vm5 = vcmp.eq.s32.totalorder %v9020_v5, %v5737_v41  ;;  %vm853_vm6 = vcmp.eq.s32.totalorder %v9023_v6, %v5737_v41 }
  0x29   :  { %6917 = vmatmul.mubr.f32.vlgmr.msra.gmra.mrb[0].mxu0 %v9095_v20 }
  0x2a   :  { %6986 = vmatprep.mubr.msk.f32.mxu0 %vm378_vm8, %v9101_v21 }
  0xfc   :  { %v6918_v23 = vpop.f32.mrb[0].mxu0 }
  0xfd   :  { %v369_v24 = vpop.f32.mrb[1].mxu0 }
  0xfe   :  { %v7702_v25 = vpack.c.bf16 %v6918_v23, %v369_v24  ;;  %v5427_v23 = vld [vmem:[%s10703_s8] sm:$0xff]  ;;  %v5428_v24 = vld [vmem:[%s10703_s8 + $0x8] sm:$0xff] }
 0x100   :  { %7703 = vmatprep.subr.bf16.mxu1 %v7702_v25 }
 0x101   :  { %7705 = vmatpush3.bf16.msra.mxu1 %v7702_v25  ;;  %v5523_v25 = vld [vmem:[%s10705_s10] sm:$0x3] }
 0x102   :  { %7707 = vmatprep.subr.msk.bf16.mxu1 %vm7706_vm11, %v8938_v9 }
 0x104   :  { %6924 = vmatmul.mubr.msk.f32.vlgmr.msra.gmra.mrb[0].mxu1 %vm378_vm8, %v9123_v26 }
 0x105   :  { %7709 = vmatpush3.bf16.msk.msra.mxu1 %vm7706_vm11, %v8938_v9  ;;  %6926 = vmatprep.mubr.msk.f32.mxu1 %vm378_vm8, %v9129_v27  ;;  %vm7726_vm11 = vmpackc.low %vm588_vm10, %vm587_vm9  ;;  %vm854_vm9 = vcmp.eq.s32.totalorder %v9026_v7, %v5737_v41  ;;  %vm855_vm10 = vcmp.eq.s32.totalorder %v9029_v8, %v5737_v41 }
 0x106   :  { %7711 = vmatprep.subr.msk.bf16.mxu1 %vm7710_vm14, %v8938_v9 }
 0x108   :  { %6927 = vmatmul.mubr.msk.f32.gmra.mrb[2].mxu1 %vm378_vm8, %v9143_v28 }
 0x109   :  { %7713 = vmatpush3.bf16.msk.msra.mxu1 %vm7710_vm14, %v8938_v9  ;;  %6929 = vmatprep.mubr.msk.f32.mxu1 %vm378_vm8, %v9149_v29  ;;  %vm7730_vm14 = vmpackc.low %vm590_vm13, %vm589_vm12  ;;  %vm856_vm12 = vcmp.eq.s32.totalorder %v9038_v10, %v5737_v41  ;;  %vm857_vm13 = vcmp.eq.s32.totalorder %v9041_v11, %v5737_v41 }
 0x10a   :  { %7715 = vmatprep.subr.msk.bf16.mxu1 %vm7714_vm1, %v8938_v9 }
 0x10c   :  { %6930 = vmatmul.mubr.msk.f32.gmra.mrb[4].mxu1 %vm378_vm8, %v9163_v30 }
 0x10d   :  { %7717 = vmatpush3.bf16.msk.msra.mxu1 %vm7714_vm1, %v8938_v9  ;;  %6932 = vmatprep.mubr.msk.f32.mxu1 %vm378_vm8, %v9169_v31  ;;  %vm7734_vm1 = vmpackc.low %vm592_vm0, %vm591_vm15  ;;  %vm858_vm15 = vcmp.eq.s32.totalorder %v9048_v12, %v5737_v41  ;;  %vm859_vm0 = vcmp.eq.s32.totalorder %v9051_v13, %v5737_v41 }
 0x10e   :  { %7719 = vmatprep.subr.msk.bf16.mxu1 %vm7718_vm4, %v8938_v9 }
 0x110   :  { %6933 = vmatmul.mubr.msk.f32.gmra.mrb[6].mxu1 %vm378_vm8, %v9183_v32 }
 0x111   :  { %7721 = vmatpush3.bf16.msk.msra.mxu1 %vm7718_vm4, %v8938_v9  ;;  %6935 = vmatprep.mubr.msk.f32.mxu1 %vm378_vm8, %v9189_v33  ;;  %vm7742_vm4 = vmpackc.low %vm851_vm3, %vm850_vm2  ;;  %vm860_vm2 = vcmp.eq.s32.totalorder %v9058_v14, %v5737_v41  ;;  %vm861_vm3 = vcmp.eq.s32.totalorder %v9061_v15, %v5737_v41 }
 0x112   :  { %7723 = vmatprep.subr.msk.bf16.mxu1 %vm7722_vm7, %v8938_v9 }
 0x114   :  { %6936 = vmatmul.mubr.msk.f32.gmra.mrb[8].mxu1 %vm378_vm8, %v9203_v34 }
 0x115   :  { %7725 = vmatpush3.bf16.msk.msra.mxu1 %vm7722_vm7, %v8938_v9  ;;  %6938 = vmatprep.mubr.msk.f32.mxu1 %vm378_vm8, %v9209_v35  ;;  %vm7746_vm7 = vmpackc.low %vm853_vm6, %vm852_vm5  ;;  %vm862_vm5 = vcmp.eq.s32.totalorder %v9068_v16, %v5737_v41  ;;  %vm863_vm6 = vcmp.eq.s32.totalorder %v9071_v17, %v5737_v41 }
 0x116   :  { %7727 = vmatprep.subr.msk.bf16.mxu1 %vm7726_vm11, %v8938_v9 }
 0x118   :  { %6939 = vmatmul.mubr.msk.f32.gmra.mrb[10].mxu1 %vm378_vm8, %v9223_v36 }
 0x119   :  { %7729 = vmatpush3.bf16.msk.msra.mxu1 %vm7726_vm11, %v8938_v9  ;;  %6941 = vmatprep.mubr.msk.f32.mxu1 %vm378_vm8, %v9229_v37  ;;  %vm7750_vm11 = vmpackc.low %vm855_vm10, %vm854_vm9  ;;  %vm864_vm9 = vcmp.eq.s32.totalorder %v9078_v18, %v5737_v41  ;;  %vm865_vm10 = vcmp.eq.s32.totalorder %v9081_v19, %v5737_v41  ;;  %v9758_v41 = vld [vmem:[%s10698_s3] sm:$0xff] }
 0x11a   :  { %7731 = vmatprep.subr.msk.bf16.mxu1 %vm7730_vm14, %v8938_v9 }
 0x11c   :  { %6942 = vmatmul.mubr.msk.f32.gmra.mrb[12].mxu1 %vm378_vm8, %v9243_v38 }
 0x11d   :  { %7733 = vmatpush3.bf16.msk.msra.mxu1 %vm7730_vm14, %v8938_v9  ;;  %6944 = vmatprep.mubr.msk.f32.mxu1 %vm378_vm8, %v9249_v39  ;;  %vm7754_vm14 = vmpackc.low %vm857_vm13, %vm856_vm12  ;;  %vm1123_vm12 = vcmp.eq.s32.totalorder %v9013_v3, %v5786_v45  ;;  %vm1124_vm13 = vcmp.eq.s32.totalorder %v9016_v4, %v5786_v45 }
 0x11e   :  { %7735 = vmatprep.subr.msk.bf16.mxu1 %vm7734_vm1, %v8938_v9 }
 0x120   :  { %6945 = vmatmul.mubr.msk.f32.gmra.mrb[14].mxu1 %vm378_vm8, %v9259_v40 }
 0x121   :  { %7737 = vmatpush3.bf16.msk.msra.mxu1 %vm7734_vm1, %v8938_v9  ;;  %6979 = vmatprep.mubr.f32.mxu1 %v9007_v1  ;;  %vm7758_vm1 = vmpackc.low %vm859_vm0, %vm858_vm15  ;;  %vm1125_vm15 = vcmp.eq.s32.totalorder %v9020_v5, %v5786_v45  ;;  %vm1126_vm0 = vcmp.eq.s32.totalorder %v9023_v6, %v5786_v45 }
 0x124   :  { %6980 = vmatmul.mubr.f32.vlgmr.msra.gmra.mrb[16].mxu1 %v9095_v20 }
 0x125   :  { %7049 = vmatprep.mubr.msk.f32.mxu1 %vm378_vm8, %v9101_v21 }
 0x1f7   :  { %v6981_v42 = vpop.f32.mrb[16].mxu1 }
 0x1f8   :  { %v691_v43 = vpop.f32.mrb[17].mxu1 }
 0x1f9   :  { %v7738_v44 = vpack.c.bf16 %v6981_v42, %v691_v43  ;;  %v8880_v42 = vld [vmem:[%s10697_s2 + $0x8] sm:$0xff] }
 0x1fa   :  { %v9772_v43 = vld [vmem:[%s10698_s3 + $0x8] sm:$0xff] }
 0x1fb   :  { %7739 = vmatprep.subr.bf16.mxu0 %v7738_v44 }
 0x1fc   :  { %7741 = vmatpush3.bf16.msra.mxu0 %v7738_v44  ;;  %v8881_v44 = vld [vmem:[%s10697_s2 + $0x10] sm:$0xff] }
 0x1fd   :  { %7743 = vmatprep.subr.msk.bf16.mxu0 %vm7742_vm4, %v8938_v9 }
 0x1ff   :  { %6987 = vmatmul.mubr.msk.f32.vlgmr.msra.gmra.mrb[2].mxu0 %vm378_vm8, %v9123_v26 }
 0x200   :  { %7745 = vmatpush3.bf16.msk.msra.mxu0 %vm7742_vm4, %v8938_v9  ;;  %6989 = vmatprep.mubr.msk.f32.mxu0 %vm378_vm8, %v9129_v27  ;;  %vm7762_vm4 = vmpackc.low %vm861_vm3, %vm860_vm2  ;;  %vm1127_vm2 = vcmp.eq.s32.totalorder %v9026_v7, %v5786_v45  ;;  %vm1128_vm3 = vcmp.eq.s32.totalorder %v9029_v8, %v5786_v45 }
 0x201   :  { %7747 = vmatprep.subr.msk.bf16.mxu0 %vm7746_vm7, %v8938_v9 }
 0x203   :  { %6990 = vmatmul.mubr.msk.f32.gmra.mrb[4].mxu0 %vm378_vm8, %v9143_v28 }
 0x204   :  { %7749 = vmatpush3.bf16.msk.msra.mxu0 %vm7746_vm7, %v8938_v9  ;;  %6992 = vmatprep.mubr.msk.f32.mxu0 %vm378_vm8, %v9149_v29  ;;  %vm7766_vm7 = vmpackc.low %vm863_vm6, %vm862_vm5  ;;  %vm1129_vm5 = vcmp.eq.s32.totalorder %v9038_v10, %v5786_v45  ;;  %vm1130_vm6 = vcmp.eq.s32.totalorder %v9041_v11, %v5786_v45 }
 0x205   :  { %7751 = vmatprep.subr.msk.bf16.mxu0 %vm7750_vm11, %v8938_v9 }
 0x207   :  { %6993 = vmatmul.mubr.msk.f32.gmra.mrb[6].mxu0 %vm378_vm8, %v9163_v30 }
 0x208   :  { %7753 = vmatpush3.bf16.msk.msra.mxu0 %vm7750_vm11, %v8938_v9  ;;  %6995 = vmatprep.mubr.msk.f32.mxu0 %vm378_vm8, %v9169_v31  ;;  %vm7770_vm11 = vmpackc.low %vm865_vm10, %vm864_vm9  ;;  %vm1131_vm9 = vcmp.eq.s32.totalorder %v9048_v12, %v5786_v45  ;;  %vm1132_vm10 = vcmp.eq.s32.totalorder %v9051_v13, %v5786_v45 }
 0x209   :  { %7755 = vmatprep.subr.msk.bf16.mxu0 %vm7754_vm14, %v8938_v9 }
 0x20b   :  { %6996 = vmatmul.mubr.msk.f32.gmra.mrb[8].mxu0 %vm378_vm8, %v9183_v32 }
 0x20c   :  { %7757 = vmatpush3.bf16.msk.msra.mxu0 %vm7754_vm14, %v8938_v9  ;;  %6998 = vmatprep.mubr.msk.f32.mxu0 %vm378_vm8, %v9189_v33  ;;  %vm7778_vm14 = vmpackc.low %vm1124_vm13, %vm1123_vm12  ;;  %vm1133_vm12 = vcmp.eq.s32.totalorder %v9058_v14, %v5786_v45  ;;  %vm1134_vm13 = vcmp.eq.s32.totalorder %v9061_v15, %v5786_v45 }
 0x20d   :  { %7759 = vmatprep.subr.msk.bf16.mxu0 %vm7758_vm1, %v8938_v9 }
 0x20f   :  { %6999 = vmatmul.mubr.msk.f32.gmra.mrb[10].mxu0 %vm378_vm8, %v9203_v34 }
 0x210   :  { %7761 = vmatpush3.bf16.msk.msra.mxu0 %vm7758_vm1, %v8938_v9  ;;  %7001 = vmatprep.mubr.msk.f32.mxu0 %vm378_vm8, %v9209_v35  ;;  %vm7782_vm1 = vmpackc.low %vm1126_vm0, %vm1125_vm15  ;;  %vm1135_vm15 = vcmp.eq.s32.totalorder %v9068_v16, %v5786_v45  ;;  %vm1136_vm0 = vcmp.eq.s32.totalorder %v9071_v17, %v5786_v45 }
 0x211   :  { %7763 = vmatprep.subr.msk.bf16.mxu0 %vm7762_vm4, %v8938_v9 }
 0x213   :  { %7002 = vmatmul.mubr.msk.f32.gmra.mrb[12].mxu0 %vm378_vm8, %v9223_v36 }
 0x214   :  { %7765 = vmatpush3.bf16.msk.msra.mxu0 %vm7762_vm4, %v8938_v9  ;;  %7004 = vmatprep.mubr.msk.f32.mxu0 %vm378_vm8, %v9229_v37  ;;  %vm7786_vm4 = vmpackc.low %vm1128_vm3, %vm1127_vm2  ;;  %vm1137_vm2 = vcmp.eq.s32.totalorder %v9078_v18, %v5786_v45  ;;  %vm1138_vm3 = vcmp.eq.s32.totalorder %v9081_v19, %v5786_v45  ;;  %v9792_v45 = vld [vmem:[%s10698_s3 + $0x18] sm:$0xff] }
 0x215   :  { %7767 = vmatprep.subr.msk.bf16.mxu0 %vm7766_vm7, %v8938_v9 }
 0x217   :  { %7005 = vmatmul.mubr.msk.f32.gmra.mrb[14].mxu0 %vm378_vm8, %v9243_v38 }
 0x218   :  { %7769 = vmatpush3.bf16.msk.msra.mxu0 %vm7766_vm7, %v8938_v9  ;;  %7007 = vmatprep.mubr.msk.f32.mxu0 %vm378_vm8, %v9249_v39  ;;  %vm7790_vm7 = vmpackc.low %vm1130_vm6, %vm1129_vm5  ;;  %vm1396_vm5 = vcmp.eq.s32.totalorder %v9013_v3, %v5835_v49  ;;  %vm1397_vm6 = vcmp.eq.s32.totalorder %v9016_v4, %v5835_v49 }
 0x219   :  { %7771 = vmatprep.subr.msk.bf16.mxu0 %vm7770_vm11, %v8938_v9 }
 0x21b   :  { %7008 = vmatmul.mubr.msk.f32.gmra.mrb[16].mxu0 %vm378_vm8, %v9259_v40 }
 0x21c   :  { %7773 = vmatpush3.bf16.msk.msra.mxu0 %vm7770_vm11, %v8938_v9  ;;  %7042 = vmatprep.mubr.f32.mxu0 %v9007_v1  ;;  %vm7794_vm11 = vmpackc.low %vm1132_vm10, %vm1131_vm9  ;;  %vm1398_vm9 = vcmp.eq.s32.totalorder %v9020_v5, %v5835_v49  ;;  %vm1399_vm10 = vcmp.eq.s32.totalorder %v9023_v6, %v5835_v49 }
 0x21f   :  { %7043 = vmatmul.mubr.f32.vlgmr.msra.gmra.mrb[18].mxu0 %v9095_v20 }
 0x220   :  { %7112 = vmatprep.mubr.msk.f32.mxu0 %vm378_vm8, %v9101_v21 }
 0x2f2   :  { %v7044_v46 = vpop.f32.mrb[18].mxu0 }
 0x2f3   :  { %v964_v47 = vpop.f32.mrb[19].mxu0 }
 0x2f4   :  { %v7774_v48 = vpack.c.bf16 %v7044_v46, %v964_v47  ;;  %v8882_v46 = vld [vmem:[%s10697_s2 + $0x20] sm:$0xff] }
 0x2f5   :  { %v9801_v47 = vld [vmem:[%s10698_s3 + $0x20] sm:$0xff] }
 0x2f6   :  { %7775 = vmatprep.subr.bf16.mxu1 %v7774_v48 }
 0x2f7   :  { %7777 = vmatpush3.bf16.msra.mxu1 %v7774_v48  ;;  %v9819_v48 = vld [vmem:[%s10698_s3 + $0x30] sm:$0xff] }
 0x2f8   :  { %7779 = vmatprep.subr.msk.bf16.mxu1 %vm7778_vm14, %v8938_v9 }
 0x2fa   :  { %7050 = vmatmul.mubr.msk.f32.vlgmr.msra.gmra.mrb[18].mxu1 %vm378_vm8, %v9123_v26 }
 0x2fb   :  { %7781 = vmatpush3.bf16.msk.msra.mxu1 %vm7778_vm14, %v8938_v9  ;;  %7052 = vmatprep.mubr.msk.f32.mxu1 %vm378_vm8, %v9129_v27  ;;  %vm7798_vm14 = vmpackc.low %vm1134_vm13, %vm1133_vm12  ;;  %vm1400_vm12 = vcmp.eq.s32.totalorder %v9026_v7, %v5835_v49  ;;  %vm1401_vm13 = vcmp.eq.s32.totalorder %v9029_v8, %v5835_v49 }
 0x2fc   :  { %7783 = vmatprep.subr.msk.bf16.mxu1 %vm7782_vm1, %v8938_v9 }
 0x2fe   :  { %7053 = vmatmul.mubr.msk.f32.gmra.mrb[20].mxu1 %vm378_vm8, %v9143_v28 }
 0x2ff   :  { %7785 = vmatpush3.bf16.msk.msra.mxu1 %vm7782_vm1, %v8938_v9  ;;  %7055 = vmatprep.mubr.msk.f32.mxu1 %vm378_vm8, %v9149_v29  ;;  %vm7802_vm1 = vmpackc.low %vm1136_vm0, %vm1135_vm15  ;;  %vm1402_vm15 = vcmp.eq.s32.totalorder %v9038_v10, %v5835_v49  ;;  %vm1403_vm0 = vcmp.eq.s32.totalorder %v9041_v11, %v5835_v49 }
 0x300   :  { %7787 = vmatprep.subr.msk.bf16.mxu1 %vm7786_vm4, %v8938_v9 }
 0x302   :  { %7056 = vmatmul.mubr.msk.f32.gmra.mrb[22].mxu1 %vm378_vm8, %v9163_v30 }
 0x303   :  { %7789 = vmatpush3.bf16.msk.msra.mxu1 %vm7786_vm4, %v8938_v9  ;;  %7058 = vmatprep.mubr.msk.f32.mxu1 %vm378_vm8, %v9169_v31  ;;  %vm7806_vm4 = vmpackc.low %vm1138_vm3, %vm1137_vm2  ;;  %vm1404_vm2 = vcmp.eq.s32.totalorder %v9048_v12, %v5835_v49  ;;  %vm1405_vm3 = vcmp.eq.s32.totalorder %v9051_v13, %v5835_v49 }
 0x304   :  { %7791 = vmatprep.subr.msk.bf16.mxu1 %vm7790_vm7, %v8938_v9 }
 0x306   :  { %7059 = vmatmul.mubr.msk.f32.gmra.mrb[24].mxu1 %vm378_vm8, %v9183_v32 }
 0x307   :  { %7793 = vmatpush3.bf16.msk.msra.mxu1 %vm7790_vm7, %v8938_v9  ;;  %7061 = vmatprep.mubr.msk.f32.mxu1 %vm378_vm8, %v9189_v33  ;;  %vm7814_vm7 = vmpackc.low %vm1397_vm6, %vm1396_vm5  ;;  %vm1406_vm5 = vcmp.eq.s32.totalorder %v9058_v14, %v5835_v49  ;;  %vm1407_vm6 = vcmp.eq.s32.totalorder %v9061_v15, %v5835_v49 }
 0x308   :  { %7795 = vmatprep.subr.msk.bf16.mxu1 %vm7794_vm11, %v8938_v9 }
 0x30a   :  { %7062 = vmatmul.mubr.msk.f32.gmra.mrb[26].mxu1 %vm378_vm8, %v9203_v34 }
 0x30b   :  { %7797 = vmatpush3.bf16.msk.msra.mxu1 %vm7794_vm11, %v8938_v9  ;;  %7064 = vmatprep.mubr.msk.f32.mxu1 %vm378_vm8, %v9209_v35  ;;  %vm7818_vm11 = vmpackc.low %vm1399_vm10, %vm1398_vm9  ;;  %vm1408_vm9 = vcmp.eq.s32.totalorder %v9068_v16, %v5835_v49  ;;  %vm1409_vm10 = vcmp.eq.s32.totalorder %v9071_v17, %v5835_v49 }
 0x30c   :  { %7799 = vmatprep.subr.msk.bf16.mxu1 %vm7798_vm14, %v8938_v9 }
 0x30e   :  { %7065 = vmatmul.mubr.msk.f32.gmra.mrb[28].mxu1 %vm378_vm8, %v9223_v36 }
 0x30f   :  { %7801 = vmatpush3.bf16.msk.msra.mxu1 %vm7798_vm14, %v8938_v9  ;;  %7067 = vmatprep.mubr.msk.f32.mxu1 %vm378_vm8, %v9229_v37  ;;  %vm7822_vm14 = vmpackc.low %vm1401_vm13, %vm1400_vm12  ;;  %vm1410_vm12 = vcmp.eq.s32.totalorder %v9078_v18, %v5835_v49  ;;  %vm1411_vm13 = vcmp.eq.s32.totalorder %v9081_v19, %v5835_v49 }
 0x310   :  { %7803 = vmatprep.subr.msk.bf16.mxu1 %vm7802_vm1, %v8938_v9 }
 0x312   :  { %7068 = vmatmul.mubr.msk.f32.gmra.mrb[30].mxu1 %vm378_vm8, %v9243_v38 }
 0x313   :  { %7805 = vmatpush3.bf16.msk.msra.mxu1 %vm7802_vm1, %v8938_v9  ;;  %7070 = vmatprep.mubr.msk.f32.mxu1 %vm378_vm8, %v9249_v39  ;;  %vm7826_vm1 = vmpackc.low %vm1403_vm0, %vm1402_vm15  ;;  %vm1669_vm15 = vcmp.eq.s32.totalorder %v9013_v3, %v5884_v53  ;;  %vm1670_vm0 = vcmp.eq.s32.totalorder %v9016_v4, %v5884_v53 }
 0x314   :  { %7807 = vmatprep.subr.msk.bf16.mxu1 %vm7806_vm4, %v8938_v9 }
 0x316   :  { %7071 = vmatmul.mubr.msk.f32.gmra.mrb[32].mxu1 %vm378_vm8, %v9259_v40 }
 0x317   :  { %7809 = vmatpush3.bf16.msk.msra.mxu1 %vm7806_vm4, %v8938_v9  ;;  %7105 = vmatprep.mubr.f32.mxu1 %v9007_v1  ;;  %vm7830_vm4 = vmpackc.low %vm1405_vm3, %vm1404_vm2  ;;  %vm1671_vm2 = vcmp.eq.s32.totalorder %v9020_v5, %v5884_v53  ;;  %vm1672_vm3 = vcmp.eq.s32.totalorder %v9023_v6, %v5884_v53 }
 0x31a   :  { %7106 = vmatmul.mubr.f32.vlgmr.msra.gmra.mrb[34].mxu1 %v9095_v20 }
 0x31b   :  { %7175 = vmatprep.mubr.msk.f32.mxu1 %vm378_vm8, %v9101_v21 }
 0x3ed   :  { %v7107_v50 = vpop.f32.mrb[34].mxu1 }
 0x3ee   :  { %v1237_v51 = vpop.f32.mrb[35].mxu1 }
 0x3ef   :  { %v7810_v52 = vpack.c.bf16 %v7107_v50, %v1237_v51 }
 0x3f1   :  { %7811 = vmatprep.subr.bf16.mxu0 %v7810_v52 }
 0x3f2   :  { %7813 = vmatpush3.bf16.msra.mxu0 %v7810_v52 }
 0x3f3   :  { %7815 = vmatprep.subr.msk.bf16.mxu0 %vm7814_vm7, %v8938_v9 }
 0x3f5   :  { %7113 = vmatmul.mubr.msk.f32.vlgmr.msra.gmra.mrb[20].mxu0 %vm378_vm8, %v9123_v26 }
 0x3f6   :  { %7817 = vmatpush3.bf16.msk.msra.mxu0 %vm7814_vm7, %v8938_v9  ;;  %7115 = vmatprep.mubr.msk.f32.mxu0 %vm378_vm8, %v9129_v27  ;;  %vm7834_vm7 = vmpackc.low %vm1407_vm6, %vm1406_vm5  ;;  %vm1673_vm5 = vcmp.eq.s32.totalorder %v9026_v7, %v5884_v53  ;;  %vm1674_vm6 = vcmp.eq.s32.totalorder %v9029_v8, %v5884_v53 }
 0x3f7   :  { %7819 = vmatprep.subr.msk.bf16.mxu0 %vm7818_vm11, %v8938_v9 }
 0x3f9   :  { %7116 = vmatmul.mubr.msk.f32.gmra.mrb[22].mxu0 %vm378_vm8, %v9143_v28 }
 0x3fa   :  { %7821 = vmatpush3.bf16.msk.msra.mxu0 %vm7818_vm11, %v8938_v9  ;;  %7118 = vmatprep.mubr.msk.f32.mxu0 %vm378_vm8, %v9149_v29  ;;  %vm7838_vm11 = vmpackc.low %vm1409_vm10, %vm1408_vm9  ;;  %vm1675_vm9 = vcmp.eq.s32.totalorder %v9038_v10, %v5884_v53  ;;  %vm1676_vm10 = vcmp.eq.s32.totalorder %v9041_v11, %v5884_v53 }
 0x3fb   :  { %7823 = vmatprep.subr.msk.bf16.mxu0 %vm7822_vm14, %v8938_v9 }
 0x3fd   :  { %7119 = vmatmul.mubr.msk.f32.gmra.mrb[24].mxu0 %vm378_vm8, %v9163_v30 }
 0x3fe   :  { %7825 = vmatpush3.bf16.msk.msra.mxu0 %vm7822_vm14, %v8938_v9  ;;  %7121 = vmatprep.mubr.msk.f32.mxu0 %vm378_vm8, %v9169_v31  ;;  %vm7842_vm14 = vmpackc.low %vm1411_vm13, %vm1410_vm12  ;;  %vm1677_vm12 = vcmp.eq.s32.totalorder %v9048_v12, %v5884_v53  ;;  %vm1678_vm13 = vcmp.eq.s32.totalorder %v9051_v13, %v5884_v53 }
 0x3ff   :  { %7827 = vmatprep.subr.msk.bf16.mxu0 %vm7826_vm1, %v8938_v9 }
 0x401   :  { %7122 = vmatmul.mubr.msk.f32.gmra.mrb[26].mxu0 %vm378_vm8, %v9183_v32 }
 0x402   :  { %7829 = vmatpush3.bf16.msk.msra.mxu0 %vm7826_vm1, %v8938_v9  ;;  %7124 = vmatprep.mubr.msk.f32.mxu0 %vm378_vm8, %v9189_v33  ;;  %vm7850_vm1 = vmpackc.low %vm1670_vm0, %vm1669_vm15  ;;  %vm1679_vm15 = vcmp.eq.s32.totalorder %v9058_v14, %v5884_v53  ;;  %vm1680_vm0 = vcmp.eq.s32.totalorder %v9061_v15, %v5884_v53 }
 0x403   :  { %7831 = vmatprep.subr.msk.bf16.mxu0 %vm7830_vm4, %v8938_v9 }
 0x405   :  { %7125 = vmatmul.mubr.msk.f32.gmra.mrb[28].mxu0 %vm378_vm8, %v9203_v34 }
 0x406   :  { %7833 = vmatpush3.bf16.msk.msra.mxu0 %vm7830_vm4, %v8938_v9  ;;  %7127 = vmatprep.mubr.msk.f32.mxu0 %vm378_vm8, %v9209_v35  ;;  %vm7854_vm4 = vmpackc.low %vm1672_vm3, %vm1671_vm2  ;;  %vm1681_vm2 = vcmp.eq.s32.totalorder %v9068_v16, %v5884_v53  ;;  %vm1682_vm3 = vcmp.eq.s32.totalorder %v9071_v17, %v5884_v53 }
 0x407   :  { %7835 = vmatprep.subr.msk.bf16.mxu0 %vm7834_vm7, %v8938_v9 }
 0x409   :  { %7128 = vmatmul.mubr.msk.f32.gmra.mrb[30].mxu0 %vm378_vm8, %v9223_v36 }
 0x40a   :  { %7837 = vmatpush3.bf16.msk.msra.mxu0 %vm7834_vm7, %v8938_v9  ;;  %7130 = vmatprep.mubr.msk.f32.mxu0 %vm378_vm8, %v9229_v37  ;;  %vm7858_vm7 = vmpackc.low %vm1674_vm6, %vm1673_vm5  ;;  %vm1683_vm5 = vcmp.eq.s32.totalorder %v9078_v18, %v5884_v53  ;;  %vm1684_vm6 = vcmp.eq.s32.totalorder %v9081_v19, %v5884_v53 }
 0x40b   :  { %7839 = vmatprep.subr.msk.bf16.mxu0 %vm7838_vm11, %v8938_v9 }
 0x40d   :  { %7131 = vmatmul.mubr.msk.f32.gmra.mrb[32].mxu0 %vm378_vm8, %v9243_v38 }
 0x40e   :  { %7841 = vmatpush3.bf16.msk.msra.mxu0 %vm7838_vm11, %v8938_v9  ;;  %7133 = vmatprep.mubr.msk.f32.mxu0 %vm378_vm8, %v9249_v39  ;;  %vm7862_vm11 = vmpackc.low %vm1676_vm10, %vm1675_vm9  ;;  %vm1942_vm9 = vcmp.eq.s32.totalorder %v9013_v3, %v5933_v57  ;;  %vm1943_vm10 = vcmp.eq.s32.totalorder %v9016_v4, %v5933_v57 }
 0x40f   :  { %7843 = vmatprep.subr.msk.bf16.mxu0 %vm7842_vm14, %v8938_v9 }
 0x411   :  { %7134 = vmatmul.mubr.msk.f32.gmra.mrb[34].mxu0 %vm378_vm8, %v9259_v40 }
 0x412   :  { %7845 = vmatpush3.bf16.msk.msra.mxu0 %vm7842_vm14, %v8938_v9  ;;  %7168 = vmatprep.mubr.f32.mxu0 %v9007_v1  ;;  %vm7866_vm14 = vmpackc.low %vm1678_vm13, %vm1677_vm12  ;;  %vm1944_vm12 = vcmp.eq.s32.totalorder %v9020_v5, %v5933_v57  ;;  %vm1945_vm13 = vcmp.eq.s32.totalorder %v9023_v6, %v5933_v57 }
 0x415   :  { %7169 = vmatmul.mubr.f32.vlgmr.msra.gmra.mrb[36].mxu0 %v9095_v20 }
 0x416   :  { %7238 = vmatprep.mubr.msk.f32.mxu0 %vm378_vm8, %v9101_v21 }
 0x4e8   :  { %v7170_v54 = vpop.f32.mrb[36].mxu0 }
 0x4e9   :  { %v1510_v55 = vpop.f32.mrb[37].mxu0 }
 0x4ea   :  { %v7846_v56 = vpack.c.bf16 %v7170_v54, %v1510_v55 }
 0x4ec   :  { %7847 = vmatprep.subr.bf16.mxu1 %v7846_v56 }
 0x4ed   :  { %7849 = vmatpush3.bf16.msra.mxu1 %v7846_v56 }
 0x4ee   :  { %7851 = vmatprep.subr.msk.bf16.mxu1 %vm7850_vm1, %v8938_v9 }
 0x4f0   :  { %7176 = vmatmul.mubr.msk.f32.vlgmr.msra.gmra.mrb[36].mxu1 %vm378_vm8, %v9123_v26 }
 0x4f1   :  { %7853 = vmatpush3.bf16.msk.msra.mxu1 %vm7850_vm1, %v8938_v9  ;;  %7178 = vmatprep.mubr.msk.f32.mxu1 %vm378_vm8, %v9129_v27  ;;  %vm7870_vm1 = vmpackc.low %vm1680_vm0, %vm1679_vm15  ;;  %vm1946_vm15 = vcmp.eq.s32.totalorder %v9026_v7, %v5933_v57  ;;  %vm1947_vm0 = vcmp.eq.s32.totalorder %v9029_v8, %v5933_v57 }
 0x4f2   :  { %7855 = vmatprep.subr.msk.bf16.mxu1 %vm7854_vm4, %v8938_v9 }
 0x4f4   :  { %7179 = vmatmul.mubr.msk.f32.gmra.mrb[38].mxu1 %vm378_vm8, %v9143_v28 }
 0x4f5   :  { %7857 = vmatpush3.bf16.msk.msra.mxu1 %vm7854_vm4, %v8938_v9  ;;  %7181 = vmatprep.mubr.msk.f32.mxu1 %vm378_vm8, %v9149_v29  ;;  %vm7874_vm4 = vmpackc.low %vm1682_vm3, %vm1681_vm2  ;;  %vm1948_vm2 = vcmp.eq.s32.totalorder %v9038_v10, %v5933_v57  ;;  %vm1949_vm3 = vcmp.eq.s32.totalorder %v9041_v11, %v5933_v57 }
 0x4f6   :  { %7859 = vmatprep.subr.msk.bf16.mxu1 %vm7858_vm7, %v8938_v9 }
 0x4f8   :  { %7182 = vmatmul.mubr.msk.f32.gmra.mrb[40].mxu1 %vm378_vm8, %v9163_v30 }
 0x4f9   :  { %7861 = vmatpush3.bf16.msk.msra.mxu1 %vm7858_vm7, %v8938_v9  ;;  %7184 = vmatprep.mubr.msk.f32.mxu1 %vm378_vm8, %v9169_v31  ;;  %vm7878_vm7 = vmpackc.low %vm1684_vm6, %vm1683_vm5  ;;  %vm1950_vm5 = vcmp.eq.s32.totalorder %v9048_v12, %v5933_v57  ;;  %vm1951_vm6 = vcmp.eq.s32.totalorder %v9051_v13, %v5933_v57 }
 0x4fa   :  { %7863 = vmatprep.subr.msk.bf16.mxu1 %vm7862_vm11, %v8938_v9 }
 0x4fc   :  { %7185 = vmatmul.mubr.msk.f32.gmra.mrb[42].mxu1 %vm378_vm8, %v9183_v32 }
 0x4fd   :  { %7865 = vmatpush3.bf16.msk.msra.mxu1 %vm7862_vm11, %v8938_v9  ;;  %7187 = vmatprep.mubr.msk.f32.mxu1 %vm378_vm8, %v9189_v33  ;;  %vm7886_vm11 = vmpackc.low %vm1943_vm10, %vm1942_vm9  ;;  %vm1952_vm9 = vcmp.eq.s32.totalorder %v9058_v14, %v5933_v57  ;;  %vm1953_vm10 = vcmp.eq.s32.totalorder %v9061_v15, %v5933_v57 }
 0x4fe   :  { %7867 = vmatprep.subr.msk.bf16.mxu1 %vm7866_vm14, %v8938_v9 }
 0x500   :  { %7188 = vmatmul.mubr.msk.f32.gmra.mrb[44].mxu1 %vm378_vm8, %v9203_v34 }
 0x501   :  { %7869 = vmatpush3.bf16.msk.msra.mxu1 %vm7866_vm14, %v8938_v9  ;;  %7190 = vmatprep.mubr.msk.f32.mxu1 %vm378_vm8, %v9209_v35  ;;  %vm7890_vm14 = vmpackc.low %vm1945_vm13, %vm1944_vm12  ;;  %vm1954_vm12 = vcmp.eq.s32.totalorder %v9068_v16, %v5933_v57  ;;  %vm1955_vm13 = vcmp.eq.s32.totalorder %v9071_v17, %v5933_v57 }
 0x502   :  { %7871 = vmatprep.subr.msk.bf16.mxu1 %vm7870_vm1, %v8938_v9 }
 0x504   :  { %7191 = vmatmul.mubr.msk.f32.gmra.mrb[46].mxu1 %vm378_vm8, %v9223_v36 }
 0x505   :  { %7873 = vmatpush3.bf16.msk.msra.mxu1 %vm7870_vm1, %v8938_v9  ;;  %7193 = vmatprep.mubr.msk.f32.mxu1 %vm378_vm8, %v9229_v37  ;;  %vm7894_vm1 = vmpackc.low %vm1947_vm0, %vm1946_vm15  ;;  %vm1956_vm15 = vcmp.eq.s32.totalorder %v9078_v18, %v5933_v57  ;;  %vm1957_vm0 = vcmp.eq.s32.totalorder %v9081_v19, %v5933_v57 }
 0x506   :  { %7875 = vmatprep.subr.msk.bf16.mxu1 %vm7874_vm4, %v8938_v9 }
 0x508   :  { %7194 = vmatmul.mubr.msk.f32.gmra.mrb[48].mxu1 %vm378_vm8, %v9243_v38 }
 0x509   :  { %7877 = vmatpush3.bf16.msk.msra.mxu1 %vm7874_vm4, %v8938_v9  ;;  %7196 = vmatprep.mubr.msk.f32.mxu1 %vm378_vm8, %v9249_v39  ;;  %vm7898_vm4 = vmpackc.low %vm1949_vm3, %vm1948_vm2  ;;  %vm2215_vm2 = vcmp.eq.s32.totalorder %v9013_v3, %v5982_v61  ;;  %vm2216_vm3 = vcmp.eq.s32.totalorder %v9016_v4, %v5982_v61  ;;  %v83_v3 = vld [vmem:[%s10699_s4 + $0x50] sm:$0xff]  ;;  %v8939_v4 = vmov 0  }
 0x50a   :  { %7879 = vmatprep.subr.msk.bf16.mxu1 %vm7878_vm7, %v8938_v9  ;;  %8297 = vset.pattern.permute.xlu0 %v8939_v4 }
 0x50b   :  { %8298 = vset.pattern.permute.xlu1 %v8939_v4  ;;  %131 = vperm.xlu0 %8297, %v81_v2  }
 0x50c   :  { %7197 = vmatmul.mubr.msk.f32.gmra.mrb[50].mxu1 %vm378_vm8, %v9259_v40  ;;  %141 = vperm.xlu1 %8298, %v83_v3  }
 0x50d   :  { %7881 = vmatpush3.bf16.msk.msra.mxu1 %vm7878_vm7, %v8938_v9  ;;  %7231 = vmatprep.mubr.f32.mxu1 %v9007_v1  ;;  %vm7902_vm7 = vmpackc.low %vm1951_vm6, %vm1950_vm5  ;;  %vm2217_vm5 = vcmp.eq.s32.totalorder %v9020_v5, %v5982_v61  ;;  %vm2218_vm6 = vcmp.eq.s32.totalorder %v9023_v6, %v5982_v61  ;;  %v82_v5 = vld [vmem:[%s10699_s4 + $0x48] sm:$0xff]  ;;  %v84_v6 = vld [vmem:[%s10699_s4 + $0x58] sm:$0xff] }
 0x50f   :  { %136 = vperm.xlu0 %8297, %v82_v5  }
 0x510   :  { %7232 = vmatmul.mubr.f32.vlgmr.msra.gmra.mrb[52].mxu1 %v9095_v20  ;;  %146 = vperm.xlu1 %8298, %v84_v6  }
 0x511   :  { %7301 = vmatprep.mubr.msk.f32.mxu1 %vm378_vm8, %v9101_v21 }
 0x58a   :  { %v9908_v50 = vpop.permute.xlu0 %131 }
 0x58b   :  { %v9906_v49 = vpop.permute.xlu1 %141 }
 0x58e   :  { %v9912_v52 = vpop.permute.xlu0 %136 }
 0x58f   :  { %v9910_v51 = vpop.permute.xlu1 %146 }
 0x5e3   :  { %v7233_v58 = vpop.f32.mrb[52].mxu1 }
 0x5e4   :  { %v1783_v59 = vpop.f32.mrb[53].mxu1 }
 0x5e5   :  { %v7882_v60 = vpack.c.bf16 %v7233_v58, %v1783_v59 }
 0x5e7   :  { %7883 = vmatprep.subr.bf16.mxu0 %v7882_v60 }
 0x5e8   :  { %7885 = vmatpush3.bf16.msra.mxu0 %v7882_v60 }
 0x5e9   :  { %7887 = vmatprep.subr.msk.bf16.mxu0 %vm7886_vm11, %v8938_v9 }
 0x5eb   :  { %7239 = vmatmul.mubr.msk.f32.vlgmr.msra.gmra.mrb[38].mxu0 %vm378_vm8, %v9123_v26 }
 0x5ec   :  { %7889 = vmatpush3.bf16.msk.msra.mxu0 %vm7886_vm11, %v8938_v9  ;;  %7241 = vmatprep.mubr.msk.f32.mxu0 %vm378_vm8, %v9129_v27  ;;  %vm7906_vm11 = vmpackc.low %vm1953_vm10, %vm1952_vm9  ;;  %vm2219_vm9 = vcmp.eq.s32.totalorder %v9026_v7, %v5982_v61  ;;  %vm2220_vm10 = vcmp.eq.s32.totalorder %v9029_v8, %v5982_v61  ;;  %v73_v7 = vld [vmem:[%s10699_s4] sm:$0xff]  ;;  %v74_v8 = vld [vmem:[%s10699_s4 + $0x8] sm:$0xff] }
 0x5ed   :  { %7891 = vmatprep.subr.msk.bf16.mxu0 %vm7890_vm14, %v8938_v9  ;;  %91 = vperm.xlu0 %8297, %v73_v7  }
 0x5ee   :  { %96 = vperm.xlu1 %8298, %v74_v8  }
 0x5ef   :  { %7242 = vmatmul.mubr.msk.f32.gmra.mrb[40].mxu0 %vm378_vm8, %v9143_v28 }
 0x5f0   :  { %7893 = vmatpush3.bf16.msk.msra.mxu0 %vm7890_vm14, %v8938_v9  ;;  %7244 = vmatprep.mubr.msk.f32.mxu0 %vm378_vm8, %v9149_v29  ;;  %vm7910_vm14 = vmpackc.low %vm1955_vm13, %vm1954_vm12  ;;  %vm2221_vm12 = vcmp.eq.s32.totalorder %v9038_v10, %v5982_v61  ;;  %vm2222_vm13 = vcmp.eq.s32.totalorder %v9041_v11, %v5982_v61  ;;  %v78_v10 = vld [vmem:[%s10699_s4 + $0x28] sm:$0xff]  ;;  %v75_v11 = vld [vmem:[%s10699_s4 + $0x10] sm:$0xff] }
 0x5f1   :  { %7895 = vmatprep.subr.msk.bf16.mxu0 %vm7894_vm1, %v8938_v9 }
 0x5f2   :  { %116 = vperm.xlu1 %8298, %v78_v10  }
 0x5f3   :  { %7245 = vmatmul.mubr.msk.f32.gmra.mrb[42].mxu0 %vm378_vm8, %v9163_v30 }
 0x5f4   :  { %7897 = vmatpush3.bf16.msk.msra.mxu0 %vm7894_vm1, %v8938_v9  ;;  %7247 = vmatprep.mubr.msk.f32.mxu0 %vm378_vm8, %v9169_v31  ;;  %vm7914_vm1 = vmpackc.low %vm1957_vm0, %vm1956_vm15  ;;  %vm2223_vm15 = vcmp.eq.s32.totalorder %v9048_v12, %v5982_v61  ;;  %vm2224_vm0 = vcmp.eq.s32.totalorder %v9051_v13, %v5982_v61  ;;  %v76_v12 = vld [vmem:[%s10699_s4 + $0x18] sm:$0xff]  ;;  %v79_v13 = vld [vmem:[%s10699_s4 + $0x30] sm:$0xff] }
 0x5f5   :  { %7899 = vmatprep.subr.msk.bf16.mxu0 %vm7898_vm4, %v8938_v9 }
 0x5f6   :  { %106 = vperm.xlu1 %8298, %v76_v12  }
 0x5f7   :  { %7248 = vmatmul.mubr.msk.f32.gmra.mrb[44].mxu0 %vm378_vm8, %v9183_v32 }
 0x5f8   :  { %7901 = vmatpush3.bf16.msk.msra.mxu0 %vm7898_vm4, %v8938_v9  ;;  %7250 = vmatprep.mubr.msk.f32.mxu0 %vm378_vm8, %v9189_v33  ;;  %vm7922_vm4 = vmpackc.low %vm2216_vm3, %vm2215_vm2  ;;  %vm2225_vm2 = vcmp.eq.s32.totalorder %v9058_v14, %v5982_v61  ;;  %vm2226_vm3 = vcmp.eq.s32.totalorder %v9061_v15, %v5982_v61  ;;  %v80_v14 = vld [vmem:[%s10699_s4 + $0x38] sm:$0xff]  ;;  %v85_v15 = vld [vmem:[%s10699_s4 + $0x60] sm:$0xff] }
 0x5f9   :  { %7903 = vmatprep.subr.msk.bf16.mxu0 %vm7902_vm7, %v8938_v9 }
 0x5fa   :  { %126 = vperm.xlu1 %8298, %v80_v14  }
 0x5fb   :  { %7251 = vmatmul.mubr.msk.f32.gmra.mrb[46].mxu0 %vm378_vm8, %v9203_v34 }
 0x5fc   :  { %7905 = vmatpush3.bf16.msk.msra.mxu0 %vm7902_vm7, %v8938_v9  ;;  %7253 = vmatprep.mubr.msk.f32.mxu0 %vm378_vm8, %v9209_v35  ;;  %vm7926_vm7 = vmpackc.low %vm2218_vm6, %vm2217_vm5  ;;  %vm2227_vm5 = vcmp.eq.s32.totalorder %v9068_v16, %v5982_v61  ;;  %vm2228_vm6 = vcmp.eq.s32.totalorder %v9071_v17, %v5982_v61  ;;  %v86_v16 = vld [vmem:[%s10699_s4 + $0x68] sm:$0xff]  ;;  %v87_v17 = vld [vmem:[%s10699_s4 + $0x70] sm:$0xff] }
 0x5fd   :  { %7907 = vmatprep.subr.msk.bf16.mxu0 %vm7906_vm11, %v8938_v9 }
 0x5fe   :  { %156 = vperm.xlu1 %8298, %v86_v16  }
 0x5ff   :  { %7254 = vmatmul.mubr.msk.f32.gmra.mrb[48].mxu0 %vm378_vm8, %v9223_v36 }
 0x600   :  { %7909 = vmatpush3.bf16.msk.msra.mxu0 %vm7906_vm11, %v8938_v9  ;;  %7256 = vmatprep.mubr.msk.f32.mxu0 %vm378_vm8, %v9229_v37  ;;  %vm7930_vm11 = vmpackc.low %vm2220_vm10, %vm2219_vm9  ;;  %vm2229_vm9 = vcmp.eq.s32.totalorder %v9078_v18, %v5982_v61  ;;  %vm2230_vm10 = vcmp.eq.s32.totalorder %v9081_v19, %v5982_v61  ;;  %v88_v18 = vld [vmem:[%s10699_s4 + $0x78] sm:$0xff]  ;;  %v5300_v19 = vld [vmem:[%s10701_s6] sm:$0xff] }
 0x601   :  { %7911 = vmatprep.subr.msk.bf16.mxu0 %vm7910_vm14, %v8938_v9 }
 0x602   :  { %166 = vperm.xlu1 %8298, %v88_v18  }
 0x603   :  { %7257 = vmatmul.mubr.msk.f32.gmra.mrb[50].mxu0 %vm378_vm8, %v9243_v38 }
 0x604   :  { %7913 = vmatpush3.bf16.msk.msra.mxu0 %vm7910_vm14, %v8938_v9  ;;  %7259 = vmatprep.mubr.msk.f32.mxu0 %vm378_vm8, %v9249_v39  ;;  %vm7934_vm14 = vmpackc.low %vm2222_vm13, %vm2221_vm12  ;;  %vm2483_vm12 = vcmask 261120   ;;  %vm8942_vm13 = vmmov 0  }
 0x605   :  { %7915 = vmatprep.subr.msk.bf16.mxu0 %vm7914_vm1, %v8938_v9 }
 0x607   :  { %7260 = vmatmul.mubr.msk.f32.gmra.mrb[52].mxu0 %vm378_vm8, %v9259_v40 }
 0x608   :  { %7917 = vmatpush3.bf16.msk.msra.mxu0 %vm7914_vm1, %v8938_v9  ;;  %7294 = vmatprep.mubr.f32.mxu0 %v9007_v1  ;;  %vm7938_vm1 = vmpackc.low %vm2224_vm0, %vm2223_vm15  ;;  %v8879_v1 = vld [vmem:[%s10696_s1] sm:$0xff] }
 0x60b   :  { %7295 = vmatmul.mubr.f32.vlgmr.msra.gmra.mrb[54].mxu0 %v9095_v20 }
 0x60c   :  { %7364 = vmatprep.mubr.msk.f32.mxu0 %vm378_vm8, %v9101_v21  ;;  %v5302_v21 = vld [vmem:[%s10701_s6 + $0x10] sm:$0xff] }
 0x66c   :  { %v9920_v56 = vpop.permute.xlu0 %91 }
 0x66d   :  { %v9918_v55 = vpop.permute.xlu1 %96 }
 0x671   :  { %v9922_v60 = vpop.permute.xlu1 %116 }
 0x675   :  { %v9930_v6 = vpop.permute.xlu1 %106 }
 0x679   :  { %v9936_v16 = vpop.permute.xlu1 %126 }
 0x6de   :  { %v7296_v62 = vpop.f32.mrb[54].mxu0 }
 0x6df   :  { %v2056_v63 = vpop.f32.mrb[55].mxu0 }
 0x6e0   :  { %v7918_v0 = vpack.c.bf16 %v7296_v62, %v2056_v63 }
 0x6e2   :  { %7919 = vmatprep.subr.bf16.mxu1 %v7918_v0 }
 0x6e3   :  { %7921 = vmatpush3.bf16.msra.mxu1 %v7918_v0 }
 0x6e4   :  { %7923 = vmatprep.subr.msk.bf16.mxu1 %vm7922_vm4, %v8938_v9 }
 0x6e6   :  { %7302 = vmatmul.mubr.msk.f32.vlgmr.msra.gmra.mrb[54].mxu1 %vm378_vm8, %v9123_v26 }
 0x6e7   :  { %7925 = vmatpush3.bf16.msk.msra.mxu1 %vm7922_vm4, %v8938_v9  ;;  %7304 = vmatprep.mubr.msk.f32.mxu1 %vm378_vm8, %v9129_v27  ;;  %vm7942_vm4 = vmpackc.low %vm2226_vm3, %vm2225_vm2 }
 0x6e8   :  { %7927 = vmatprep.subr.msk.bf16.mxu1 %vm7926_vm7, %v8938_v9 }
 0x6ea   :  { %7305 = vmatmul.mubr.msk.f32.gmra.mrb[56].mxu1 %vm378_vm8, %v9143_v28 }
 0x6eb   :  { %7929 = vmatpush3.bf16.msk.msra.mxu1 %vm7926_vm7, %v8938_v9  ;;  %7307 = vmatprep.mubr.msk.f32.mxu1 %vm378_vm8, %v9149_v29  ;;  %vm7946_vm7 = vmpackc.low %vm2228_vm6, %vm2227_vm5 }
 0x6ec   :  { %7931 = vmatprep.subr.msk.bf16.mxu1 %vm7930_vm11, %v8938_v9 }
 0x6ee   :  { %7308 = vmatmul.mubr.msk.f32.gmra.mrb[58].mxu1 %vm378_vm8, %v9163_v30 }
 0x6ef   :  { %7933 = vmatpush3.bf16.msk.msra.mxu1 %vm7930_vm11, %v8938_v9  ;;  %7310 = vmatprep.mubr.msk.f32.mxu1 %vm378_vm8, %v9169_v31  ;;  %vm7950_vm11 = vmpackc.low %vm2230_vm10, %vm2229_vm9 }
 0x6f0   :  { %7935 = vmatprep.subr.msk.bf16.mxu1 %vm7934_vm14, %v8938_v9 }
 0x6f2   :  { %7311 = vmatmul.mubr.msk.f32.gmra.mrb[60].mxu1 %vm378_vm8, %v9183_v32 }
 0x6f3   :  { %7937 = vmatpush3.bf16.msk.msra.mxu1 %vm7934_vm14, %v8938_v9  ;;  %7313 = vmatprep.mubr.msk.f32.mxu1 %vm378_vm8, %v9189_v33  ;;  %vm5602_vm14 = vcmask 58368  }
 0x6f4   :  { %7939 = vmatprep.subr.msk.bf16.mxu1 %vm7938_vm1, %v8938_v9 }
 0x6f6   :  { %7314 = vmatmul.mubr.msk.f32.gmra.mrb[62].mxu1 %vm378_vm8, %v9203_v34 }
 0x6f7   :  { %7941 = vmatpush3.bf16.msk.msra.mxu1 %vm7938_vm1, %v8938_v9  ;;  %7316 = vmatprep.mubr.msk.f32.mxu1 %vm378_vm8, %v9209_v35 }
 0x6f8   :  { %7943 = vmatprep.subr.msk.bf16.mxu1 %vm7942_vm4, %v8938_v9 }
 0x6fa   :  { %7317 = vmatmul.mubr.msk.f32.gmra.mrb[64].mxu1 %vm378_vm8, %v9223_v36 }
 0x6fb   :  { %7945 = vmatpush3.bf16.msk.msra.mxu1 %vm7942_vm4, %v8938_v9  ;;  %7319 = vmatprep.mubr.msk.f32.mxu1 %vm378_vm8, %v9229_v37 }
 0x6fc   :  { %7947 = vmatprep.subr.msk.bf16.mxu1 %vm7946_vm7, %v8938_v9 }
 0x6fe   :  { %7320 = vmatmul.mubr.msk.f32.gmra.mrb[66].mxu1 %vm378_vm8, %v9243_v38 }
 0x6ff   :  { %7949 = vmatpush3.bf16.msk.msra.mxu1 %vm7946_vm7, %v8938_v9  ;;  %7322 = vmatprep.mubr.msk.f32.mxu1 %vm378_vm8, %v9249_v39 }
 0x700   :  { %7951 = vmatprep.subr.msk.bf16.mxu1 %vm7950_vm11, %v8938_v9 }
 0x702   :  { %7323 = vmatmul.mubr.msk.f32.gmra.mrb[68].mxu1 %vm378_vm8, %v9259_v40 }
 0x703   :  { %7953 = vmatpush3.bf16.msk.msra.mxu1 %vm7950_vm11, %v8938_v9  ;;  %7357 = vmatprep.mubr.f32.mxu1 %v8879_v1  ;;  %v77_v9 = vld [vmem:[%s10699_s4 + $0x20] sm:$0xff] }
 0x704   :  { %111 = vperm.xlu0 %8297, %v77_v9  }
 0x706   :  { %7358 = vmatmul.mubr.f32.vlgmr.msra.gmra.mrb[70].mxu1 %v9095_v20  ;;  %v5301_v20 = vld [vmem:[%s10701_s6 + $0x8] sm:$0xff] }
 0x707   :  { %7385 = vmatprep.mubr.msk.f32.mxu1 %vm378_vm8, %v9249_v39  ;;  %5311 = vperm.xlu1 %8298, %v5301_v20   ;;  %v10707_v39 = vmov 0.0  }
 0x708   :  { %101 = vperm.xlu0 %8297, %v75_v11  }
 0x70b   :  { %5321 = vperm.xlu1 %8298, %v5303_v22  }
 0x70c   :  { %121 = vperm.xlu0 %8297, %v79_v13  }
 0x70f   :  { %5436 = vperm.xlu1 %8298, %v5428_v24  }
 0x710   :  { %151 = vperm.xlu0 %8297, %v85_v15  }
 0x714   :  { %161 = vperm.xlu0 %8297, %v87_v17  }
 0x718   :  { %5306 = vperm.xlu0 %8297, %v5300_v19  }
 0x71c   :  { %5316 = vperm.xlu0 %8297, %v5302_v21  }
 0x720   :  { %5431 = vperm.xlu0 %8297, %v5427_v23  }
 0x724   :  { %5526 = vperm.xlu0 %8297, %v5523_v25  }
 0x783   :  { %v9924_v62 = vpop.permute.xlu0 %111 }
 0x787   :  { %v9932_v8 = vpop.permute.xlu0 %101 }
 0x78b   :  { %v9939_v19 = vpop.permute.xlu0 %121 }
 0x7d9   :  { %v7359_v26 = vpop.f32.mrb[70].mxu1 }
 0x7da   :  { %v2329_v27 = vpop.f32.mrb[71].mxu1 }
 0x7db   :  { %v7954_v29 = vpack.c.bf16 %v7359_v26, %v2329_v27 }
 0x7dd   :  { %7955 = vmatprep.subr.bf16.mxu0 %v7954_v29  ;;  %8033 = vmatprep.subr.bf16.mxu1 %v7954_v29 }
 0x7de   :  { %7957 = vmatpush3.bf16.msra.mxu0 %v7954_v29  ;;  %8034 = vmatpush3.bf16.msra.mxu1 %v7954_v29 }
 0x7df   :  { %7388 = vmatprep.subr.mxu1 %v10707_v39 }
 0x7e1   :  { %7386 = vmatmul.mubr.msk.f32.vlgmr.msra.gmra.mrb[72].mxu1 %vm378_vm8, %v9259_v40  ;;  %7365 = vmatmul.mubr.msk.f32.vlgmr.msra.gmra.mrb[56].mxu0 %vm378_vm8, %v8880_v42  ;;  %v9777_v40 = vld [vmem:[%s10698_s3 + $0x10] sm:$0xff] }
 0x7e2   :  { %7389 = vmatpush3.msra.mxu1 %v10707_v39  ;;  %7390 = vmatprep.mubr.msk.f32.mxu1 %vm2483_vm12, %v9758_v41 }
 0x7e3   :  { %7367 = vmatprep.mubr.msk.f32.mxu0 %vm378_vm8, %v8881_v44 }
 0x7e5   :  { %7391 = vmatmul.mubr.msk.f32.vlgmr.msra.gmra.mrb[0].mxu1 %vm2483_vm12, %v9772_v43  ;;  %7368 = vmatmul.mubr.msk.f32.gmra.mrb[58].mxu0 %vm378_vm8, %v9143_v28  ;;  %v9812_v28 = vld [vmem:[%s10698_s3 + $0x28] sm:$0xff] }
 0x7e6   :  { %7393 = vmatprep.mubr.msk.f32.mxu1 %vm2483_vm12, %v9777_v40  ;;  %7370 = vmatprep.mubr.msk.f32.mxu0 %vm378_vm8, %v8882_v46 }
 0x7e9   :  { %7394 = vmatmul.mubr.msk.f32.gmra.mrb[2].mxu1 %vm2483_vm12, %v9792_v45  ;;  %7371 = vmatmul.mubr.msk.f32.gmra.mrb[60].mxu0 %vm378_vm8, %v9163_v30  ;;  %v9830_v30 = vld [vmem:[%s10698_s3 + $0x38] sm:$0xff] }
 0x7ea   :  { %7396 = vmatprep.mubr.msk.f32.mxu1 %vm2483_vm12, %v9801_v47  ;;  %7373 = vmatprep.mubr.msk.f32.mxu0 %vm378_vm8, %v9169_v31  ;;  %v9837_v31 = vld [vmem:[%s10698_s3 + $0x40] sm:$0xff] }
 0x7ed   :  { %7397 = vmatmul.mubr.msk.f32.gmra.mrb[4].mxu1 %vm2483_vm12, %v9812_v28  ;;  %7374 = vmatmul.mubr.msk.f32.gmra.mrb[62].mxu0 %vm378_vm8, %v9183_v32  ;;  %v9848_v32 = vld [vmem:[%s10698_s3 + $0x48] sm:$0xff] }
 0x7ee   :  { %7399 = vmatprep.mubr.msk.f32.mxu1 %vm2483_vm12, %v9819_v48  ;;  %7376 = vmatprep.mubr.msk.f32.mxu0 %vm378_vm8, %v9189_v33  ;;  %v9855_v33 = vld [vmem:[%s10698_s3 + $0x50] sm:$0xff] }
 0x7f1   :  { %7400 = vmatmul.mubr.msk.f32.gmra.mrb[6].mxu1 %vm2483_vm12, %v9830_v30  ;;  %7377 = vmatmul.mubr.msk.f32.gmra.mrb[64].mxu0 %vm378_vm8, %v9203_v34  ;;  %v9866_v34 = vld [vmem:[%s10698_s3 + $0x58] sm:$0xff] }
 0x7f2   :  { %7402 = vmatprep.mubr.msk.f32.mxu1 %vm2483_vm12, %v9837_v31  ;;  %7379 = vmatprep.mubr.msk.f32.mxu0 %vm378_vm8, %v9209_v35  ;;  %v9873_v35 = vld [vmem:[%s10698_s3 + $0x60] sm:$0xff] }
 0x7f5   :  { %7403 = vmatmul.mubr.msk.f32.gmra.mrb[8].mxu1 %vm2483_vm12, %v9848_v32  ;;  %7380 = vmatmul.mubr.msk.f32.gmra.mrb[66].mxu0 %vm378_vm8, %v9223_v36  ;;  %v9884_v36 = vld [vmem:[%s10698_s3 + $0x68] sm:$0xff] }
 0x7f6   :  { %7405 = vmatprep.mubr.msk.f32.mxu1 %vm2483_vm12, %v9855_v33  ;;  %7382 = vmatprep.mubr.msk.f32.mxu0 %vm378_vm8, %v9229_v37  ;;  %v9891_v37 = vld [vmem:[%s10698_s3 + $0x70] sm:$0xff] }
 0x7f9   :  { %7406 = vmatmul.mubr.msk.f32.gmra.mrb[10].mxu1 %vm2483_vm12, %v9866_v34  ;;  %7383 = vmatmul.mubr.msk.f32.gmra.mrb[68].mxu0 %vm378_vm8, %v9243_v38  ;;  %v9900_v38 = vld [vmem:[%s10698_s3 + $0x78] sm:$0xff] }
 0x7fa   :  { %7408 = vmatprep.mubr.msk.f32.mxu1 %vm2483_vm12, %v9873_v35  ;;  %7422 = vmatprep.mubr.msk.f32.mxu0 %vm2483_vm12, %v9758_v41 }
 0x7fd   :  { %7409 = vmatmul.mubr.msk.f32.gmra.mrb[12].mxu1 %vm2483_vm12, %v9884_v36 }
 0x7fe   :  { %7411 = vmatprep.mubr.msk.f32.mxu1 %vm2483_vm12, %v9891_v37 }
 0x801   :  { %7412 = vmatmul.mubr.msk.f32.gmra.mrb[14].mxu1 %vm2483_vm12, %v9900_v38 }
 0x802   :  { %7454 = vmatprep.mubr.msk.f32.mxu1 %vm2483_vm12, %v9758_v41 }
 0x8b4   :  { %v9914_v53 = vpop.f32.mrb[72].mxu1 }
 0x8b5   :  { %10719 = vst [vmem:[#allocation5_spill] sm:$0xff] %v9914_v53  ;;  %v9916_v54 = vpop.f32.mrb[73].mxu1 }
 0x8b6   :  { %10720 = vst [vmem:[#allocation6_spill] sm:$0xff] %v9916_v54 }
 0x8b8   :  { %v7392_v57 = vpop.f32.mrb[0].mxu1 }
 0x8b9   :  { %v2598_v58 = vpop.f32.mrb[1].mxu1  ;;  %v8035_v63 = vadd.f32 %v7392_v57, %v9918_v55 }
 0x8ba   :  { %v8036_v0 = vadd.f32 %v2598_v58, %v9920_v56 }
 0x8bb   :  { %v6052_v4 = vmul.f32 -1.442695, %v8035_v63 }
 0x8bc   :  { %v7395_v59 = vpop.f32.mrb[2].mxu1  ;;  %v6051_v7 = vmul.f32 -1.442695, %v8036_v0  ;;  %v9946_v0 = vpop.permute.xlu1 %156 }
 0x8bd   :  { %v2608_v61 = vpop.f32.mrb[3].mxu1  ;;  %8299 = vpow2.f32 %v6052_v4  ;;  %v8037_v13 = vadd.f32 %v7395_v59, %v9930_v6  ;;  %v9948_v4 = vpop.permute.xlu0 %151 }
 0x8be   :  { %8301 = vpow2.f32 %v6051_v7  ;;  %v8038_v14 = vadd.f32 %v2608_v61, %v9932_v8  ;;  %10721 = vst [vmem:[#allocation7_spill] sm:$0xff] %v9948_v4 }
 0x8bf   :  { %v6054_v20 = vmul.f32 -1.442695, %v8037_v13 }
 0x8c0   :  { %v7398_v1 = vpop.f32.mrb[4].mxu1  ;;  %v6053_v23 = vmul.f32 -1.442695, %v8038_v14 }
 0x8c1   :  { %v8039_v2 = vadd.f32 %v7398_v1, %v9922_v60  ;;  %v2618_v3 = vpop.f32.mrb[5].mxu1 }
 0x8c2   :  { %v8040_v5 = vadd.f32 %v2618_v3, %v9924_v62 }
 0x8c3   :  { %v6056_v9 = vmul.f32 -1.442695, %v8039_v2 }
 0x8c4   :  { %v7401_v10 = vpop.f32.mrb[6].mxu1  ;;  %v6055_v11 = vmul.f32 -1.442695, %v8040_v5 }
 0x8c5   :  { %v2628_v12 = vpop.f32.mrb[7].mxu1  ;;  %8303 = vpow2.f32 %v6056_v9  ;;  %v8041_v21 = vadd.f32 %v7401_v10, %v9936_v16 }
 0x8c6   :  { %8305 = vpow2.f32 %v6055_v11  ;;  %v8042_v24 = vadd.f32 %v2628_v12, %v9939_v19 }
 0x8c7   :  { %8307 = vpow2.f32 %v6054_v20  ;;  %v6058_v46 = vmul.f32 -1.442695, %v8041_v21  ;;  %v8300_v63 = vpop.eup %8299  ;;  %v9952_v21 = vpop.permute.xlu1 %166 }
 0x8c8   :  { %v7404_v15 = vpop.f32.mrb[8].mxu1  ;;  %8309 = vpow2.f32 %v6053_v23  ;;  %v6057_v59 = vmul.f32 -1.442695, %v8042_v24  ;;  %v8302_v3 = vpop.eup %8301  ;;  %v2758_v12 = vadd.f32 1.0, %v8300_v63  ;;  %10722 = vst [vmem:[#allocation8_spill] sm:$0xff] %v9952_v21 }
 0x8c9   :  { %v8043_v17 = vadd.f32 %v7404_v15, %v9912_v52  ;;  %v2638_v18 = vpop.f32.mrb[9].mxu1  ;;  %v2757_v14 = vadd.f32 1.0, %v8302_v3  ;;  %v9954_v23 = vpop.permute.xlu0 %161 }
 0x8ca   :  { %v8044_v22 = vadd.f32 %v2638_v18, %v9908_v50  ;;  %10723 = vst [vmem:[#allocation9_spill] sm:$0xff] %v9954_v23 }
 0x8cb   :  { %v6048_v25 = vmul.f32 -2.0, %v8043_v17 }
 0x8cc   :  { %v6047_v26 = vmul.f32 -2.0, %v8044_v22  ;;  %v7407_v27 = vpop.f32.mrb[10].mxu1 }
 0x8cd   :  { %v2743_v29 = vmul.f32 1.442695, %v6048_v25  ;;  %v8045_v42 = vadd.f32 %v7407_v27, %v9910_v51  ;;  %v2648_v44 = vpop.f32.mrb[11].mxu1 }
 0x8ce   :  { %v2741_v57 = vmul.f32 1.442695, %v6047_v26  ;;  %v8046_v58 = vadd.f32 %v2648_v44, %v9906_v49 }
 0x8cf   :  { %v6050_v61 = vmul.f32 -2.0, %v8045_v42  ;;  %8311 = vpow2.f32 %v2743_v29  ;;  %v8304_v9 = vpop.eup %8303 }
 0x8d0   :  { %v6049_v1 = vmul.f32 -2.0, %v8046_v58  ;;  %v7410_v2 = vpop.f32.mrb[12].mxu1  ;;  %8313 = vpow2.f32 %v2741_v57  ;;  %v8306_v11 = vpop.eup %8305  ;;  %v2762_v18 = vadd.f32 1.0, %v8304_v9 }
 0x8d1   :  { %v2747_v5 = vmul.f32 1.442695, %v6050_v61  ;;  %v2658_v7 = vpop.f32.mrb[13].mxu1  ;;  %8315 = vpow2.f32 %v6058_v46  ;;  %v8047_v13 = vadd.f32 %v7410_v2, %v9946_v0  ;;  %v2761_v22 = vadd.f32 1.0, %v8306_v11  ;;  %v8308_v26 = vpop.eup %8307 }
 0x8d2   :  { %v2745_v10 = vmul.f32 1.442695, %v6049_v1  ;;  %8317 = vpow2.f32 %v6057_v59  ;;  %v8048_v15 = vadd.f32 %v2658_v7, %v9948_v4  ;;  %v8310_v42 = vpop.eup %8309 }
 0x8d3   :  { %8319 = vpow2.f32 %v2747_v5  ;;  %v6060_v24 = vmul.f32 -1.442695, %v8047_v13 }
 0x8d4   :  { %v7413_v17 = vpop.f32.mrb[14].mxu1  ;;  %8321 = vpow2.f32 %v2745_v10  ;;  %v6059_v27 = vmul.f32 -1.442695, %v8048_v15 }
 0x8d5   :  { %v2668_v20 = vpop.f32.mrb[15].mxu1  ;;  %8323 = vrcp.f32 %v2758_v12  ;;  %v8049_v25 = vadd.f32 %v7413_v17, %v9952_v21  ;;  %v2760_v12 = vadd.f32 1.0, %v8308_v26 }
 0x8d6   :  { %8325 = vrcp.f32 %v2757_v14  ;;  %v8050_v29 = vadd.f32 %v2668_v20, %v9954_v23  ;;  %v2759_v14 = vadd.f32 1.0, %v8310_v42 }
 0x8d7   :  { %8327 = vrcp.f32 %v2762_v18  ;;  %v6062_v58 = vmul.f32 -1.442695, %v8049_v25 }
 0x8d8   :  { %8329 = vrcp.f32 %v2761_v22  ;;  %v6061_v63 = vmul.f32 -1.442695, %v8050_v29 }
 0x8d9   :  { %v8312_v44 = vpop.eup %8311  ;;  %8331 = vpow2.f32 %v6060_v24 }
 0x8da   :  { %v8314_v46 = vpop.eup %8313  ;;  %v2766_v57 = vadd.f32 1.0, %v8312_v44  ;;  %8333 = vpow2.f32 %v6059_v27 }
 0x8db   :  { %v8316_v59 = vpop.eup %8315  ;;  %v2765_v61 = vadd.f32 1.0, %v8314_v46 }
 0x8dc   :  { %v8318_v1 = vpop.eup %8317  ;;  %8335 = vrcp.f32 %v2766_v57  ;;  %v2764_v5 = vadd.f32 1.0, %v8316_v59 }
 0x8dd   :  { %v8320_v2 = vpop.eup %8319  ;;  %8337 = vrcp.f32 %v2765_v61  ;;  %v2763_v9 = vadd.f32 1.0, %v8318_v1 }
 0x8de   :  { %v8322_v3 = vpop.eup %8321  ;;  %v2768_v7 = vadd.f32 1.0, %v8320_v2  ;;  %8339 = vpow2.f32 %v6062_v58 }
 0x8df   :  { %v2767_v10 = vadd.f32 1.0, %v8322_v3  ;;  %8341 = vpow2.f32 %v6061_v63  ;;  %v8324_v11 = vpop.eup %8323 }
 0x8e0   :  { %8343 = vrcp.f32 %v2768_v7  ;;  %v8326_v13 = vpop.eup %8325 }
 0x8e1   :  { %8345 = vrcp.f32 %v2767_v10  ;;  %v8328_v15 = vpop.eup %8327 }
 0x8e2   :  { %8347 = vrcp.f32 %v2764_v5  ;;  %v8330_v17 = vpop.eup %8329  ;;  %v2854_v61 = vmul.f32 0.0, %v8328_v15 }
 0x8e3   :  { %8349 = vrcp.f32 %v2763_v9  ;;  %v8332_v18 = vpop.eup %8331  ;;  %v2853_v3 = vmul.f32 0.0, %v8330_v17 }
 0x8e4   :  { %8351 = vrcp.f32 %v2760_v12  ;;  %v8334_v20 = vpop.eup %8333  ;;  %v2770_v26 = vadd.f32 1.0, %v8332_v18 }
 0x8e5   :  { %8353 = vrcp.f32 %v2759_v14  ;;  %v2769_v42 = vadd.f32 1.0, %v8334_v20 }
 0x8e6   :  { %v8336_v22 = vpop.eup %8335  ;;  %8355 = vrcp.f32 %v2770_v26 }
 0x8e7   :  { %v8338_v24 = vpop.eup %8337  ;;  %v2814_v25 = vmul.f32 2.0, %v8336_v22  ;;  %8357 = vrcp.f32 %v2769_v42 }
 0x8e8   :  { %v8340_v27 = vpop.eup %8339  ;;  %v2813_v29 = vmul.f32 2.0, %v8338_v24 }
 0x8e9   :  { %v8342_v44 = vpop.eup %8341  ;;  %v6072_v46 = vadd.f32 -1.0, %v2814_v25  ;;  %v2772_v14 = vadd.f32 1.0, %v8340_v27 }
 0x8ea   :  { %v8344_v57 = vpop.eup %8343  ;;  %v6071_v58 = vadd.f32 -1.0, %v2813_v29  ;;  %v2771_v20 = vadd.f32 1.0, %v8342_v44 }
 0x8eb   :  { %v8346_v59 = vpop.eup %8345  ;;  %v2858_v63 = vmul.f32 %v8324_v11, %v6072_v46  ;;  %v2816_v1 = vmul.f32 2.0, %v8344_v57 }
 0x8ec   :  { %v8348_v2 = vpop.eup %8347  ;;  %v2857_v5 = vmul.f32 %v8326_v13, %v6071_v58  ;;  %v2815_v7 = vmul.f32 2.0, %v8346_v59 }
 0x8ed   :  { %v8350_v9 = vpop.eup %8349  ;;  %v9958_v10 = vadd.f32 %v2858_v63, %v2854_v61  ;;  %v6074_v12 = vadd.f32 -1.0, %v2816_v1  ;;  %v2856_v15 = vmul.f32 0.0, %v8348_v2 }
 0x8ee   :  { %v8352_v22 = vpop.eup %8351  ;;  %v9960_v24 = vadd.f32 %v2857_v5, %v2853_v3  ;;  %v6073_v18 = vadd.f32 -1.0, %v2815_v7  ;;  %v2855_v17 = vmul.f32 0.0, %v8350_v9 }
 0x8ef   :  { %v8354_v25 = vpop.eup %8353  ;;  %8359 = vtanh.f32 %v9958_v10  ;;  %v2860_v11 = vmul.f32 %v8352_v22, %v6074_v12 }
 0x8f0   :  { %8361 = vtanh.f32 %v9960_v24  ;;  %v2859_v13 = vmul.f32 %v8354_v25, %v6073_v18  ;;  %v8356_v27 = vpop.eup %8355 }
 0x8f1   :  { %v9964_v29 = vadd.f32 %v2860_v11, %v2856_v15  ;;  %8363 = vrcp.f32 %v2772_v14  ;;  %v8358_v44 = vpop.eup %8357 }
 0x8f2   :  { %v9966_v46 = vadd.f32 %v2859_v13, %v2855_v17  ;;  %8365 = vrcp.f32 %v2771_v20 }
 0x8f3   :  { %8367 = vtanh.f32 %v9964_v29 }
 0x8f4   :  { %8369 = vtanh.f32 %v9966_v46 }
 0x8f9   :  { %v8360_v26 = vpop.eup %8359 }
 0x8fa   :  { %v8362_v57 = vpop.eup %8361  ;;  %v9970_v58 = vmul.f32 %v8360_v26, %v8356_v27 }
 0x8fb   :  { %v8364_v42 = vpop.eup %8363  ;;  %v9972_v59 = vmul.f32 %v8362_v57, %v8358_v44 }
 0x8fc   :  { %v8366_v61 = vpop.eup %8365 }
 0x8fd   :  { %10724 = vst [vmem:[#allocation10_spill] sm:$0xff] %v9972_v59  ;;  %v8368_v63 = vpop.eup %8367  ;;  %v7958_v1 = vpack.c.bf16 %v9970_v58, %v9972_v59 }
 0x8fe   :  { %v8370_v2 = vpop.eup %8369  ;;  %v9976_v3 = vmul.f32 %v8368_v63, %v8364_v42 }
 0x8ff   :  { %7959 = vmatprep.subr.bf16.mxu0 %v7958_v1  ;;  %v9978_v5 = vmul.f32 %v8370_v2, %v8366_v61 }
 0x900   :  { %10725 = vst [vmem:[#allocation11_spill] sm:$0xff] %v9976_v3  ;;  %7961 = vmatpush3.bf16.msra.mxu0 %v7958_v1 }
 0x901   :  { %10726 = vst [vmem:[#allocation12_spill] sm:$0xff] %v9978_v5  ;;  %v7962_v7 = vpack.c.bf16 %v9976_v3, %v9978_v5 }
 0x903   :  { %7963 = vmatprep.subr.bf16.mxu0 %v7962_v7 }
 0x904   :  { %7965 = vmatpush3.bf16.msra.mxu0 %v7962_v7 }
 0x907   :  { %7423 = vmatmul.mubr.msk.f32.vlgmr.msra.gmra.mrb[2].mxu0 %vm2483_vm12, %v9772_v43 }
 0x908   :  { %7425 = vmatprep.mubr.msk.f32.mxu0 %vm2483_vm12, %v9777_v40 }
 0x90b   :  { %7426 = vmatmul.mubr.msk.f32.gmra.mrb[4].mxu0 %vm2483_vm12, %v9792_v45 }
 0x90c   :  { %7428 = vmatprep.mubr.msk.f32.mxu0 %vm2483_vm12, %v9801_v47 }
 0x90f   :  { %7429 = vmatmul.mubr.msk.f32.gmra.mrb[6].mxu0 %vm2483_vm12, %v9812_v28 }
 0x910   :  { %7431 = vmatprep.mubr.msk.f32.mxu0 %vm2483_vm12, %v9819_v48 }
 0x913   :  { %7432 = vmatmul.mubr.msk.f32.gmra.mrb[8].mxu0 %vm2483_vm12, %v9830_v30 }
 0x914   :  { %7434 = vmatprep.mubr.msk.f32.mxu0 %vm2483_vm12, %v9837_v31 }
 0x917   :  { %7435 = vmatmul.mubr.msk.f32.gmra.mrb[10].mxu0 %vm2483_vm12, %v9848_v32 }
 0x918   :  { %7437 = vmatprep.mubr.msk.f32.mxu0 %vm2483_vm12, %v9855_v33 }
 0x91b   :  { %7438 = vmatmul.mubr.msk.f32.gmra.mrb[12].mxu0 %vm2483_vm12, %v9866_v34 }
 0x91c   :  { %7440 = vmatprep.mubr.msk.f32.mxu0 %vm2483_vm12, %v9873_v35 }
 0x91f   :  { %7441 = vmatmul.mubr.msk.f32.gmra.mrb[14].mxu0 %vm2483_vm12, %v9884_v36 }
 0x920   :  { %7443 = vmatprep.mubr.msk.f32.mxu0 %vm2483_vm12, %v9891_v37 }
 0x923   :  { %7444 = vmatmul.mubr.msk.f32.gmra.mrb[16].mxu0 %vm2483_vm12, %v9900_v38 }
 0x924   :  { %7486 = vmatprep.mubr.msk.f32.mxu0 %vm2483_vm12, %v9758_v41 }
 0x9da   :  { %v7424_v9 = vpop.f32.mrb[2].mxu0 }
 0x9db   :  { %v2943_v12 = vpop.f32.mrb[3].mxu0  ;;  %v8051_v18 = vadd.f32 %v7424_v9, %v9918_v55 }
 0x9dc   :  { %v8052_v20 = vadd.f32 %v2943_v12, %v9920_v56 }
 0x9dd   :  { %v6100_v17 = vmul.f32 -1.442695, %v8051_v18 }
 0x9de   :  { %v7427_v14 = vpop.f32.mrb[4].mxu0  ;;  %v6099_v27 = vmul.f32 -1.442695, %v8052_v20 }
 0x9df   :  { %v2953_v22 = vpop.f32.mrb[5].mxu0  ;;  %8371 = vpow2.f32 %v6100_v17  ;;  %v8053_v61 = vadd.f32 %v7427_v14, %v9930_v6 }
 0x9e0   :  { %8373 = vpow2.f32 %v6099_v27  ;;  %v8054_v63 = vadd.f32 %v2953_v22, %v9932_v8 }
 0x9e1   :  { %v6102_v9 = vmul.f32 -1.442695, %v8053_v61 }
 0x9e2   :  { %v7430_v25 = vpop.f32.mrb[6].mxu0  ;;  %v6101_v20 = vmul.f32 -1.442695, %v8054_v63 }
 0x9e3   :  { %v8055_v15 = vadd.f32 %v7430_v25, %v9922_v60  ;;  %v2963_v11 = vpop.f32.mrb[7].mxu0 }
 0x9e4   :  { %v8056_v13 = vadd.f32 %v2963_v11, %v9924_v62 }
 0x9e5   :  { %v6104_v44 = vmul.f32 -1.442695, %v8055_v15 }
 0x9e6   :  { %v7433_v26 = vpop.f32.mrb[8].mxu0  ;;  %v6103_v57 = vmul.f32 -1.442695, %v8056_v13 }
 0x9e7   :  { %v2973_v42 = vpop.f32.mrb[9].mxu0  ;;  %8375 = vpow2.f32 %v6104_v44  ;;  %v8057_v12 = vadd.f32 %v7433_v26, %v9936_v16 }
 0x9e8   :  { %8377 = vpow2.f32 %v6103_v57  ;;  %v8058_v25 = vadd.f32 %v2973_v42, %v9939_v19 }
 0x9e9   :  { %8379 = vpow2.f32 %v6102_v9  ;;  %v6106_v27 = vmul.f32 -1.442695, %v8057_v12 }
 0x9ea   :  { %v7436_v1 = vpop.f32.mrb[10].mxu0  ;;  %8381 = vpow2.f32 %v6101_v20  ;;  %v6105_v61 = vmul.f32 -1.442695, %v8058_v25 }
 0x9eb   :  { %v8059_v2 = vadd.f32 %v7436_v1, %v9912_v52  ;;  %v2983_v7 = vpop.f32.mrb[11].mxu0  ;;  %v8372_v1 = vpop.eup %8371 }
 0x9ec   :  { %v8060_v18 = vadd.f32 %v2983_v7, %v9908_v50  ;;  %v8374_v42 = vpop.eup %8373  ;;  %v3103_v9 = vadd.f32 1.0, %v8372_v1 }
 0x9ed   :  { %v6096_v15 = vmul.f32 -2.0, %v8059_v2 }
 0x9ee   :  { %v6095_v11 = vmul.f32 -2.0, %v8060_v18  ;;  %v7439_v14 = vpop.f32.mrb[12].mxu0 }
 0x9ef   :  { %v3088_v17 = vmul.f32 1.442695, %v6096_v15  ;;  %v8061_v22 = vadd.f32 %v7439_v14, %v9910_v51  ;;  %v2993_v13 = vpop.f32.mrb[13].mxu0 }
 0x9f0   :  { %v3086_v44 = vmul.f32 1.442695, %v6095_v11  ;;  %v8062_v57 = vadd.f32 %v2993_v13, %v9906_v49  ;;  %v3102_v11 = vadd.f32 1.0, %v8374_v42 }
 0x9f1   :  { %v6098_v26 = vmul.f32 -2.0, %v8061_v22  ;;  %8383 = vpow2.f32 %v3088_v17  ;;  %v8376_v15 = vpop.eup %8375 }
 0x9f2   :  { %v6097_v63 = vmul.f32 -2.0, %v8062_v57  ;;  %v7442_v7 = vpop.f32.mrb[14].mxu0  ;;  %8385 = vpow2.f32 %v3086_v44  ;;  %v8378_v39 = vpop.eup %8377  ;;  %v3107_v17 = vadd.f32 1.0, %v8376_v15 }
 0x9f3   :  { %v3092_v2 = vmul.f32 1.442695, %v6098_v26  ;;  %v3003_v18 = vpop.f32.mrb[15].mxu0  ;;  %8387 = vpow2.f32 %v6106_v27  ;;  %v8063_v12 = vadd.f32 %v7442_v7, %v9946_v0  ;;  %v3106_v13 = vadd.f32 1.0, %v8378_v39  ;;  %v8380_v27 = vpop.eup %8379 }
 0x9f4   :  { %v3090_v14 = vmul.f32 1.442695, %v6097_v63  ;;  %8389 = vpow2.f32 %v6105_v61  ;;  %v8064_v20 = vadd.f32 %v3003_v18, %v9948_v4  ;;  %v8382_v1 = vpop.eup %8381 }
 0x9f5   :  { %8391 = vpow2.f32 %v3092_v2  ;;  %v6108_v44 = vmul.f32 -1.442695, %v8063_v12 }
 0x9f6   :  { %v7445_v25 = vpop.f32.mrb[16].mxu0  ;;  %8393 = vpow2.f32 %v3090_v14  ;;  %v6107_v26 = vmul.f32 -1.442695, %v8064_v20 }
 0x9f7   :  { %v3013_v22 = vpop.f32.mrb[17].mxu0  ;;  %8395 = vrcp.f32 %v3103_v9  ;;  %v8065_v57 = vadd.f32 %v7445_v25, %v9952_v21 }
 0x9f8   :  { %8397 = vrcp.f32 %v3102_v11  ;;  %v8066_v61 = vadd.f32 %v3013_v22, %v9954_v23 }
 0x9f9   :  { %8399 = vrcp.f32 %v3107_v17  ;;  %v6110_v2 = vmul.f32 -1.442695, %v8065_v57  ;;  %v3104_v57 = vadd.f32 1.0, %v8382_v1 }
 0x9fa   :  { %8401 = vrcp.f32 %v3106_v13  ;;  %v6109_v39 = vmul.f32 -1.442695, %v8066_v61  ;;  %v3105_v13 = vadd.f32 1.0, %v8380_v27 }
 0x9fb   :  { %v8384_v63 = vpop.eup %8383  ;;  %8403 = vpow2.f32 %v6108_v44 }
 0x9fc   :  { %v8386_v7 = vpop.eup %8385  ;;  %v3111_v42 = vadd.f32 1.0, %v8384_v63  ;;  %8405 = vpow2.f32 %v6107_v26 }
 0x9fd   :  { %v8388_v18 = vpop.eup %8387  ;;  %v3110_v15 = vadd.f32 1.0, %v8386_v7 }
 0x9fe   :  { %v8390_v14 = vpop.eup %8389  ;;  %8407 = vrcp.f32 %v3111_v42  ;;  %v3109_v11 = vadd.f32 1.0, %v8388_v18 }
 0x9ff   :  { %v8392_v9 = vpop.eup %8391  ;;  %8409 = vrcp.f32 %v3110_v15  ;;  %v3108_v25 = vadd.f32 1.0, %v8390_v14 }
 0xa00   :  { %v8394_v12 = vpop.eup %8393  ;;  %v3113_v20 = vadd.f32 1.0, %v8392_v9  ;;  %8411 = vpow2.f32 %v6110_v2 }
 0xa01   :  { %v3112_v17 = vadd.f32 1.0, %v8394_v12  ;;  %8413 = vpow2.f32 %v6109_v39  ;;  %v8396_v22 = vpop.eup %8395 }
 0xa02   :  { %8415 = vrcp.f32 %v3113_v20  ;;  %v8398_v44 = vpop.eup %8397 }
 0xa03   :  { %8417 = vrcp.f32 %v3112_v17  ;;  %v8400_v63 = vpop.eup %8399 }
 0xa04   :  { %8419 = vrcp.f32 %v3109_v11  ;;  %v8402_v26 = vpop.eup %8401  ;;  %v3199_v11 = vmul.f32 %v8400_v63, %v9958_v10 }
 0xa05   :  { %8421 = vrcp.f32 %v3108_v25  ;;  %v8404_v61 = vpop.eup %8403 }
 0xa06   :  { %8423 = vrcp.f32 %v3105_v13  ;;  %v8406_v7 = vpop.eup %8405  ;;  %v3115_v27 = vadd.f32 1.0, %v8404_v61  ;;  %v3198_v13 = vmul.f32 %v8402_v26, %v9960_v24 }
 0xa07   :  { %8425 = vrcp.f32 %v3104_v57  ;;  %v3114_v1 = vadd.f32 1.0, %v8406_v7 }
 0xa08   :  { %v8408_v42 = vpop.eup %8407  ;;  %8427 = vrcp.f32 %v3115_v27 }
 0xa09   :  { %v8410_v18 = vpop.eup %8409  ;;  %v3159_v2 = vmul.f32 2.0, %v8408_v42  ;;  %8429 = vrcp.f32 %v3114_v1 }
 0xa0a   :  { %v8412_v15 = vpop.eup %8411  ;;  %v3158_v14 = vmul.f32 2.0, %v8410_v18 }
 0xa0b   :  { %v8414_v39 = vpop.eup %8413  ;;  %v6120_v9 = vadd.f32 -1.0, %v3159_v2  ;;  %v3117_v2 = vadd.f32 1.0, %v8412_v15 }
 0xa0c   :  { %v8416_v12 = vpop.eup %8415  ;;  %v6119_v20 = vadd.f32 -1.0, %v3158_v14  ;;  %v3116_v14 = vadd.f32 1.0, %v8414_v39 }
 0xa0d   :  { %v8418_v17 = vpop.eup %8417  ;;  %v3203_v54 = vmul.f32 %v8396_v22, %v6120_v9  ;;  %v3161_v25 = vmul.f32 2.0, %v8416_v12 }
 0xa0e   :  { %v8420_v53 = vpop.eup %8419  ;;  %v3202_v57 = vmul.f32 %v8398_v44, %v6119_v20  ;;  %v3160_v5 = vmul.f32 2.0, %v8418_v17 }
 0xa0f   :  { %v8422_v3 = vpop.eup %8421  ;;  %v10032_v42 = vadd.f32 %v3203_v54, %v3199_v11  ;;  %v6122_v18 = vadd.f32 -1.0, %v3161_v25  ;;  %v3201_v22 = vmul.f32 %v8420_v53, %v9964_v29 }
 0xa10   :  { %v8424_v61 = vpop.eup %8423  ;;  %v10034_v59 = vadd.f32 %v3202_v57, %v3198_v13  ;;  %v6121_v7 = vadd.f32 -1.0, %v3160_v5  ;;  %v3200_v54 = vmul.f32 %v8422_v3, %v9966_v46 }
 0xa11   :  { %v8426_v10 = vpop.eup %8425  ;;  %8431 = vtanh.f32 %v10032_v42  ;;  %v3205_v24 = vmul.f32 %v8424_v61, %v6122_v18 }
 0xa12   :  { %8433 = vtanh.f32 %v10034_v59  ;;  %v3204_v44 = vmul.f32 %v8426_v10, %v6121_v7  ;;  %v8428_v5 = vpop.eup %8427 }
 0xa13   :  { %v10040_v63 = vadd.f32 %v3205_v24, %v3201_v22  ;;  %8435 = vrcp.f32 %v3117_v2  ;;  %v8430_v15 = vpop.eup %8429 }
 0xa14   :  { %v10042_v26 = vadd.f32 %v3204_v44, %v3200_v54  ;;  %8437 = vrcp.f32 %v3116_v14 }
 0xa15   :  { %8439 = vtanh.f32 %v10040_v63 }
 0xa16   :  { %8441 = vtanh.f32 %v10042_v26 }
 0xa1b   :  { %v8432_v39 = vpop.eup %8431 }
 0xa1c   :  { %v8434_v53 = vpop.eup %8433  ;;  %v10046_v29 = vmul.f32 %v8432_v39, %v8428_v5 }
 0xa1d   :  { %v8436_v9 = vpop.eup %8435  ;;  %v10048_v27 = vmul.f32 %v8434_v53, %v8430_v15 }
 0xa1e   :  { %v8438_v46 = vpop.eup %8437 }
 0xa1f   :  { %v8440_v3 = vpop.eup %8439  ;;  %v7966_v12 = vpack.c.bf16 %v10046_v29, %v10048_v27 }
 0xa20   :  { %v8442_v20 = vpop.eup %8441  ;;  %v10052_v1 = vmul.f32 %v8440_v3, %v8436_v9 }
 0xa21   :  { %7967 = vmatprep.subr.bf16.mxu1 %v7966_v12  ;;  %v10054_v17 = vmul.f32 %v8442_v20, %v8438_v46 }
 0xa22   :  { %7969 = vmatpush3.bf16.msra.mxu1 %v7966_v12 }
 0xa23   :  { %v7970_v11 = vpack.c.bf16 %v10052_v1, %v10054_v17 }
 0xa25   :  { %7971 = vmatprep.subr.bf16.mxu1 %v7970_v11 }
 0xa26   :  { %7973 = vmatpush3.bf16.msra.mxu1 %v7970_v11 }
 0xa29   :  { %7455 = vmatmul.mubr.msk.f32.vlgmr.msra.gmra.mrb[18].mxu1 %vm2483_vm12, %v9772_v43 }
 0xa2a   :  { %7457 = vmatprep.mubr.msk.f32.mxu1 %vm2483_vm12, %v9777_v40 }
 0xa2d   :  { %7458 = vmatmul.mubr.msk.f32.gmra.mrb[20].mxu1 %vm2483_vm12, %v9792_v45 }
 0xa2e   :  { %7460 = vmatprep.mubr.msk.f32.mxu1 %vm2483_vm12, %v9801_v47 }
 0xa31   :  { %7461 = vmatmul.mubr.msk.f32.gmra.mrb[22].mxu1 %vm2483_vm12, %v9812_v28 }
 0xa32   :  { %7463 = vmatprep.mubr.msk.f32.mxu1 %vm2483_vm12, %v9819_v48 }
 0xa35   :  { %7464 = vmatmul.mubr.msk.f32.gmra.mrb[24].mxu1 %vm2483_vm12, %v9830_v30 }
 0xa36   :  { %7466 = vmatprep.mubr.msk.f32.mxu1 %vm2483_vm12, %v9837_v31 }
 0xa39   :  { %7467 = vmatmul.mubr.msk.f32.gmra.mrb[26].mxu1 %vm2483_vm12, %v9848_v32 }
 0xa3a   :  { %7469 = vmatprep.mubr.msk.f32.mxu1 %vm2483_vm12, %v9855_v33 }
 0xa3d   :  { %7470 = vmatmul.mubr.msk.f32.gmra.mrb[28].mxu1 %vm2483_vm12, %v9866_v34 }
 0xa3e   :  { %7472 = vmatprep.mubr.msk.f32.mxu1 %vm2483_vm12, %v9873_v35 }
 0xa41   :  { %7473 = vmatmul.mubr.msk.f32.gmra.mrb[30].mxu1 %vm2483_vm12, %v9884_v36 }
 0xa42   :  { %7475 = vmatprep.mubr.msk.f32.mxu1 %vm2483_vm12, %v9891_v37 }
 0xa45   :  { %7476 = vmatmul.mubr.msk.f32.gmra.mrb[32].mxu1 %vm2483_vm12, %v9900_v38 }
 0xa46   :  { %7518 = vmatprep.mubr.msk.f32.mxu1 %vm2483_vm12, %v9758_v41 }
 0xafc   :  { %v7456_v43 = vpop.f32.mrb[18].mxu1 }
 0xafd   :  { %v3288_v40 = vpop.f32.mrb[19].mxu1  ;;  %v8067_v28 = vadd.f32 %v7456_v43, %v9918_v55 }
 0xafe   :  { %v8068_v48 = vadd.f32 %v3288_v40, %v9920_v56 }
 0xaff   :  { %v6148_v33 = vmul.f32 -1.442695, %v8067_v28 }
 0xb00   :  { %v7459_v45 = vpop.f32.mrb[20].mxu1  ;;  %v6147_v35 = vmul.f32 -1.442695, %v8068_v48 }
 0xb01   :  { %v3298_v47 = vpop.f32.mrb[21].mxu1  ;;  %8443 = vpow2.f32 %v6148_v33  ;;  %v8069_v25 = vadd.f32 %v7459_v45, %v9930_v6 }
 0xb02   :  { %8445 = vpow2.f32 %v6147_v35  ;;  %v8070_v13 = vadd.f32 %v3298_v47, %v9932_v8 }
 0xb03   :  { %v6150_v61 = vmul.f32 -1.442695, %v8069_v25 }
 0xb04   :  { %v7462_v30 = vpop.f32.mrb[22].mxu1  ;;  %v6149_v10 = vmul.f32 -1.442695, %v8070_v13 }
 0xb05   :  { %v8071_v31 = vadd.f32 %v7462_v30, %v9922_v60  ;;  %v3308_v32 = vpop.f32.mrb[23].mxu1 }
 0xb06   :  { %v8072_v34 = vadd.f32 %v3308_v32, %v9924_v62 }
 0xb07   :  { %v6152_v36 = vmul.f32 -1.442695, %v8071_v31 }
 0xb08   :  { %v7465_v37 = vpop.f32.mrb[24].mxu1  ;;  %v6151_v38 = vmul.f32 -1.442695, %v8072_v34 }
 0xb09   :  { %v3318_v41 = vpop.f32.mrb[25].mxu1  ;;  %8447 = vpow2.f32 %v6152_v36  ;;  %v8073_v7 = vadd.f32 %v7465_v37, %v9936_v16 }
 0xb0a   :  { %8449 = vpow2.f32 %v6151_v38  ;;  %v8074_v22 = vadd.f32 %v3318_v41, %v9939_v19 }
 0xb0b   :  { %8451 = vpow2.f32 %v6150_v61  ;;  %v6154_v53 = vmul.f32 -1.442695, %v8073_v7  ;;  %v8444_v20 = vpop.eup %8443 }
 0xb0c   :  { %v7468_v57 = vpop.f32.mrb[26].mxu1  ;;  %8453 = vpow2.f32 %v6149_v10  ;;  %v6153_v3 = vmul.f32 -1.442695, %v8074_v22  ;;  %v8446_v40 = vpop.eup %8445  ;;  %v3448_v31 = vadd.f32 1.0, %v8444_v20 }
 0xb0d   :  { %v8075_v18 = vadd.f32 %v7468_v57, %v9912_v52  ;;  %v3328_v2 = vpop.f32.mrb[27].mxu1  ;;  %v3447_v33 = vadd.f32 1.0, %v8446_v40 }
 0xb0e   :  { %v8076_v14 = vadd.f32 %v3328_v2, %v9908_v50 }
 0xb0f   :  { %v6144_v24 = vmul.f32 -2.0, %v8075_v18 }
 0xb10   :  { %v6143_v54 = vmul.f32 -2.0, %v8076_v14  ;;  %v7471_v44 = vpop.f32.mrb[28].mxu1 }
 0xb11   :  { %v3433_v5 = vmul.f32 1.442695, %v6144_v24  ;;  %v8077_v15 = vadd.f32 %v7471_v44, %v9910_v51  ;;  %v3338_v39 = vpop.f32.mrb[29].mxu1 }
 0xb12   :  { %v3431_v9 = vmul.f32 1.442695, %v6143_v54  ;;  %v8078_v46 = vadd.f32 %v3338_v39, %v9906_v49 }
 0xb13   :  { %v6146_v12 = vmul.f32 -2.0, %v8077_v15  ;;  %8455 = vpow2.f32 %v3433_v5  ;;  %v8448_v28 = vpop.eup %8447 }
 0xb14   :  { %v6145_v11 = vmul.f32 -2.0, %v8078_v46  ;;  %v7474_v43 = vpop.f32.mrb[30].mxu1  ;;  %8457 = vpow2.f32 %v3431_v9  ;;  %v8450_v30 = vpop.eup %8449  ;;  %v3452_v36 = vadd.f32 1.0, %v8448_v28 }
 0xb15   :  { %v3437_v45 = vmul.f32 1.442695, %v6146_v12  ;;  %v3348_v47 = vpop.f32.mrb[31].mxu1  ;;  %8459 = vpow2.f32 %v6154_v53  ;;  %v8079_v32 = vadd.f32 %v7474_v43, %v9946_v0  ;;  %v3451_v38 = vadd.f32 1.0, %v8450_v30  ;;  %v8452_v13 = vpop.eup %8451 }
 0xb16   :  { %v3435_v48 = vmul.f32 1.442695, %v6145_v11  ;;  %8461 = vpow2.f32 %v6153_v3  ;;  %v8080_v34 = vadd.f32 %v3348_v47, %v9948_v4  ;;  %v8454_v2 = vpop.eup %8453  ;;  %v3450_v12 = vadd.f32 1.0, %v8452_v13 }
 0xb17   :  { %8463 = vpow2.f32 %v3437_v45  ;;  %v6156_v41 = vmul.f32 -1.442695, %v8079_v32  ;;  %v3449_v11 = vadd.f32 1.0, %v8454_v2 }
 0xb18   :  { %v7477_v35 = vpop.f32.mrb[32].mxu1  ;;  %8465 = vpow2.f32 %v3435_v48  ;;  %v6155_v57 = vmul.f32 -1.442695, %v8080_v34 }
 0xb19   :  { %v3358_v37 = vpop.f32.mrb[33].mxu1  ;;  %8467 = vrcp.f32 %v3448_v31  ;;  %v8081_v25 = vadd.f32 %v7477_v35, %v9952_v21 }
 0xb1a   :  { %8469 = vrcp.f32 %v3447_v33  ;;  %v8082_v18 = vadd.f32 %v3358_v37, %v9954_v23 }
 0xb1b   :  { %8471 = vrcp.f32 %v3452_v36  ;;  %v6158_v10 = vmul.f32 -1.442695, %v8081_v25 }
 0xb1c   :  { %8473 = vrcp.f32 %v3451_v38  ;;  %v6157_v54 = vmul.f32 -1.442695, %v8082_v18 }
 0xb1d   :  { %v8456_v61 = vpop.eup %8455  ;;  %8475 = vpow2.f32 %v6156_v41 }
 0xb1e   :  { %v8458_v7 = vpop.eup %8457  ;;  %v3456_v14 = vadd.f32 1.0, %v8456_v61  ;;  %8477 = vpow2.f32 %v6155_v57 }
 0xb1f   :  { %v8460_v22 = vpop.eup %8459  ;;  %v3455_v24 = vadd.f32 1.0, %v8458_v7 }
 0xb20   :  { %v8462_v44 = vpop.eup %8461  ;;  %8479 = vrcp.f32 %v3456_v14  ;;  %v3454_v39 = vadd.f32 1.0, %v8460_v22 }
 0xb21   :  { %v8464_v5 = vpop.eup %8463  ;;  %8481 = vrcp.f32 %v3455_v24  ;;  %v3453_v9 = vadd.f32 1.0, %v8462_v44 }
 0xb22   :  { %v8466_v15 = vpop.eup %8465  ;;  %v3458_v53 = vadd.f32 1.0, %v8464_v5  ;;  %8483 = vpow2.f32 %v6158_v10 }
 0xb23   :  { %v3457_v46 = vadd.f32 1.0, %v8466_v15  ;;  %8485 = vpow2.f32 %v6157_v54  ;;  %v8468_v3 = vpop.eup %8467 }
 0xb24   :  { %8487 = vrcp.f32 %v3458_v53  ;;  %v8470_v20 = vpop.eup %8469 }
 0xb25   :  { %8489 = vrcp.f32 %v3457_v46  ;;  %v8472_v43 = vpop.eup %8471 }
 0xb26   :  { %8491 = vrcp.f32 %v3454_v39  ;;  %v8474_v40 = vpop.eup %8473  ;;  %v3544_v25 = vmul.f32 %v8472_v43, %v10032_v42  ;;  %v3219_v43 = vadd.f32 %v10046_v29, %v9970_v58 }
 0xb27   :  { %8493 = vrcp.f32 %v3453_v9  ;;  %v8476_v45 = vpop.eup %8475  ;;  %v3543_v2 = vmul.f32 %v8474_v40, %v10034_v59 }
 0xb28   :  { %8495 = vrcp.f32 %v3450_v12  ;;  %v8478_v47 = vpop.eup %8477  ;;  %v3460_v35 = vadd.f32 1.0, %v8476_v45  ;;  %v10727_v45 = vld [vmem:[#allocation10_spill] sm:$0xff] }
 0xb29   :  { %8497 = vrcp.f32 %v3449_v11  ;;  %v3459_v38 = vadd.f32 1.0, %v8478_v47  ;;  %v3218_v47 = vadd.f32 %v10048_v27, %v10727_v45 }
 0xb2a   :  { %v8480_v28 = vpop.eup %8479  ;;  %8499 = vrcp.f32 %v3460_v35  ;;  %v10728_v35 = vld [vmem:[#allocation11_spill] sm:$0xff] }
 0xb2b   :  { %v8482_v48 = vpop.eup %8481  ;;  %v3504_v30 = vmul.f32 2.0, %v8480_v28  ;;  %8501 = vrcp.f32 %v3459_v38  ;;  %v10729_v38 = vld [vmem:[#allocation12_spill] sm:$0xff] }
 0xb2c   :  { %v8484_v31 = vpop.eup %8483  ;;  %v3503_v32 = vmul.f32 2.0, %v8482_v48  ;;  %v3220_v58 = vadd.f32 %v10054_v17, %v10729_v38  ;;  %v10155_v17 = vld [vmem:[%s10698_s3 + $0x18] sm:$0xff] }
 0xb2d   :  { %v8486_v33 = vpop.eup %8485  ;;  %v6168_v34 = vadd.f32 -1.0, %v3504_v30  ;;  %v3462_v24 = vadd.f32 1.0, %v8484_v31 }
 0xb2e   :  { %v8488_v36 = vpop.eup %8487  ;;  %v6167_v37 = vadd.f32 -1.0, %v3503_v32  ;;  %v3461_v15 = vadd.f32 1.0, %v8486_v33 }
 0xb2f   :  { %v8490_v41 = vpop.eup %8489  ;;  %v3548_v13 = vmul.f32 %v8468_v3, %v6168_v34  ;;  %v3506_v57 = vmul.f32 2.0, %v8488_v36  ;;  %v3221_v36 = vadd.f32 %v10052_v1, %v10728_v35  ;;  %v10148_v1 = vld [vmem:[%s10698_s3 + $0x10] sm:$0xff] }
 0xb30   :  { %v8492_v18 = vpop.eup %8491  ;;  %v3547_v61 = vmul.f32 %v8470_v20, %v6167_v37  ;;  %v3505_v7 = vmul.f32 2.0, %v8490_v41 }
 0xb31   :  { %v8494_v14 = vpop.eup %8493  ;;  %v10108_v10 = vadd.f32 %v3548_v13, %v3544_v25  ;;  %v6170_v22 = vadd.f32 -1.0, %v3506_v57  ;;  %v3546_v39 = vmul.f32 %v8492_v18, %v10040_v63  ;;  %v10141_v13 = vld [vmem:[%s10698_s3 + $0x8] sm:$0xff]  ;;  %v10162_v57 = vld [vmem:[%s10698_s3 + $0x20] sm:$0xff] }
 0xb32   :  { %v8496_v54 = vpop.eup %8495  ;;  %v10110_v44 = vadd.f32 %v3547_v61, %v3543_v2  ;;  %v6169_v5 = vadd.f32 -1.0, %v3505_v7  ;;  %v3545_v53 = vmul.f32 %v8494_v14, %v10042_v26  ;;  %v10169_v18 = vld [vmem:[%s10698_s3 + $0x28] sm:$0xff]  ;;  %v10176_v2 = vld [vmem:[%s10698_s3 + $0x30] sm:$0xff]  ;;  %v10183_v61 = vld [vmem:[%s10698_s3 + $0x38] sm:$0xff] }
 0xb33   :  { %v8498_v42 = vpop.eup %8497  ;;  %8503 = vtanh.f32 %v10108_v10  ;;  %v3550_v59 = vmul.f32 %v8496_v54, %v6170_v22  ;;  %v10190_v7 = vld [vmem:[%s10698_s3 + $0x40] sm:$0xff]  ;;  %v10197_v14 = vld [vmem:[%s10698_s3 + $0x48] sm:$0xff]  ;;  %v10204_v22 = vld [vmem:[%s10698_s3 + $0x50] sm:$0xff] }
 0xb34   :  { %8505 = vtanh.f32 %v10110_v44  ;;  %v3549_v9 = vmul.f32 %v8498_v42, %v6169_v5  ;;  %v8500_v12 = vpop.eup %8499  ;;  %v10218_v54 = vld [vmem:[%s10698_s3 + $0x60] sm:$0xff]  ;;  %v10225_v5 = vld [vmem:[%s10698_s3 + $0x68] sm:$0xff]  ;;  %v10239_v42 = vld [vmem:[%s10698_s3 + $0x78] sm:$0xff] }
 0xb35   :  { %v10116_v46 = vadd.f32 %v3550_v59, %v3546_v39  ;;  %8507 = vrcp.f32 %v3462_v24  ;;  %v8502_v20 = vpop.eup %8501  ;;  %v10211_v24 = vld [vmem:[%s10698_s3 + $0x58] sm:$0xff]  ;;  %v10246_v39 = vld [vmem:[%s10698_s3] sm:$0xff] }
 0xb36   :  { %v10118_v3 = vadd.f32 %v3549_v9, %v3545_v53  ;;  %8509 = vrcp.f32 %v3461_v15  ;;  %v10232_v15 = vld [vmem:[%s10698_s3 + $0x70] sm:$0xff] }
 0xb37   :  { %8511 = vtanh.f32 %v10116_v46 }
 0xb38   :  { %8513 = vtanh.f32 %v10118_v3 }
 0xb3d   :  { %v8504_v11 = vpop.eup %8503 }
 0xb3e   :  { %v8506_v63 = vpop.eup %8505  ;;  %v3560_v40 = vmul.f32 %v8504_v11, %v8500_v12 }
 0xb3f   :  { %v8508_v26 = vpop.eup %8507  ;;  %v3559_v28 = vmul.f32 %v8506_v63, %v8502_v20 }
 0xb40   :  { %v8510_v48 = vpop.eup %8509  ;;  %v10126_v30 = vadd.f32 %v3560_v40, %v3219_v43 }
 0xb41   :  { %v8512_v31 = vpop.eup %8511  ;;  %v10128_v32 = vadd.f32 %v3559_v28, %v3218_v47  ;;  %v7974_v33 = vpack.c.bf16 %v3560_v40, %v3559_v28 }
 0xb42   :  { %v8514_v34 = vpop.eup %8513  ;;  %v3562_v37 = vmul.f32 %v8512_v31, %v8508_v26 }
 0xb43   :  { %7975 = vmatprep.subr.bf16.mxu0 %v7974_v33  ;;  %v3561_v29 = vmul.f32 %v8514_v34, %v8510_v48 }
 0xb44   :  { %7977 = vmatpush3.bf16.msra.mxu0 %v7974_v33  ;;  %v10134_v27 = vadd.f32 %v3562_v37, %v3221_v36 }
 0xb45   :  { %v10136_v41 = vadd.f32 %v3561_v29, %v3220_v58  ;;  %v7978_v25 = vpack.c.bf16 %v3562_v37, %v3561_v29 }
 0xb47   :  { %7979 = vmatprep.subr.bf16.mxu0 %v7978_v25 }
 0xb48   :  { %7981 = vmatpush3.bf16.msra.mxu0 %v7978_v25 }
 0xb4b   :  { %7487 = vmatmul.mubr.msk.f32.vlgmr.msra.gmra.mrb[20].mxu0 %vm2483_vm12, %v10141_v13 }
 0xb4c   :  { %7489 = vmatprep.mubr.msk.f32.mxu0 %vm2483_vm12, %v10148_v1 }
 0xb4f   :  { %7490 = vmatmul.mubr.msk.f32.gmra.mrb[22].mxu0 %vm2483_vm12, %v10155_v17 }
 0xb50   :  { %7492 = vmatprep.mubr.msk.f32.mxu0 %vm2483_vm12, %v10162_v57 }
 0xb53   :  { %7493 = vmatmul.mubr.msk.f32.gmra.mrb[24].mxu0 %vm2483_vm12, %v10169_v18 }
 0xb54   :  { %7495 = vmatprep.mubr.msk.f32.mxu0 %vm2483_vm12, %v10176_v2 }
 0xb57   :  { %7496 = vmatmul.mubr.msk.f32.gmra.mrb[26].mxu0 %vm2483_vm12, %v10183_v61 }
 0xb58   :  { %7498 = vmatprep.mubr.msk.f32.mxu0 %vm2483_vm12, %v10190_v7 }
 0xb5b   :  { %7499 = vmatmul.mubr.msk.f32.gmra.mrb[28].mxu0 %vm2483_vm12, %v10197_v14 }
 0xb5c   :  { %7501 = vmatprep.mubr.msk.f32.mxu0 %vm2483_vm12, %v10204_v22 }
 0xb5f   :  { %7502 = vmatmul.mubr.msk.f32.gmra.mrb[30].mxu0 %vm2483_vm12, %v10211_v24 }
 0xb60   :  { %7504 = vmatprep.mubr.msk.f32.mxu0 %vm2483_vm12, %v10218_v54 }
 0xb63   :  { %7505 = vmatmul.mubr.msk.f32.gmra.mrb[32].mxu0 %vm2483_vm12, %v10225_v5 }
 0xb64   :  { %7507 = vmatprep.mubr.msk.f32.mxu0 %vm2483_vm12, %v10232_v15 }
 0xb67   :  { %7508 = vmatmul.mubr.msk.f32.gmra.mrb[34].mxu0 %vm2483_vm12, %v10239_v42 }
 0xb68   :  { %7550 = vmatprep.mubr.msk.f32.mxu0 %vm2483_vm12, %v10246_v39 }
 0xc1e   :  { %v7488_v59 = vpop.f32.mrb[20].mxu0 }
 0xc1f   :  { %v3633_v53 = vpop.f32.mrb[21].mxu0  ;;  %v8083_v20 = vadd.f32 %v7488_v59, %v9918_v55 }
 0xc20   :  { %v8084_v11 = vadd.f32 %v3633_v53, %v9920_v56 }
 0xc21   :  { %v6196_v26 = vmul.f32 -1.442695, %v8083_v20 }
 0xc22   :  { %v7491_v9 = vpop.f32.mrb[22].mxu0  ;;  %v6195_v47 = vmul.f32 -1.442695, %v8084_v11 }
 0xc23   :  { %v3643_v12 = vpop.f32.mrb[23].mxu0  ;;  %8515 = vpow2.f32 %v6196_v26  ;;  %v8085_v34 = vadd.f32 %v7491_v9, %v9930_v6 }
 0xc24   :  { %8517 = vpow2.f32 %v6195_v47  ;;  %v8086_v35 = vadd.f32 %v3643_v12, %v9932_v8 }
 0xc25   :  { %v6198_v58 = vmul.f32 -1.442695, %v8085_v34 }
 0xc26   :  { %v7494_v63 = vpop.f32.mrb[24].mxu0  ;;  %v6197_v59 = vmul.f32 -1.442695, %v8086_v35 }
 0xc27   :  { %v8087_v43 = vadd.f32 %v7494_v63, %v9922_v60  ;;  %v3653_v40 = vpop.f32.mrb[25].mxu0 }
 0xc28   :  { %v8088_v45 = vadd.f32 %v3653_v40, %v9924_v62 }
 0xc29   :  { %v6200_v28 = vmul.f32 -1.442695, %v8087_v43 }
 0xc2a   :  { %v7497_v48 = vpop.f32.mrb[26].mxu0  ;;  %v6199_v31 = vmul.f32 -1.442695, %v8088_v45 }
 0xc2b   :  { %v3663_v33 = vpop.f32.mrb[27].mxu0  ;;  %8519 = vpow2.f32 %v6200_v28  ;;  %v8089_v29 = vadd.f32 %v7497_v48, %v9936_v16 }
 0xc2c   :  { %8521 = vpow2.f32 %v6199_v31  ;;  %v8090_v53 = vadd.f32 %v3663_v33, %v9939_v19 }
 0xc2d   :  { %8523 = vpow2.f32 %v6198_v58  ;;  %v6202_v40 = vmul.f32 -1.442695, %v8089_v29  ;;  %v8516_v48 = vpop.eup %8515 }
 0xc2e   :  { %v7500_v36 = vpop.f32.mrb[28].mxu0  ;;  %8525 = vpow2.f32 %v6197_v59  ;;  %v6201_v47 = vmul.f32 -1.442695, %v8090_v53  ;;  %v8518_v33 = vpop.eup %8517  ;;  %v3793_v58 = vadd.f32 1.0, %v8516_v48 }
 0xc2f   :  { %v8091_v37 = vadd.f32 %v7500_v36, %v9912_v52  ;;  %v3673_v38 = vpop.f32.mrb[29].mxu0 }
 0xc30   :  { %v8092_v25 = vadd.f32 %v3673_v38, %v9908_v50 }
 0xc31   :  { %v6192_v20 = vmul.f32 -2.0, %v8091_v37 }
 0xc32   :  { %v6191_v11 = vmul.f32 -2.0, %v8092_v25  ;;  %v7503_v9 = vpop.f32.mrb[30].mxu0 }
 0xc33   :  { %v3778_v63 = vmul.f32 1.442695, %v6192_v20  ;;  %v8093_v12 = vadd.f32 %v7503_v9, %v9910_v51  ;;  %v3683_v43 = vpop.f32.mrb[31].mxu0  ;;  %v3792_v20 = vadd.f32 1.0, %v8518_v33 }
 0xc34   :  { %v3776_v26 = vmul.f32 1.442695, %v6191_v11  ;;  %v8094_v45 = vadd.f32 %v3683_v43, %v9906_v49 }
 0xc35   :  { %v6194_v28 = vmul.f32 -2.0, %v8093_v12  ;;  %8527 = vpow2.f32 %v3778_v63  ;;  %v8520_v37 = vpop.eup %8519 }
 0xc36   :  { %v6193_v31 = vmul.f32 -2.0, %v8094_v45  ;;  %v7506_v34 = vpop.f32.mrb[32].mxu0  ;;  %8529 = vpow2.f32 %v3776_v26  ;;  %v8522_v25 = vpop.eup %8521  ;;  %v3797_v11 = vadd.f32 1.0, %v8520_v37 }
 0xc37   :  { %v3782_v35 = vmul.f32 1.442695, %v6194_v28  ;;  %v3693_v36 = vpop.f32.mrb[33].mxu0  ;;  %8531 = vpow2.f32 %v6202_v40  ;;  %v8095_v29 = vadd.f32 %v7506_v34, %v9946_v0  ;;  %v3796_v63 = vadd.f32 1.0, %v8522_v25  ;;  %v8524_v40 = vpop.eup %8523 }
 0xc38   :  { %v3780_v38 = vmul.f32 1.442695, %v6193_v31  ;;  %8533 = vpow2.f32 %v6201_v47  ;;  %v8096_v59 = vadd.f32 %v3693_v36, %v9948_v4  ;;  %v8526_v47 = vpop.eup %8525 }
 0xc39   :  { %8535 = vpow2.f32 %v3782_v35  ;;  %v6204_v12 = vmul.f32 -1.442695, %v8095_v29 }
 0xc3a   :  { %v7509_v53 = vpop.f32.mrb[34].mxu0  ;;  %8537 = vpow2.f32 %v3780_v38  ;;  %v6203_v26 = vmul.f32 -1.442695, %v8096_v59 }
 0xc3b   :  { %v3703_v9 = vpop.f32.mrb[35].mxu0  ;;  %8539 = vrcp.f32 %v3793_v58  ;;  %v8097_v43 = vadd.f32 %v7509_v53, %v9952_v21 }
 0xc3c   :  { %8541 = vrcp.f32 %v3792_v20  ;;  %v8098_v45 = vadd.f32 %v3703_v9, %v9954_v23 }
 0xc3d   :  { %8543 = vrcp.f32 %v3797_v11  ;;  %v6206_v34 = vmul.f32 -1.442695, %v8097_v43  ;;  %v3795_v11 = vadd.f32 1.0, %v8524_v40 }
 0xc3e   :  { %8545 = vrcp.f32 %v3796_v63  ;;  %v6205_v36 = vmul.f32 -1.442695, %v8098_v45  ;;  %v3794_v63 = vadd.f32 1.0, %v8526_v47 }
 0xc3f   :  { %v8528_v28 = vpop.eup %8527  ;;  %8547 = vpow2.f32 %v6204_v12 }
 0xc40   :  { %v8530_v48 = vpop.eup %8529  ;;  %v3801_v31 = vadd.f32 1.0, %v8528_v28  ;;  %8549 = vpow2.f32 %v6203_v26 }
 0xc41   :  { %v8532_v33 = vpop.eup %8531  ;;  %v3800_v35 = vadd.f32 1.0, %v8530_v48 }
 0xc42   :  { %v8534_v37 = vpop.eup %8533  ;;  %8551 = vrcp.f32 %v3801_v31  ;;  %v3799_v58 = vadd.f32 1.0, %v8532_v33 }
 0xc43   :  { %v8536_v38 = vpop.eup %8535  ;;  %8553 = vrcp.f32 %v3800_v35  ;;  %v3798_v20 = vadd.f32 1.0, %v8534_v37 }
 0xc44   :  { %v8538_v25 = vpop.eup %8537  ;;  %v3803_v29 = vadd.f32 1.0, %v8536_v38  ;;  %8555 = vpow2.f32 %v6206_v34 }
 0xc45   :  { %v3802_v59 = vadd.f32 1.0, %v8538_v25  ;;  %8557 = vpow2.f32 %v6205_v36  ;;  %v8540_v53 = vpop.eup %8539 }
 0xc46   :  { %8559 = vrcp.f32 %v3803_v29  ;;  %v8542_v9 = vpop.eup %8541 }
 0xc47   :  { %8561 = vrcp.f32 %v3802_v59  ;;  %v8544_v12 = vpop.eup %8543 }
 0xc48   :  { %8563 = vrcp.f32 %v3799_v58  ;;  %v8546_v43 = vpop.eup %8545  ;;  %v3889_v58 = vmul.f32 %v8544_v12, %v10108_v10 }
 0xc49   :  { %8565 = vrcp.f32 %v3798_v20  ;;  %v8548_v26 = vpop.eup %8547 }
 0xc4a   :  { %8567 = vrcp.f32 %v3795_v11  ;;  %v8550_v45 = vpop.eup %8549  ;;  %v3805_v40 = vadd.f32 1.0, %v8548_v26  ;;  %v3888_v11 = vmul.f32 %v8546_v43, %v10110_v44 }
 0xc4b   :  { %8569 = vrcp.f32 %v3794_v63  ;;  %v3804_v47 = vadd.f32 1.0, %v8550_v45 }
 0xc4c   :  { %v8552_v28 = vpop.eup %8551  ;;  %8571 = vrcp.f32 %v3805_v40 }
 0xc4d   :  { %v8554_v48 = vpop.eup %8553  ;;  %v3849_v31 = vmul.f32 2.0, %v8552_v28  ;;  %8573 = vrcp.f32 %v3804_v47 }
 0xc4e   :  { %v8556_v34 = vpop.eup %8555  ;;  %v3848_v33 = vmul.f32 2.0, %v8554_v48 }
 0xc4f   :  { %v8558_v35 = vpop.eup %8557  ;;  %v6216_v36 = vadd.f32 -1.0, %v3849_v31  ;;  %v3807_v31 = vadd.f32 1.0, %v8556_v34 }
 0xc50   :  { %v8560_v37 = vpop.eup %8559  ;;  %v6215_v38 = vadd.f32 -1.0, %v3848_v33  ;;  %v3806_v33 = vadd.f32 1.0, %v8558_v35 }
 0xc51   :  { %v8562_v25 = vpop.eup %8561  ;;  %v3893_v29 = vmul.f32 %v8540_v53, %v6216_v36  ;;  %v3851_v20 = vmul.f32 2.0, %v8560_v37 }
 0xc52   :  { %v8564_v59 = vpop.eup %8563  ;;  %v3892_v63 = vmul.f32 %v8542_v9, %v6215_v38  ;;  %v3850_v23 = vmul.f32 2.0, %v8562_v25 }
 0xc53   :  { %v8566_v21 = vpop.eup %8565  ;;  %v10268_v28 = vadd.f32 %v3893_v29, %v3889_v58  ;;  %v6218_v48 = vadd.f32 -1.0, %v3851_v20  ;;  %v3891_v53 = vmul.f32 %v8564_v59, %v10116_v46 }
 0xc54   :  { %v8568_v26 = vpop.eup %8567  ;;  %v10270_v4 = vadd.f32 %v3892_v63, %v3888_v11  ;;  %v6217_v45 = vadd.f32 -1.0, %v3850_v23  ;;  %v3890_v9 = vmul.f32 %v8566_v21, %v10118_v3 }
 0xc55   :  { %v8570_v10 = vpop.eup %8569  ;;  %8575 = vtanh.f32 %v10268_v28  ;;  %v3895_v44 = vmul.f32 %v8568_v26, %v6218_v48 }
 0xc56   :  { %8577 = vtanh.f32 %v10270_v4  ;;  %v3894_v12 = vmul.f32 %v8570_v10, %v6217_v45  ;;  %v8572_v23 = vpop.eup %8571 }
 0xc57   :  { %v10276_v43 = vadd.f32 %v3895_v44, %v3891_v53  ;;  %8579 = vrcp.f32 %v3807_v31  ;;  %v8574_v35 = vpop.eup %8573 }
 0xc58   :  { %v10278_v34 = vadd.f32 %v3894_v12, %v3890_v9  ;;  %8581 = vrcp.f32 %v3806_v33 }
 0xc59   :  { %8583 = vtanh.f32 %v10276_v43 }
 0xc5a   :  { %8585 = vtanh.f32 %v10278_v34 }
 0xc5f   :  { %v8576_v36 = vpop.eup %8575 }
 0xc60   :  { %v8578_v46 = vpop.eup %8577  ;;  %v3905_v40 = vmul.f32 %v8576_v36, %v8572_v23 }
 0xc61   :  { %v8580_v37 = vpop.eup %8579  ;;  %v3904_v38 = vmul.f32 %v8578_v46, %v8574_v35 }
 0xc62   :  { %v8582_v47 = vpop.eup %8581  ;;  %v10283_v21 = vadd.f32 %v3905_v40, %v10126_v30 }
 0xc63   :  { %v8584_v3 = vpop.eup %8583  ;;  %v10286_v25 = vadd.f32 %v3904_v38, %v10128_v32  ;;  %v7982_v58 = vpack.c.bf16 %v3905_v40, %v3904_v38 }
 0xc64   :  { %v8586_v29 = vpop.eup %8585  ;;  %v3907_v20 = vmul.f32 %v8584_v3, %v8580_v37 }
 0xc65   :  { %7983 = vmatprep.subr.bf16.mxu1 %v7982_v58  ;;  %v3906_v59 = vmul.f32 %v8586_v29, %v8582_v47 }
 0xc66   :  { %7985 = vmatpush3.bf16.msra.mxu1 %v7982_v58  ;;  %v10289_v11 = vadd.f32 %v3907_v20, %v10134_v27 }
 0xc67   :  { %v10292_v63 = vadd.f32 %v3906_v59, %v10136_v41  ;;  %v7986_v48 = vpack.c.bf16 %v3907_v20, %v3906_v59 }
 0xc69   :  { %7987 = vmatprep.subr.bf16.mxu1 %v7986_v48 }
 0xc6a   :  { %7989 = vmatpush3.bf16.msra.mxu1 %v7986_v48 }
 0xc6d   :  { %7519 = vmatmul.mubr.msk.f32.vlgmr.msra.gmra.mrb[36].mxu1 %vm2483_vm12, %v10141_v13 }
 0xc6e   :  { %7521 = vmatprep.mubr.msk.f32.mxu1 %vm2483_vm12, %v10148_v1 }
 0xc71   :  { %7522 = vmatmul.mubr.msk.f32.gmra.mrb[38].mxu1 %vm2483_vm12, %v10155_v17 }
 0xc72   :  { %7524 = vmatprep.mubr.msk.f32.mxu1 %vm2483_vm12, %v10162_v57 }
 0xc75   :  { %7525 = vmatmul.mubr.msk.f32.gmra.mrb[40].mxu1 %vm2483_vm12, %v10169_v18 }
 0xc76   :  { %7527 = vmatprep.mubr.msk.f32.mxu1 %vm2483_vm12, %v10176_v2 }
 0xc79   :  { %7528 = vmatmul.mubr.msk.f32.gmra.mrb[42].mxu1 %vm2483_vm12, %v10183_v61 }
 0xc7a   :  { %7530 = vmatprep.mubr.msk.f32.mxu1 %vm2483_vm12, %v10190_v7 }
 0xc7d   :  { %7531 = vmatmul.mubr.msk.f32.gmra.mrb[44].mxu1 %vm2483_vm12, %v10197_v14 }
 0xc7e   :  { %7533 = vmatprep.mubr.msk.f32.mxu1 %vm2483_vm12, %v10204_v22 }
 0xc81   :  { %7534 = vmatmul.mubr.msk.f32.gmra.mrb[46].mxu1 %vm2483_vm12, %v10211_v24 }
 0xc82   :  { %7536 = vmatprep.mubr.msk.f32.mxu1 %vm2483_vm12, %v10218_v54 }
 0xc85   :  { %7537 = vmatmul.mubr.msk.f32.gmra.mrb[48].mxu1 %vm2483_vm12, %v10225_v5 }
 0xc86   :  { %7539 = vmatprep.mubr.msk.f32.mxu1 %vm2483_vm12, %v10232_v15 }
 0xc89   :  { %7540 = vmatmul.mubr.msk.f32.gmra.mrb[50].mxu1 %vm2483_vm12, %v10239_v42 }
 0xc8a   :  { %7582 = vmatprep.mubr.msk.f32.mxu1 %vm2483_vm12, %v10246_v39 }
 0xd40   :  { %v7520_v30 = vpop.f32.mrb[36].mxu1 }
 0xd41   :  { %v3978_v32 = vpop.f32.mrb[37].mxu1  ;;  %v8099_v31 = vadd.f32 %v7520_v30, %v9918_v55 }
 0xd42   :  { %v8100_v26 = vadd.f32 %v3978_v32, %v9920_v56 }
 0xd43   :  { %v6244_v53 = vmul.f32 -1.442695, %v8099_v31 }
 0xd44   :  { %v7523_v27 = vpop.f32.mrb[38].mxu1  ;;  %v6243_v9 = vmul.f32 -1.442695, %v8100_v26 }
 0xd45   :  { %v3988_v41 = vpop.f32.mrb[39].mxu1  ;;  %8587 = vpow2.f32 %v6244_v53  ;;  %v8101_v46 = vadd.f32 %v7523_v27, %v9930_v6 }
 0xd46   :  { %8589 = vpow2.f32 %v6243_v9  ;;  %v8102_v40 = vadd.f32 %v3988_v41, %v9932_v8 }
 0xd47   :  { %v6246_v3 = vmul.f32 -1.442695, %v8101_v46 }
 0xd48   :  { %v7526_v45 = vpop.f32.mrb[40].mxu1  ;;  %v6245_v20 = vmul.f32 -1.442695, %v8102_v40 }
 0xd49   :  { %v8103_v33 = vadd.f32 %v7526_v45, %v9922_v60  ;;  %v3998_v10 = vpop.f32.mrb[41].mxu1 }
 0xd4a   :  { %v8104_v44 = vadd.f32 %v3998_v10, %v9924_v62 }
 0xd4b   :  { %v6248_v12 = vmul.f32 -1.442695, %v8103_v33 }
 0xd4c   :  { %v7529_v23 = vpop.f32.mrb[42].mxu1  ;;  %v6247_v35 = vmul.f32 -1.442695, %v8104_v44 }
 0xd4d   :  { %v4008_v36 = vpop.f32.mrb[43].mxu1  ;;  %8591 = vpow2.f32 %v6248_v12  ;;  %v8105_v58 = vadd.f32 %v7529_v23, %v9936_v16 }
 0xd4e   :  { %8593 = vpow2.f32 %v6247_v35  ;;  %v8106_v59 = vadd.f32 %v4008_v36, %v9939_v19 }
 0xd4f   :  { %8595 = vpow2.f32 %v6246_v3  ;;  %v6250_v26 = vmul.f32 -1.442695, %v8105_v58  ;;  %v8588_v44 = vpop.eup %8587  ;;  %v10730_v58 = vld [vmem:[#allocation7_spill] sm:$0xff] }
 0xd50   :  { %v7532_v37 = vpop.f32.mrb[44].mxu1  ;;  %8597 = vpow2.f32 %v6245_v20  ;;  %v6249_v10 = vmul.f32 -1.442695, %v8106_v59  ;;  %v8590_v23 = vpop.eup %8589 }
 0xd51   :  { %v8107_v38 = vadd.f32 %v7532_v37, %v9912_v52  ;;  %v4018_v47 = vpop.f32.mrb[45].mxu1  ;;  %v4137_v3 = vadd.f32 1.0, %v8590_v23 }
 0xd52   :  { %v8108_v29 = vadd.f32 %v4018_v47, %v9908_v50 }
 0xd53   :  { %v6240_v48 = vmul.f32 -2.0, %v8107_v38  ;;  %v4138_v38 = vadd.f32 1.0, %v8588_v44 }
 0xd54   :  { %v6239_v30 = vmul.f32 -2.0, %v8108_v29  ;;  %v7535_v32 = vpop.f32.mrb[46].mxu1 }
 0xd55   :  { %v4123_v27 = vmul.f32 1.442695, %v6240_v48  ;;  %v8109_v41 = vadd.f32 %v7535_v32, %v9910_v51  ;;  %v4028_v31 = vpop.f32.mrb[47].mxu1 }
 0xd56   :  { %v4121_v45 = vmul.f32 1.442695, %v6239_v30  ;;  %v8110_v33 = vadd.f32 %v4028_v31, %v9906_v49 }
 0xd57   :  { %v6242_v53 = vmul.f32 -2.0, %v8109_v41  ;;  %8599 = vpow2.f32 %v4123_v27  ;;  %v8592_v46 = vpop.eup %8591  ;;  %v10731_v27 = vld [vmem:[#allocation8_spill] sm:$0xff] }
 0xd58   :  { %v6241_v9 = vmul.f32 -2.0, %v8110_v33  ;;  %v7538_v12 = vpop.f32.mrb[48].mxu1  ;;  %8601 = vpow2.f32 %v4121_v45  ;;  %v8594_v37 = vpop.eup %8593  ;;  %v4142_v59 = vadd.f32 1.0, %v8592_v46  ;;  %v10732_v45 = vld [vmem:[#allocation9_spill] sm:$0xff] }
 0xd59   :  { %v4127_v35 = vmul.f32 1.442695, %v6242_v53  ;;  %v4038_v36 = vpop.f32.mrb[49].mxu1  ;;  %8603 = vpow2.f32 %v6250_v26  ;;  %v8111_v47 = vadd.f32 %v7538_v12, %v9946_v0  ;;  %v4141_v30 = vadd.f32 1.0, %v8594_v37  ;;  %v8596_v31 = vpop.eup %8595 }
 0xd5a   :  { %v4125_v40 = vmul.f32 1.442695, %v6241_v9  ;;  %8605 = vpow2.f32 %v6249_v10  ;;  %v8112_v29 = vadd.f32 %v4038_v36, %v10730_v58  ;;  %v8598_v10 = vpop.eup %8597 }
 0xd5b   :  { %8607 = vpow2.f32 %v4127_v35  ;;  %v6252_v32 = vmul.f32 -1.442695, %v8111_v47 }
 0xd5c   :  { %v7541_v20 = vpop.f32.mrb[50].mxu1  ;;  %8609 = vpow2.f32 %v4125_v40  ;;  %v6251_v26 = vmul.f32 -1.442695, %v8112_v29 }
 0xd5d   :  { %v4048_v48 = vpop.f32.mrb[51].mxu1  ;;  %8611 = vrcp.f32 %v4138_v38  ;;  %v8113_v41 = vadd.f32 %v7541_v20, %v10731_v27 }
 0xd5e   :  { %8613 = vrcp.f32 %v4137_v3  ;;  %v8114_v33 = vadd.f32 %v4048_v48, %v10732_v45 }
 0xd5f   :  { %8615 = vrcp.f32 %v4142_v59  ;;  %v6254_v12 = vmul.f32 -1.442695, %v8113_v41  ;;  %v4140_v59 = vadd.f32 1.0, %v8596_v31 }
 0xd60   :  { %8617 = vrcp.f32 %v4141_v30  ;;  %v6253_v36 = vmul.f32 -1.442695, %v8114_v33  ;;  %v4139_v30 = vadd.f32 1.0, %v8598_v10 }
 0xd61   :  { %v8600_v53 = vpop.eup %8599  ;;  %8619 = vpow2.f32 %v6252_v32 }
 0xd62   :  { %v8602_v44 = vpop.eup %8601  ;;  %v4146_v9 = vadd.f32 1.0, %v8600_v53  ;;  %8621 = vpow2.f32 %v6251_v26 }
 0xd63   :  { %v8604_v23 = vpop.eup %8603  ;;  %v4145_v35 = vadd.f32 1.0, %v8602_v44 }
 0xd64   :  { %v8606_v46 = vpop.eup %8605  ;;  %8623 = vrcp.f32 %v4146_v9  ;;  %v4144_v38 = vadd.f32 1.0, %v8604_v23 }
 0xd65   :  { %v8608_v40 = vpop.eup %8607  ;;  %8625 = vrcp.f32 %v4145_v35  ;;  %v4143_v3 = vadd.f32 1.0, %v8606_v46 }
 0xd66   :  { %v8610_v37 = vpop.eup %8609  ;;  %v4148_v47 = vadd.f32 1.0, %v8608_v40  ;;  %8627 = vpow2.f32 %v6254_v12 }
 0xd67   :  { %v4147_v29 = vadd.f32 1.0, %v8610_v37  ;;  %8629 = vpow2.f32 %v6253_v36  ;;  %v8612_v20 = vpop.eup %8611 }
 0xd68   :  { %8631 = vrcp.f32 %v4148_v47  ;;  %v8614_v48 = vpop.eup %8613 }
 0xd69   :  { %8633 = vrcp.f32 %v4147_v29  ;;  %v8616_v32 = vpop.eup %8615 }
 0xd6a   :  { %8635 = vrcp.f32 %v4144_v38  ;;  %v8618_v41 = vpop.eup %8617  ;;  %v4234_v38 = vmul.f32 %v8616_v32, %v10268_v28 }
 0xd6b   :  { %8637 = vrcp.f32 %v4143_v3  ;;  %v8620_v26 = vpop.eup %8619 }
 0xd6c   :  { %8639 = vrcp.f32 %v4140_v59  ;;  %v8622_v33 = vpop.eup %8621  ;;  %v4150_v31 = vadd.f32 1.0, %v8620_v26  ;;  %v4233_v59 = vmul.f32 %v8618_v41, %v10270_v4 }
 0xd6d   :  { %8641 = vrcp.f32 %v4139_v30  ;;  %v4149_v10 = vadd.f32 1.0, %v8622_v33 }
 0xd6e   :  { %v8624_v53 = vpop.eup %8623  ;;  %8643 = vrcp.f32 %v4150_v31 }
 0xd6f   :  { %v8626_v44 = vpop.eup %8625  ;;  %v4194_v9 = vmul.f32 2.0, %v8624_v53  ;;  %8645 = vrcp.f32 %v4149_v10 }
 0xd70   :  { %v8628_v12 = vpop.eup %8627  ;;  %v4193_v23 = vmul.f32 2.0, %v8626_v44 }
 0xd71   :  { %v8630_v35 = vpop.eup %8629  ;;  %v6264_v36 = vadd.f32 -1.0, %v4194_v9  ;;  %v4152_v9 = vadd.f32 1.0, %v8628_v12 }
 0xd72   :  { %v8632_v46 = vpop.eup %8631  ;;  %v6263_v40 = vadd.f32 -1.0, %v4193_v23  ;;  %v4151_v23 = vadd.f32 1.0, %v8630_v35 }
 0xd73   :  { %v8634_v37 = vpop.eup %8633  ;;  %v4238_v47 = vmul.f32 %v8612_v20, %v6264_v36  ;;  %v4196_v3 = vmul.f32 2.0, %v8632_v46 }
 0xd74   :  { %v8636_v29 = vpop.eup %8635  ;;  %v4237_v30 = vmul.f32 %v8614_v48, %v6263_v40  ;;  %v4195_v45 = vmul.f32 2.0, %v8634_v37 }
 0xd75   :  { %v8638_v27 = vpop.eup %8637  ;;  %v10344_v53 = vadd.f32 %v4238_v47, %v4234_v38  ;;  %v6266_v44 = vadd.f32 -1.0, %v4196_v3  ;;  %v4236_v20 = vmul.f32 %v8636_v29, %v10276_v43 }
 0xd76   :  { %v8640_v26 = vpop.eup %8639  ;;  %v10346_v58 = vadd.f32 %v4237_v30, %v4233_v59  ;;  %v6265_v33 = vadd.f32 -1.0, %v4195_v45  ;;  %v4235_v48 = vmul.f32 %v8638_v27, %v10278_v34 }
 0xd77   :  { %v8642_v28 = vpop.eup %8641  ;;  %8647 = vtanh.f32 %v10344_v53  ;;  %v4240_v4 = vmul.f32 %v8640_v26, %v6266_v44 }
 0xd78   :  { %8649 = vtanh.f32 %v10346_v58  ;;  %v4239_v32 = vmul.f32 %v8642_v28, %v6265_v33  ;;  %v8644_v45 = vpop.eup %8643 }
 0xd79   :  { %v10352_v41 = vadd.f32 %v4240_v4, %v4236_v20  ;;  %8651 = vrcp.f32 %v4152_v9  ;;  %v8646_v35 = vpop.eup %8645 }
 0xd7a   :  { %v10354_v12 = vadd.f32 %v4239_v32, %v4235_v48  ;;  %8653 = vrcp.f32 %v4151_v23 }
 0xd7b   :  { %8655 = vtanh.f32 %v10352_v41 }
 0xd7c   :  { %8657 = vtanh.f32 %v10354_v12 }
 0xd81   :  { %v8648_v36 = vpop.eup %8647 }
 0xd82   :  { %v8650_v43 = vpop.eup %8649  ;;  %v4250_v31 = vmul.f32 %v8648_v36, %v8644_v45 }
 0xd83   :  { %v8652_v46 = vpop.eup %8651  ;;  %v4249_v40 = vmul.f32 %v8650_v43, %v8646_v35 }
 0xd84   :  { %v8654_v10 = vpop.eup %8653  ;;  %v10359_v34 = vadd.f32 %v4250_v31, %v10283_v21 }
 0xd85   :  { %v8656_v27 = vpop.eup %8655  ;;  %v10362_v37 = vadd.f32 %v4249_v40, %v10286_v25  ;;  %v7990_v38 = vpack.c.bf16 %v4250_v31, %v4249_v40 }
 0xd86   :  { %v8658_v47 = vpop.eup %8657  ;;  %v4252_v3 = vmul.f32 %v8656_v27, %v8652_v46 }
 0xd87   :  { %7991 = vmatprep.subr.bf16.mxu0 %v7990_v38  ;;  %v4251_v29 = vmul.f32 %v8658_v47, %v8654_v10 }
 0xd88   :  { %7993 = vmatpush3.bf16.msra.mxu0 %v7990_v38  ;;  %v10365_v59 = vadd.f32 %v4252_v3, %v10289_v11 }
 0xd89   :  { %v10368_v30 = vadd.f32 %v4251_v29, %v10292_v63  ;;  %v7994_v44 = vpack.c.bf16 %v4252_v3, %v4251_v29 }
 0xd8b   :  { %7995 = vmatprep.subr.bf16.mxu0 %v7994_v44 }
 0xd8c   :  { %7997 = vmatpush3.bf16.msra.mxu0 %v7994_v44 }
 0xd8f   :  { %7551 = vmatmul.mubr.msk.f32.vlgmr.msra.gmra.mrb[38].mxu0 %vm2483_vm12, %v10141_v13 }
 0xd90   :  { %7553 = vmatprep.mubr.msk.f32.mxu0 %vm2483_vm12, %v10148_v1 }
 0xd93   :  { %7554 = vmatmul.mubr.msk.f32.gmra.mrb[40].mxu0 %vm2483_vm12, %v10155_v17 }
 0xd94   :  { %7556 = vmatprep.mubr.msk.f32.mxu0 %vm2483_vm12, %v10162_v57 }
 0xd97   :  { %7557 = vmatmul.mubr.msk.f32.gmra.mrb[42].mxu0 %vm2483_vm12, %v10169_v18 }
 0xd98   :  { %7559 = vmatprep.mubr.msk.f32.mxu0 %vm2483_vm12, %v10176_v2 }
 0xd9b   :  { %7560 = vmatmul.mubr.msk.f32.gmra.mrb[44].mxu0 %vm2483_vm12, %v10183_v61 }
 0xd9c   :  { %7562 = vmatprep.mubr.msk.f32.mxu0 %vm2483_vm12, %v10190_v7 }
 0xd9f   :  { %7563 = vmatmul.mubr.msk.f32.gmra.mrb[46].mxu0 %vm2483_vm12, %v10197_v14 }
 0xda0   :  { %7565 = vmatprep.mubr.msk.f32.mxu0 %vm2483_vm12, %v10204_v22 }
 0xda3   :  { %7566 = vmatmul.mubr.msk.f32.gmra.mrb[48].mxu0 %vm2483_vm12, %v10211_v24 }
 0xda4   :  { %7568 = vmatprep.mubr.msk.f32.mxu0 %vm2483_vm12, %v10218_v54 }
 0xda7   :  { %7569 = vmatmul.mubr.msk.f32.gmra.mrb[50].mxu0 %vm2483_vm12, %v10225_v5 }
 0xda8   :  { %7571 = vmatprep.mubr.msk.f32.mxu0 %vm2483_vm12, %v10232_v15 }
 0xdab   :  { %7572 = vmatmul.mubr.msk.f32.gmra.mrb[52].mxu0 %vm2483_vm12, %v10239_v42 }
 0xdac   :  { %7614 = vmatprep.mubr.msk.f32.mxu0 %vm2483_vm12, %v10246_v39 }
 0xe62   :  { %v7552_v13 = vpop.f32.mrb[38].mxu0 }
 0xe63   :  { %v4323_v1 = vpop.f32.mrb[39].mxu0  ;;  %v8115_v18 = vadd.f32 %v7552_v13, %v9918_v55 }
 0xe64   :  { %v8116_v2 = vadd.f32 %v4323_v1, %v9920_v56 }
 0xe65   :  { %v6292_v22 = vmul.f32 -1.442695, %v8115_v18 }
 0xe66   :  { %v7555_v17 = vpop.f32.mrb[40].mxu0  ;;  %v6291_v54 = vmul.f32 -1.442695, %v8116_v2 }
 0xe67   :  { %v4333_v57 = vpop.f32.mrb[41].mxu0  ;;  %8659 = vpow2.f32 %v6292_v22  ;;  %v8117_v21 = vadd.f32 %v7555_v17, %v9930_v6 }
 0xe68   :  { %8661 = vpow2.f32 %v6291_v54  ;;  %v8118_v25 = vadd.f32 %v4333_v57, %v9932_v8 }
 0xe69   :  { %v6294_v26 = vmul.f32 -1.442695, %v8117_v21 }
 0xe6a   :  { %v7558_v61 = vpop.f32.mrb[42].mxu0  ;;  %v6293_v28 = vmul.f32 -1.442695, %v8118_v25  ;;  %v10735_v25 = vld [vmem:[#allocation9_spill] sm:$0xff] }
 0xe6b   :  { %v8119_v7 = vadd.f32 %v7558_v61, %v9922_v60  ;;  %v4343_v14 = vpop.f32.mrb[43].mxu0  ;;  %v10733_v61 = vld [vmem:[#allocation7_spill] sm:$0xff] }
 0xe6c   :  { %v8120_v24 = vadd.f32 %v4343_v14, %v9924_v62 }
 0xe6d   :  { %v6296_v5 = vmul.f32 -1.442695, %v8119_v7 }
 0xe6e   :  { %v7561_v15 = vpop.f32.mrb[44].mxu0  ;;  %v6295_v42 = vmul.f32 -1.442695, %v8120_v24 }
 0xe6f   :  { %v4353_v39 = vpop.f32.mrb[45].mxu0  ;;  %8663 = vpow2.f32 %v6296_v5  ;;  %v8121_v33 = vadd.f32 %v7561_v15, %v9936_v16  ;;  %v10734_v15 = vld [vmem:[#allocation8_spill] sm:$0xff] }
 0xe70   :  { %8665 = vpow2.f32 %v6295_v42  ;;  %v8122_v20 = vadd.f32 %v4353_v39, %v9939_v19 }
 0xe71   :  { %8667 = vpow2.f32 %v6294_v26  ;;  %v6298_v43 = vmul.f32 -1.442695, %v8121_v33  ;;  %v8660_v27 = vpop.eup %8659 }
 0xe72   :  { %v7564_v11 = vpop.f32.mrb[46].mxu0  ;;  %8669 = vpow2.f32 %v6293_v28  ;;  %v6297_v40 = vmul.f32 -1.442695, %v8122_v20  ;;  %v8662_v3 = vpop.eup %8661  ;;  %v4483_v57 = vadd.f32 1.0, %v8660_v27 }
 0xe73   :  { %v8123_v63 = vadd.f32 %v7564_v11, %v9912_v52  ;;  %v4363_v9 = vpop.f32.mrb[47].mxu0  ;;  %v4482_v2 = vadd.f32 1.0, %v8662_v3 }
 0xe74   :  { %v8124_v23 = vadd.f32 %v4363_v9, %v9908_v50 }
 0xe75   :  { %v6288_v4 = vmul.f32 -2.0, %v8123_v63 }
 0xe76   :  { %v6287_v48 = vmul.f32 -2.0, %v8124_v23  ;;  %v7567_v32 = vpop.f32.mrb[48].mxu0 }
 0xe77   :  { %v4468_v45 = vmul.f32 1.442695, %v6288_v4  ;;  %v8125_v35 = vadd.f32 %v7567_v32, %v9910_v51  ;;  %v4373_v36 = vpop.f32.mrb[49].mxu0 }
 0xe78   :  { %v4466_v31 = vmul.f32 1.442695, %v6287_v48  ;;  %v8126_v46 = vadd.f32 %v4373_v36, %v9906_v49 }
 0xe79   :  { %v6290_v10 = vmul.f32 -2.0, %v8125_v35  ;;  %8671 = vpow2.f32 %v4468_v45  ;;  %v8664_v13 = vpop.eup %8663 }
 0xe7a   :  { %v6289_v38 = vmul.f32 -2.0, %v8126_v46  ;;  %v7570_v47 = vpop.f32.mrb[50].mxu0  ;;  %8673 = vpow2.f32 %v4466_v31  ;;  %v8666_v17 = vpop.eup %8665  ;;  %v4487_v22 = vadd.f32 1.0, %v8664_v13 }
 0xe7b   :  { %v4472_v29 = vmul.f32 1.442695, %v6290_v10  ;;  %v4383_v44 = vpop.f32.mrb[51].mxu0  ;;  %8675 = vpow2.f32 %v6298_v43  ;;  %v8127_v18 = vadd.f32 %v7570_v47, %v9946_v0  ;;  %v4486_v54 = vadd.f32 1.0, %v8666_v17  ;;  %v8668_v39 = vpop.eup %8667 }
 0xe7c   :  { %v4470_v1 = vmul.f32 1.442695, %v6289_v38  ;;  %8677 = vpow2.f32 %v6297_v40  ;;  %v8128_v7 = vadd.f32 %v4383_v44, %v10733_v61  ;;  %v8670_v63 = vpop.eup %8669  ;;  %v4485_v40 = vadd.f32 1.0, %v8668_v39 }
 0xe7d   :  { %8679 = vpow2.f32 %v4472_v29  ;;  %v6300_v5 = vmul.f32 -1.442695, %v8127_v18  ;;  %v4484_v27 = vadd.f32 1.0, %v8670_v63 }
 0xe7e   :  { %v7573_v14 = vpop.f32.mrb[52].mxu0  ;;  %8681 = vpow2.f32 %v4470_v1  ;;  %v6299_v21 = vmul.f32 -1.442695, %v8128_v7 }
 0xe7f   :  { %v4393_v24 = vpop.f32.mrb[53].mxu0  ;;  %8683 = vrcp.f32 %v4483_v57  ;;  %v8129_v42 = vadd.f32 %v7573_v14, %v10734_v15 }
 0xe80   :  { %8685 = vrcp.f32 %v4482_v2  ;;  %v8130_v11 = vadd.f32 %v4393_v24, %v10735_v25 }
 0xe81   :  { %8687 = vrcp.f32 %v4487_v22  ;;  %v6302_v23 = vmul.f32 -1.442695, %v8129_v42 }
 0xe82   :  { %8689 = vrcp.f32 %v4486_v54  ;;  %v6301_v4 = vmul.f32 -1.442695, %v8130_v11 }
 0xe83   :  { %v8672_v9 = vpop.eup %8671  ;;  %8691 = vpow2.f32 %v6300_v5 }
 0xe84   :  { %v8674_v26 = vpop.eup %8673  ;;  %v4491_v33 = vadd.f32 1.0, %v8672_v9  ;;  %8693 = vpow2.f32 %v6299_v21 }
 0xe85   :  { %v8676_v28 = vpop.eup %8675  ;;  %v4490_v20 = vadd.f32 1.0, %v8674_v26 }
 0xe86   :  { %v8678_v48 = vpop.eup %8677  ;;  %8695 = vrcp.f32 %v4491_v33  ;;  %v4489_v35 = vadd.f32 1.0, %v8676_v28 }
 0xe87   :  { %v8680_v32 = vpop.eup %8679  ;;  %8697 = vrcp.f32 %v4490_v20  ;;  %v4488_v43 = vadd.f32 1.0, %v8678_v48 }
 0xe88   :  { %v8682_v45 = vpop.eup %8681  ;;  %v4493_v36 = vadd.f32 1.0, %v8680_v32  ;;  %8699 = vpow2.f32 %v6302_v23 }
 0xe89   :  { %v4492_v31 = vadd.f32 1.0, %v8682_v45  ;;  %8701 = vpow2.f32 %v6301_v4  ;;  %v8684_v46 = vpop.eup %8683 }
 0xe8a   :  { %8703 = vrcp.f32 %v4493_v36  ;;  %v8686_v10 = vpop.eup %8685 }
 0xe8b   :  { %8705 = vrcp.f32 %v4492_v31  ;;  %v8688_v38 = vpop.eup %8687 }
 0xe8c   :  { %8707 = vrcp.f32 %v4489_v35  ;;  %v8690_v47 = vpop.eup %8689  ;;  %v4579_v5 = vmul.f32 %v8688_v38, %v10344_v53 }
 0xe8d   :  { %8709 = vrcp.f32 %v4488_v43  ;;  %v8692_v3 = vpop.eup %8691  ;;  %v4578_v11 = vmul.f32 %v8690_v47, %v10346_v58 }
 0xe8e   :  { %8711 = vrcp.f32 %v4485_v40  ;;  %v8694_v29 = vpop.eup %8693  ;;  %v4495_v7 = vadd.f32 1.0, %v8692_v3 }
 0xe8f   :  { %8713 = vrcp.f32 %v4484_v27  ;;  %v4494_v24 = vadd.f32 1.0, %v8694_v29 }
 0xe90   :  { %v8696_v44 = vpop.eup %8695  ;;  %8715 = vrcp.f32 %v4495_v7 }
 0xe91   :  { %v8698_v13 = vpop.eup %8697  ;;  %v4539_v1 = vmul.f32 2.0, %v8696_v44  ;;  %8717 = vrcp.f32 %v4494_v24  ;;  %v10491_v24 = vld [vmem:[%s10698_s3 + $0x38] sm:$0xff] }
 0xe92   :  { %v8700_v17 = vpop.eup %8699  ;;  %v4538_v57 = vmul.f32 2.0, %v8698_v13 }
 0xe93   :  { %v8702_v18 = vpop.eup %8701  ;;  %v6312_v2 = vadd.f32 -1.0, %v4539_v1  ;;  %v4497_v28 = vadd.f32 1.0, %v8700_v17 }
 0xe94   :  { %v8704_v14 = vpop.eup %8703  ;;  %v6311_v22 = vadd.f32 -1.0, %v4538_v57  ;;  %v4496_v32 = vadd.f32 1.0, %v8702_v18 }
 0xe95   :  { %v8706_v54 = vpop.eup %8705  ;;  %v4583_v42 = vmul.f32 %v8684_v46, %v6312_v2  ;;  %v4541_v39 = vmul.f32 2.0, %v8704_v14  ;;  %v10477_v14 = vld [vmem:[%s10698_s3 + $0x28] sm:$0xff] }
 0xe96   :  { %v8708_v21 = vpop.eup %8707  ;;  %v4582_v63 = vmul.f32 %v8686_v10, %v6311_v22  ;;  %v4540_v9 = vmul.f32 2.0, %v8706_v54  ;;  %v10484_v22 = vld [vmem:[%s10698_s3 + $0x30] sm:$0xff]  ;;  %v10498_v54 = vld [vmem:[%s10698_s3 + $0x40] sm:$0xff] }
 0xe97   :  { %v8710_v26 = vpop.eup %8709  ;;  %v10420_v33 = vadd.f32 %v4583_v42, %v4579_v5  ;;  %v6314_v23 = vadd.f32 -1.0, %v4541_v39  ;;  %v4581_v45 = vmul.f32 %v8708_v21, %v10352_v41  ;;  %v10505_v5 = vld [vmem:[%s10698_s3 + $0x48] sm:$0xff]  ;;  %v10512_v42 = vld [vmem:[%s10698_s3 + $0x50] sm:$0xff]  ;;  %v10519_v39 = vld [vmem:[%s10698_s3 + $0x58] sm:$0xff] }
 0xe98   :  { %v8712_v20 = vpop.eup %8711  ;;  %v10422_v4 = vadd.f32 %v4582_v63, %v4578_v11  ;;  %v6313_v48 = vadd.f32 -1.0, %v4540_v9  ;;  %v4580_v35 = vmul.f32 %v8710_v26, %v10354_v12  ;;  %v10526_v21 = vld [vmem:[%s10698_s3 + $0x60] sm:$0xff]  ;;  %v10533_v11 = vld [vmem:[%s10698_s3 + $0x68] sm:$0xff]  ;;  %v10540_v63 = vld [vmem:[%s10698_s3 + $0x70] sm:$0xff] }
 0xe99   :  { %v8714_v53 = vpop.eup %8713  ;;  %8719 = vtanh.f32 %v10420_v33  ;;  %v4585_v58 = vmul.f32 %v8712_v20, %v6314_v23  ;;  %v10547_v9 = vld [vmem:[%s10698_s3 + $0x78] sm:$0xff] }
 0xe9a   :  { %8721 = vtanh.f32 %v10422_v4  ;;  %v4584_v36 = vmul.f32 %v8714_v53, %v6313_v48  ;;  %v8716_v46 = vpop.eup %8715 }
 0xe9b   :  { %v10428_v43 = vadd.f32 %v4585_v58, %v4581_v45  ;;  %8723 = vrcp.f32 %v4497_v28  ;;  %v8718_v40 = vpop.eup %8717 }
 0xe9c   :  { %v10430_v31 = vadd.f32 %v4584_v36, %v4580_v35  ;;  %8725 = vrcp.f32 %v4496_v32 }
 0xe9d   :  { %8727 = vtanh.f32 %v10428_v43 }
 0xe9e   :  { %8729 = vtanh.f32 %v10430_v31 }
 0xea3   :  { %v8720_v10 = vpop.eup %8719 }
 0xea4   :  { %v8722_v41 = vpop.eup %8721  ;;  %v4595_v27 = vmul.f32 %v8720_v10, %v8716_v46 }
 0xea5   :  { %v8724_v38 = vpop.eup %8723  ;;  %v4594_v47 = vmul.f32 %v8722_v41, %v8718_v40 }
 0xea6   :  { %v8726_v3 = vpop.eup %8725  ;;  %v10435_v12 = vadd.f32 %v4595_v27, %v10359_v34  ;;  %v10449_v34 = vld [vmem:[%s10698_s3 + $0x8] sm:$0xff] }
 0xea7   :  { %v8728_v29 = vpop.eup %8727  ;;  %v10438_v44 = vadd.f32 %v4594_v47, %v10362_v37  ;;  %v7998_v13 = vpack.c.bf16 %v4595_v27, %v4594_v47  ;;  %v10456_v37 = vld [vmem:[%s10698_s3 + $0x10] sm:$0xff] }
 0xea8   :  { %v8730_v1 = vpop.eup %8729  ;;  %v4597_v17 = vmul.f32 %v8728_v29, %v8724_v38 }
 0xea9   :  { %7999 = vmatprep.subr.bf16.mxu1 %v7998_v13  ;;  %v4596_v57 = vmul.f32 %v8730_v1, %v8726_v3 }
 0xeaa   :  { %8001 = vmatpush3.bf16.msra.mxu1 %v7998_v13  ;;  %v10441_v18 = vadd.f32 %v4597_v17, %v10365_v59  ;;  %v10463_v59 = vld [vmem:[%s10698_s3 + $0x18] sm:$0xff] }
 0xeab   :  { %v10444_v2 = vadd.f32 %v4596_v57, %v10368_v30  ;;  %v8002_v7 = vpack.c.bf16 %v4597_v17, %v4596_v57  ;;  %v10470_v30 = vld [vmem:[%s10698_s3 + $0x20] sm:$0xff] }
 0xead   :  { %8003 = vmatprep.subr.bf16.mxu1 %v8002_v7 }
 0xeae   :  { %8005 = vmatpush3.bf16.msra.mxu1 %v8002_v7 }
 0xeb1   :  { %7583 = vmatmul.mubr.msk.f32.vlgmr.msra.gmra.mrb[54].mxu1 %vm2483_vm12, %v10449_v34 }
 0xeb2   :  { %7585 = vmatprep.mubr.msk.f32.mxu1 %vm2483_vm12, %v10456_v37 }
 0xeb5   :  { %7586 = vmatmul.mubr.msk.f32.gmra.mrb[56].mxu1 %vm2483_vm12, %v10463_v59 }
 0xeb6   :  { %7588 = vmatprep.mubr.msk.f32.mxu1 %vm2483_vm12, %v10470_v30 }
 0xeb9   :  { %7589 = vmatmul.mubr.msk.f32.gmra.mrb[58].mxu1 %vm2483_vm12, %v10477_v14 }
 0xeba   :  { %7591 = vmatprep.mubr.msk.f32.mxu1 %vm2483_vm12, %v10484_v22 }
 0xebd   :  { %7592 = vmatmul.mubr.msk.f32.gmra.mrb[60].mxu1 %vm2483_vm12, %v10491_v24 }
 0xebe   :  { %7594 = vmatprep.mubr.msk.f32.mxu1 %vm2483_vm12, %v10498_v54 }
 0xec1   :  { %7595 = vmatmul.mubr.msk.f32.gmra.mrb[62].mxu1 %vm2483_vm12, %v10505_v5 }
 0xec2   :  { %7597 = vmatprep.mubr.msk.f32.mxu1 %vm2483_vm12, %v10512_v42 }
 0xec5   :  { %7598 = vmatmul.mubr.msk.f32.gmra.mrb[64].mxu1 %vm2483_vm12, %v10519_v39 }
 0xec6   :  { %7600 = vmatprep.mubr.msk.f32.mxu1 %vm2483_vm12, %v10526_v21 }
 0xec9   :  { %7601 = vmatmul.mubr.msk.f32.gmra.mrb[66].mxu1 %vm2483_vm12, %v10533_v11 }
 0xeca   :  { %7603 = vmatprep.mubr.msk.f32.mxu1 %vm2483_vm12, %v10540_v63 }
 0xecd   :  { %7604 = vmatmul.mubr.msk.f32.gmra.mrb[68].mxu1 %vm2483_vm12, %v10547_v9 }
 0xf84   :  { %v7584_v26 = vpop.f32.mrb[54].mxu1 }
 0xf85   :  { %v4668_v23 = vpop.f32.mrb[55].mxu1  ;;  %v8131_v48 = vadd.f32 %v7584_v26, %v9918_v55 }
 0xf86   :  { %v8132_v32 = vadd.f32 %v4668_v23, %v9920_v56 }
 0xf87   :  { %v6340_v35 = vmul.f32 -1.442695, %v8131_v48 }
 0xf88   :  { %v7587_v28 = vpop.f32.mrb[56].mxu1  ;;  %v6339_v46 = vmul.f32 -1.442695, %v8132_v32 }
 0xf89   :  { %v4678_v20 = vpop.f32.mrb[57].mxu1  ;;  %8731 = vpow2.f32 %v6340_v35  ;;  %v8133_v38 = vadd.f32 %v7587_v28, %v9930_v6 }
 0xf8a   :  { %8733 = vpow2.f32 %v6339_v46  ;;  %v8134_v47 = vadd.f32 %v4678_v20, %v9932_v8 }
 0xf8b   :  { %v6342_v1 = vmul.f32 -1.442695, %v8133_v38 }
 0xf8c   :  { %v7590_v53 = vpop.f32.mrb[58].mxu1  ;;  %v6341_v7 = vmul.f32 -1.442695, %v8134_v47 }
 0xf8d   :  { %v8135_v45 = vadd.f32 %v7590_v53, %v9922_v60  ;;  %v4688_v58 = vpop.f32.mrb[59].mxu1 }
 0xf8e   :  { %v8136_v36 = vadd.f32 %v4688_v58, %v9924_v62 }
 0xf8f   :  { %v6344_v40 = vmul.f32 -1.442695, %v8135_v45 }
 0xf90   :  { %v7593_v10 = vpop.f32.mrb[60].mxu1  ;;  %v6343_v41 = vmul.f32 -1.442695, %v8136_v36 }
 0xf91   :  { %v4698_v27 = vpop.f32.mrb[61].mxu1  ;;  %8735 = vpow2.f32 %v6344_v40  ;;  %v8137_v17 = vadd.f32 %v7593_v10, %v9936_v16 }
 0xf92   :  { %8737 = vpow2.f32 %v6343_v41  ;;  %v8138_v26 = vadd.f32 %v4698_v27, %v9939_v19 }
 0xf93   :  { %8739 = vpow2.f32 %v6342_v1  ;;  %v6346_v45 = vmul.f32 -1.442695, %v8137_v17  ;;  %v8732_v40 = vpop.eup %8731 }
 0xf94   :  { %v7596_v3 = vpop.f32.mrb[62].mxu1  ;;  %8741 = vpow2.f32 %v6341_v7  ;;  %v6345_v36 = vmul.f32 -1.442695, %v8138_v26  ;;  %v8734_v27 = vpop.eup %8733  ;;  %v4828_v1 = vadd.f32 1.0, %v8732_v40 }
 0xf95   :  { %v8139_v29 = vadd.f32 %v7596_v3, %v9912_v52  ;;  %v4708_v13 = vpop.f32.mrb[63].mxu1 }
 0xf96   :  { %v8140_v57 = vadd.f32 %v4708_v13, %v9908_v50 }
 0xf97   :  { %v6336_v23 = vmul.f32 -2.0, %v8139_v29 }
 0xf98   :  { %v6335_v48 = vmul.f32 -2.0, %v8140_v57  ;;  %v7599_v28 = vpop.f32.mrb[64].mxu1  ;;  %v4827_v57 = vadd.f32 1.0, %v8734_v27 }
 0xf99   :  { %v4813_v32 = vmul.f32 1.442695, %v6336_v23  ;;  %v8141_v20 = vadd.f32 %v7599_v28, %v9910_v51  ;;  %v4718_v53 = vpop.f32.mrb[65].mxu1 }
 0xf9a   :  { %v4811_v58 = vmul.f32 1.442695, %v6335_v48  ;;  %v8142_v35 = vadd.f32 %v4718_v53, %v9906_v49 }
 0xf9b   :  { %v6338_v46 = vmul.f32 -2.0, %v8141_v20  ;;  %8743 = vpow2.f32 %v4813_v32  ;;  %v8736_v3 = vpop.eup %8735 }
 0xf9c   :  { %v6337_v10 = vmul.f32 -2.0, %v8142_v35  ;;  %v7602_v41 = vpop.f32.mrb[66].mxu1  ;;  %8745 = vpow2.f32 %v4811_v58  ;;  %v8738_v13 = vpop.eup %8737  ;;  %v4832_v23 = vadd.f32 1.0, %v8736_v3 }
 0xf9d   :  { %v4817_v38 = vmul.f32 1.442695, %v6338_v46  ;;  %v4728_v47 = vpop.f32.mrb[67].mxu1  ;;  %8747 = vpow2.f32 %v6346_v45  ;;  %v8143_v17 = vadd.f32 %v7602_v41, %v9946_v0  ;;  %v4831_v28 = vadd.f32 1.0, %v8738_v13  ;;  %v8740_v53 = vpop.eup %8739 }
 0xf9e   :  { %v4815_v29 = vmul.f32 1.442695, %v6337_v10  ;;  %8749 = vpow2.f32 %v6345_v36  ;;  %v8144_v7 = vadd.f32 %v4728_v47, %v10733_v61  ;;  %v8742_v35 = vpop.eup %8741 }
 0xf9f   :  { %8751 = vpow2.f32 %v4817_v38  ;;  %v6348_v32 = vmul.f32 -1.442695, %v8143_v17 }
 0xfa0   :  { %v7605_v26 = vpop.f32.mrb[68].mxu1  ;;  %8753 = vpow2.f32 %v4815_v29  ;;  %v6347_v45 = vmul.f32 -1.442695, %v8144_v7 }
 0xfa1   :  { %v4738_v48 = vpop.f32.mrb[69].mxu1  ;;  %8755 = vrcp.f32 %v4828_v1  ;;  %v8145_v20 = vadd.f32 %v7605_v26, %v10734_v15  ;;  %v4830_v26 = vadd.f32 1.0, %v8740_v53 }
 0xfa2   :  { %8757 = vrcp.f32 %v4827_v57  ;;  %v8146_v58 = vadd.f32 %v4738_v48, %v10735_v25  ;;  %v4829_v48 = vadd.f32 1.0, %v8742_v35 }
 0xfa3   :  { %8759 = vrcp.f32 %v4832_v23  ;;  %v6350_v10 = vmul.f32 -1.442695, %v8145_v20 }
 0xfa4   :  { %8761 = vrcp.f32 %v4831_v28  ;;  %v6349_v38 = vmul.f32 -1.442695, %v8146_v58 }
 0xfa5   :  { %v8744_v36 = vpop.eup %8743  ;;  %8763 = vpow2.f32 %v6348_v32 }
 0xfa6   :  { %v8746_v46 = vpop.eup %8745  ;;  %v4836_v40 = vadd.f32 1.0, %v8744_v36  ;;  %8765 = vpow2.f32 %v6347_v45 }
 0xfa7   :  { %v8748_v41 = vpop.eup %8747  ;;  %v4835_v27 = vadd.f32 1.0, %v8746_v46 }
 0xfa8   :  { %v8750_v47 = vpop.eup %8749  ;;  %8767 = vrcp.f32 %v4836_v40  ;;  %v4834_v13 = vadd.f32 1.0, %v8748_v41 }
 0xfa9   :  { %v8752_v3 = vpop.eup %8751  ;;  %8769 = vrcp.f32 %v4835_v27  ;;  %v4833_v17 = vadd.f32 1.0, %v8750_v47 }
 0xfaa   :  { %v8754_v29 = vpop.eup %8753  ;;  %v4838_v1 = vadd.f32 1.0, %v8752_v3  ;;  %8771 = vpow2.f32 %v6350_v10 }
 0xfab   :  { %v4837_v57 = vadd.f32 1.0, %v8754_v29  ;;  %8773 = vpow2.f32 %v6349_v38  ;;  %v8756_v7 = vpop.eup %8755 }
 0xfac   :  { %8775 = vrcp.f32 %v4838_v1  ;;  %v8758_v23 = vpop.eup %8757 }
 0xfad   :  { %8777 = vrcp.f32 %v4837_v57  ;;  %v8760_v28 = vpop.eup %8759 }
 0xfae   :  { %8779 = vrcp.f32 %v4834_v13  ;;  %v8762_v32 = vpop.eup %8761  ;;  %v4924_v29 = vmul.f32 %v8760_v28, %v10420_v33 }
 0xfaf   :  { %8781 = vrcp.f32 %v4833_v17  ;;  %v8764_v20 = vpop.eup %8763  ;;  %v4923_v57 = vmul.f32 %v8762_v32, %v10422_v4 }
 0xfb0   :  { %8783 = vrcp.f32 %v4830_v26  ;;  %v8766_v45 = vpop.eup %8765  ;;  %v4840_v53 = vadd.f32 1.0, %v8764_v20 }
 0xfb1   :  { %8785 = vrcp.f32 %v4829_v48  ;;  %v4839_v35 = vadd.f32 1.0, %v8766_v45 }
 0xfb2   :  { %v8768_v58 = vpop.eup %8767  ;;  %8787 = vrcp.f32 %v4840_v53 }
 0xfb3   :  { %v8770_v36 = vpop.eup %8769  ;;  %v4884_v46 = vmul.f32 2.0, %v8768_v58  ;;  %8789 = vrcp.f32 %v4839_v35 }
 0xfb4   :  { %v8772_v40 = vpop.eup %8771  ;;  %v4883_v10 = vmul.f32 2.0, %v8770_v36 }
 0xfb5   :  { %v8774_v41 = vpop.eup %8773  ;;  %v6360_v27 = vadd.f32 -1.0, %v4884_v46  ;;  %v4842_v46 = vadd.f32 1.0, %v8772_v40 }
 0xfb6   :  { %v8776_v38 = vpop.eup %8775  ;;  %v6359_v47 = vadd.f32 -1.0, %v4883_v10  ;;  %v4841_v10 = vadd.f32 1.0, %v8774_v41 }
 0xfb7   :  { %v8778_v3 = vpop.eup %8777  ;;  %v4928_v13 = vmul.f32 %v8756_v7, %v6360_v27  ;;  %v4886_v1 = vmul.f32 2.0, %v8776_v38 }
 0xfb8   :  { %v8780_v17 = vpop.eup %8779  ;;  %v4927_v26 = vmul.f32 %v8758_v23, %v6359_v47  ;;  %v4885_v48 = vmul.f32 2.0, %v8778_v3 }
 0xfb9   :  { %v8782_v61 = vpop.eup %8781  ;;  %v10569_v58 = vadd.f32 %v4928_v13, %v4924_v29  ;;  %v6362_v36 = vadd.f32 -1.0, %v4886_v1  ;;  %v4926_v7 = vmul.f32 %v8780_v17, %v10428_v43 }
 0xfba   :  { %v8784_v20 = vpop.eup %8783  ;;  %v10571_v25 = vadd.f32 %v4927_v26, %v4923_v57  ;;  %v6361_v45 = vadd.f32 -1.0, %v4885_v48  ;;  %v4925_v23 = vmul.f32 %v8782_v61, %v10430_v31 }
 0xfbb   :  { %v8786_v33 = vpop.eup %8785  ;;  %8791 = vtanh.f32 %v10569_v58  ;;  %v4930_v4 = vmul.f32 %v8784_v20, %v6362_v36 }
 0xfbc   :  { %8793 = vtanh.f32 %v10571_v25  ;;  %v4929_v28 = vmul.f32 %v8786_v33, %v6361_v45  ;;  %v8788_v41 = vpop.eup %8787 }
 0xfbd   :  { %v10577_v32 = vadd.f32 %v4930_v4, %v4926_v7  ;;  %8795 = vrcp.f32 %v4842_v46  ;;  %v8790_v27 = vpop.eup %8789 }
 0xfbe   :  { %v10579_v40 = vadd.f32 %v4929_v28, %v4925_v23  ;;  %8797 = vrcp.f32 %v4841_v10 }
 0xfbf   :  { %8799 = vtanh.f32 %v10577_v32 }
 0xfc0   :  { %8801 = vtanh.f32 %v10579_v40 }
 0xfc5   :  { %v8792_v53 = vpop.eup %8791 }
 0xfc6   :  { %v8794_v43 = vpop.eup %8793  ;;  %v4940_v38 = vmul.f32 %v8792_v53, %v8788_v41 }
 0xfc7   :  { %v8796_v47 = vpop.eup %8795  ;;  %v4939_v35 = vmul.f32 %v8794_v43, %v8790_v27 }
 0xfc8   :  { %v8798_v3 = vpop.eup %8797  ;;  %v10584_v61 = vadd.f32 %v4940_v38, %v10435_v12  ;;  %v5296_v12 = vld [vmem:[%s10700_s5] sm:$0xff] }
 0xfc9   :  { %v8800_v31 = vpop.eup %8799  ;;  %v10587_v29 = vadd.f32 %v4939_v35, %v10438_v44  ;;  %v8006_v13 = vpack.c.bf16 %v4940_v38, %v4939_v35  ;;  %7646 = vmatprep.mubr.msk.f32.mxu1 %vm2483_vm12, %v5296_v12 }
 0xfca   :  { %v8802_v1 = vpop.eup %8801  ;;  %v4942_v17 = vmul.f32 %v8800_v31, %v8796_v47  ;;  %v10736_v31 = vld [vmem:[#allocation5_spill] sm:$0xff] }
 0xfcb   :  { %8007 = vmatprep.subr.bf16.mxu0 %v8006_v13  ;;  %v4941_v57 = vmul.f32 %v8802_v1, %v8798_v3 }
 0xfcc   :  { %8009 = vmatpush3.bf16.msra.mxu0 %v8006_v13  ;;  %v10590_v26 = vadd.f32 %v4942_v17, %v10441_v18  ;;  %v2480_v13 = vadd.f32 %v10736_v31, %v10734_v15 }
 0xfcd   :  { %v10593_v48 = vadd.f32 %v4941_v57, %v10444_v2  ;;  %v8010_v36 = vpack.c.bf16 %v4942_v17, %v4941_v57  ;;  %v10737_v17 = vld [vmem:[#allocation9_spill] sm:$0xff]  ;;  %v10738_v57 = vld [vmem:[#allocation6_spill] sm:$0xff] }
 0xfcf   :  { %8011 = vmatprep.subr.bf16.mxu0 %v8010_v36 }
 0xfd0   :  { %8013 = vmatpush3.bf16.msra.mxu0 %v8010_v36  ;;  %v2475_v36 = vadd.f32 %v10738_v57, %v10737_v17 }
 0xfd3   :  { %7615 = vmatmul.mubr.msk.f32.vlgmr.msra.gmra.mrb[56].mxu0 %vm2483_vm12, %v10449_v34 }
 0xfd4   :  { %7617 = vmatprep.mubr.msk.f32.mxu0 %vm2483_vm12, %v10456_v37 }
 0xfd7   :  { %7618 = vmatmul.mubr.msk.f32.gmra.mrb[58].mxu0 %vm2483_vm12, %v10463_v59 }
 0xfd8   :  { %7620 = vmatprep.mubr.msk.f32.mxu0 %vm2483_vm12, %v10470_v30 }
 0xfdb   :  { %7621 = vmatmul.mubr.msk.f32.gmra.mrb[60].mxu0 %vm2483_vm12, %v10477_v14 }
 0xfdc   :  { %7623 = vmatprep.mubr.msk.f32.mxu0 %vm2483_vm12, %v10484_v22 }
 0xfdf   :  { %7624 = vmatmul.mubr.msk.f32.gmra.mrb[62].mxu0 %vm2483_vm12, %v10491_v24 }
 0xfe0   :  { %7626 = vmatprep.mubr.msk.f32.mxu0 %vm2483_vm12, %v10498_v54 }
 0xfe3   :  { %7627 = vmatmul.mubr.msk.f32.gmra.mrb[64].mxu0 %vm2483_vm12, %v10505_v5 }
 0xfe4   :  { %7629 = vmatprep.mubr.msk.f32.mxu0 %vm2483_vm12, %v10512_v42 }
 0xfe7   :  { %7630 = vmatmul.mubr.msk.f32.gmra.mrb[66].mxu0 %vm2483_vm12, %v10519_v39 }
 0xfe8   :  { %7632 = vmatprep.mubr.msk.f32.mxu0 %vm2483_vm12, %v10526_v21 }
 0xfeb   :  { %7633 = vmatmul.mubr.msk.f32.gmra.mrb[68].mxu0 %vm2483_vm12, %v10533_v11 }
 0xfec   :  { %7635 = vmatprep.mubr.msk.f32.mxu0 %vm2483_vm12, %v10540_v63 }
 0xfef   :  { %7636 = vmatmul.mubr.msk.f32.gmra.mrb[70].mxu0 %vm2483_vm12, %v10547_v9 }
0x10a6   :  { %v7616_v44 = vpop.f32.mrb[56].mxu0 }
0x10a7   :  { %v5013_v18 = vpop.f32.mrb[57].mxu0  ;;  %v8147_v37 = vadd.f32 %v7616_v44, %v9918_v55  ;;  %v10739_v44 = vld [vmem:[#allocation7_spill] sm:$0xff] }
0x10a8   :  { %v8148_v59 = vadd.f32 %v5013_v18, %v9920_v56 }
0x10a9   :  { %v6388_v24 = vmul.f32 -1.442695, %v8147_v37 }
0x10aa   :  { %v7619_v2 = vpop.f32.mrb[58].mxu0  ;;  %v6387_v5 = vmul.f32 -1.442695, %v8148_v59 }
0x10ab   :  { %v5023_v34 = vpop.f32.mrb[59].mxu0  ;;  %8803 = vpow2.f32 %v6388_v24  ;;  %v8149_v63 = vadd.f32 %v7619_v2, %v9930_v6 }
0x10ac   :  { %8805 = vpow2.f32 %v6387_v5  ;;  %v8150_v55 = vadd.f32 %v5023_v34, %v9932_v8 }
0x10ad   :  { %v6390_v46 = vmul.f32 -1.442695, %v8149_v63 }
0x10ae   :  { %v7622_v30 = vpop.f32.mrb[60].mxu0  ;;  %v6389_v45 = vmul.f32 -1.442695, %v8150_v55 }
0x10af   :  { %v8151_v14 = vadd.f32 %v7622_v30, %v9922_v60  ;;  %v5033_v22 = vpop.f32.mrb[61].mxu0 }
0x10b0   :  { %v8152_v54 = vadd.f32 %v5033_v22, %v9924_v62 }
0x10b1   :  { %v6392_v42 = vmul.f32 -1.442695, %v8151_v14 }
0x10b2   :  { %v7625_v39 = vpop.f32.mrb[62].mxu0  ;;  %v6391_v21 = vmul.f32 -1.442695, %v8152_v54 }
0x10b3   :  { %v5043_v11 = vpop.f32.mrb[63].mxu0  ;;  %8807 = vpow2.f32 %v6392_v42  ;;  %v8153_v62 = vadd.f32 %v7625_v39, %v9936_v16 }
0x10b4   :  { %8809 = vpow2.f32 %v6391_v21  ;;  %v8154_v10 = vadd.f32 %v5043_v11, %v9939_v19 }
0x10b5   :  { %8811 = vpow2.f32 %v6390_v46  ;;  %v6394_v28 = vmul.f32 -1.442695, %v8153_v62  ;;  %v8804_v53 = vpop.eup %8803 }
0x10b6   :  { %v7628_v56 = vpop.f32.mrb[64].mxu0  ;;  %8813 = vpow2.f32 %v6389_v45  ;;  %v6393_v27 = vmul.f32 -1.442695, %v8154_v10  ;;  %v8806_v19 = vpop.eup %8805  ;;  %v5173_v1 = vadd.f32 1.0, %v8804_v53 }
0x10b7   :  { %v8155_v60 = vadd.f32 %v7628_v56, %v9912_v52  ;;  %v5053_v9 = vpop.f32.mrb[65].mxu0  ;;  %v5172_v12 = vadd.f32 1.0, %v8806_v19 }
0x10b8   :  { %v8156_v20 = vadd.f32 %v5053_v9, %v9908_v50 }
0x10b9   :  { %v6384_v33 = vmul.f32 -2.0, %v8155_v60 }
0x10ba   :  { %v6383_v7 = vmul.f32 -2.0, %v8156_v20  ;;  %v7631_v6 = vpop.f32.mrb[66].mxu0 }
0x10bb   :  { %v5158_v4 = vmul.f32 1.442695, %v6384_v33  ;;  %v8157_v8 = vadd.f32 %v7631_v6, %v9910_v51  ;;  %v5063_v23 = vpop.f32.mrb[67].mxu0 }
0x10bc   :  { %v5156_v41 = vmul.f32 1.442695, %v6383_v7  ;;  %v8158_v52 = vadd.f32 %v5063_v23, %v9906_v49 }
0x10bd   :  { %v6386_v16 = vmul.f32 -2.0, %v8157_v8  ;;  %8815 = vpow2.f32 %v5158_v4  ;;  %v8808_v35 = vpop.eup %8807 }
0x10be   :  { %v6385_v50 = vmul.f32 -2.0, %v8158_v52  ;;  %v7634_v43 = vpop.f32.mrb[68].mxu0  ;;  %8817 = vpow2.f32 %v5156_v41  ;;  %v8810_v3 = vpop.eup %8809  ;;  %v5177_v34 = vadd.f32 1.0, %v8808_v35 }
0x10bf   :  { %v5162_v38 = vmul.f32 1.442695, %v6386_v16  ;;  %v5073_v47 = vpop.f32.mrb[69].mxu0  ;;  %8819 = vpow2.f32 %v6394_v28  ;;  %v8159_v49 = vadd.f32 %v7634_v43, %v9946_v0  ;;  %v5176_v30 = vadd.f32 1.0, %v8810_v3  ;;  %v8812_v22 = vpop.eup %8811 }
0x10c0   :  { %v5160_v51 = vmul.f32 1.442695, %v6385_v50  ;;  %8821 = vpow2.f32 %v6393_v27  ;;  %v8160_v18 = vadd.f32 %v5073_v47, %v10739_v44  ;;  %v8814_v0 = vpop.eup %8813  ;;  %v5175_v10 = vadd.f32 1.0, %v8812_v22 }
0x10c1   :  { %8823 = vpow2.f32 %v5162_v38  ;;  %v6396_v15 = vmul.f32 -1.442695, %v8159_v49  ;;  %v5174_v7 = vadd.f32 1.0, %v8814_v0 }
0x10c2   :  { %v7637_v2 = vpop.f32.mrb[70].mxu0  ;;  %8825 = vpow2.f32 %v5160_v51  ;;  %v6395_v24 = vmul.f32 -1.442695, %v8160_v18 }
0x10c3   :  { %v5107_v37 = vadd.f32 %v7637_v2, %v2480_v13  ;;  %v5083_v59 = vpop.f32.mrb[71].mxu0  ;;  %8827 = vrcp.f32 %v5173_v1 }
0x10c4   :  { %v5106_v14 = vadd.f32 %v5083_v59, %v2475_v36  ;;  %8829 = vrcp.f32 %v5172_v12 }
0x10c5   :  { %8831 = vrcp.f32 %v5177_v34  ;;  %v6398_v39 = vmul.f32 -1.442695, %v5107_v37 }
0x10c6   :  { %8833 = vrcp.f32 %v5176_v30  ;;  %v6397_v63 = vmul.f32 -1.442695, %v5106_v14 }
0x10c7   :  { %v8816_v54 = vpop.eup %8815  ;;  %8835 = vpow2.f32 %v6396_v15 }
0x10c8   :  { %v8818_v5 = vpop.eup %8817  ;;  %v5181_v42 = vadd.f32 1.0, %v8816_v54  ;;  %8837 = vpow2.f32 %v6395_v24 }
0x10c9   :  { %v8820_v21 = vpop.eup %8819  ;;  %v5180_v11 = vadd.f32 1.0, %v8818_v5 }
0x10ca   :  { %v8822_v55 = vpop.eup %8821  ;;  %8839 = vrcp.f32 %v5181_v42  ;;  %v5179_v9 = vadd.f32 1.0, %v8820_v21 }
0x10cb   :  { %v8824_v56 = vpop.eup %8823  ;;  %8841 = vrcp.f32 %v5180_v11  ;;  %v5178_v62 = vadd.f32 1.0, %v8822_v55 }
0x10cc   :  { %v8826_v60 = vpop.eup %8825  ;;  %v5183_v46 = vadd.f32 1.0, %v8824_v56  ;;  %8843 = vpow2.f32 %v6398_v39 }
0x10cd   :  { %v5182_v20 = vadd.f32 1.0, %v8826_v60  ;;  %8845 = vpow2.f32 %v6397_v63  ;;  %v8828_v45 = vpop.eup %8827 }
0x10ce   :  { %8847 = vrcp.f32 %v5183_v46  ;;  %v8830_v33 = vpop.eup %8829 }
0x10cf   :  { %8849 = vrcp.f32 %v5182_v20  ;;  %v8832_v6 = vpop.eup %8831 }
0x10d0   :  { %8851 = vrcp.f32 %v5179_v9  ;;  %v8834_v4 = vpop.eup %8833  ;;  %v5269_v51 = vmul.f32 %v8832_v6, %v10569_v58  ;;  %v5312_v6 = vpop.permute.xlu1 %5311 }
0x10d1   :  { %8853 = vrcp.f32 %v5178_v62  ;;  %v8836_v8 = vpop.eup %8835  ;;  %v5268_v1 = vmul.f32 %v8834_v4, %v10571_v25  ;;  %v5307_v4 = vpop.permute.xlu0 %5306 }
0x10d2   :  { %8855 = vrcp.f32 %v5175_v10  ;;  %v8838_v23 = vpop.eup %8837  ;;  %v5185_v43 = vadd.f32 1.0, %v8836_v8 }
0x10d3   :  { %8857 = vrcp.f32 %v5174_v7  ;;  %v5184_v47 = vadd.f32 1.0, %v8838_v23 }
0x10d4   :  { %v8840_v28 = vpop.eup %8839  ;;  %8859 = vrcp.f32 %v5185_v43 }
0x10d5   :  { %v8842_v41 = vpop.eup %8841  ;;  %v5229_v52 = vmul.f32 2.0, %v8840_v28  ;;  %8861 = vrcp.f32 %v5184_v47 }
0x10d6   :  { %v8844_v27 = vpop.eup %8843  ;;  %v5228_v16 = vmul.f32 2.0, %v8842_v41 }
0x10d7   :  { %v8846_v53 = vpop.eup %8845  ;;  %v6408_v50 = vadd.f32 -1.0, %v5229_v52  ;;  %v5187_v44 = vadd.f32 1.0, %v8844_v27  ;;  %v5322_v27 = vpop.permute.xlu1 %5321 }
0x10d8   :  { %v8848_v19 = vpop.eup %8847  ;;  %v6407_v38 = vadd.f32 -1.0, %v5228_v16  ;;  %v5186_v37 = vadd.f32 1.0, %v8846_v53 }
0x10d9   :  { %v8850_v35 = vpop.eup %8849  ;;  %v5273_v3 = vmul.f32 %v8828_v45, %v6408_v50  ;;  %v5231_v31 = vmul.f32 2.0, %v8848_v19  ;;  %v5317_v50 = vpop.permute.xlu0 %5316 }
0x10da   :  { %v8852_v13 = vpop.eup %8851  ;;  %v5272_v49 = vmul.f32 %v8830_v33, %v6407_v38  ;;  %v5230_v17 = vmul.f32 2.0, %v8850_v35 }
0x10db   :  { %v8854_v57 = vpop.eup %8853  ;;  %v5277_v36 = vadd.f32 %v5273_v3, %v5269_v51  ;;  %v6410_v12 = vadd.f32 -1.0, %v5231_v31  ;;  %v5271_v58 = vmul.f32 %v8852_v13, %v10577_v32  ;;  %v5426_v31 = vld [vmem:[%s10702_s7 + $0x8] sm:$0xff]  ;;  %v8941_v13 = vmov 0.0|0.0  }
0x10dc   :  { %v8856_v18 = vpop.eup %8855  ;;  %v5276_v2 = vadd.f32 %v5272_v49, %v5268_v1  ;;  %v6409_v34 = vadd.f32 -1.0, %v5230_v17  ;;  %v5270_v25 = vmul.f32 %v8854_v57, %v10579_v40  ;;  %v10740_v1 = vmov 0.0   ;;  %v5437_v49 = vpop.permute.xlu1 %5436 }
0x10dd   :  { %v8858_v59 = vpop.eup %8857  ;;  %8863 = vtanh.f32 %v5277_v36  ;;  %v5275_v30 = vmul.f32 %v8856_v18, %v6410_v12  ;;  %v5432_v57 = vpop.permute.xlu0 %5431 }
0x10de   :  { %8865 = vtanh.f32 %v5276_v2  ;;  %v5274_v14 = vmul.f32 %v8858_v59, %v6409_v34  ;;  %v8860_v24 = vpop.eup %8859 }
0x10df   :  { %v5279_v15 = vadd.f32 %v5275_v30, %v5271_v58  ;;  %8867 = vrcp.f32 %v5187_v44  ;;  %v8862_v0 = vpop.eup %8861 }
0x10e0   :  { %v5278_v22 = vadd.f32 %v5274_v14, %v5270_v25  ;;  %8869 = vrcp.f32 %v5186_v37  ;;  %v5522_v37 = vld [vmem:[%s10704_s9] sm:$0x3] }
0x10e1   :  { %8871 = vtanh.f32 %v5279_v15  ;;  %v5527_v59 = vpop.permute.xlu0 %5526 }
0x10e2   :  { %8873 = vtanh.f32 %v5278_v22 }
0x10e7   :  { %v8864_v54 = vpop.eup %8863 }
0x10e8   :  { %v8866_v5 = vpop.eup %8865  ;;  %v5285_v42 = vmul.f32 %v8864_v54, %v8860_v24 }
0x10e9   :  { %v8868_v39 = vpop.eup %8867  ;;  %v5284_v21 = vmul.f32 %v8866_v5, %v8862_v0 }
0x10ea   :  { %v8870_v11 = vpop.eup %8869  ;;  %v5289_v32 = vadd.f32 %v5285_v42, %v10584_v61  ;;  %v5297_v61 = vld [vmem:[%s10700_s5 + $0x8] sm:$0xff] }
0x10eb   :  { %v8872_v63 = vpop.eup %8871  ;;  %v5288_v40 = vadd.f32 %v5284_v21, %v10587_v29  ;;  %v5298_v29 = vld [vmem:[%s10700_s5 + $0x10] sm:$0xff] }
0x10ec   :  { %v8874_v55 = vpop.eup %8873  ;;  %v5293_v56 = vmul.f32 0.125, %v5289_v32  ;;  %v5287_v60 = vmul.f32 %v8872_v63, %v8868_v39 }
0x10ed   :  { %v5292_v9 = vmul.f32 0.125, %v5288_v40  ;;  %v5286_v46 = vmul.f32 %v8874_v55, %v8870_v11 }
0x10ee   :  { %v5291_v62 = vadd.f32 %v5287_v60, %v10590_v26  ;;  %v5299_v26 = vld [vmem:[%s10700_s5 + $0x18] sm:$0xff] }
0x10ef   :  { %v8014_v20 = vpack.c.bf16 %v5293_v56, %v5292_v9  ;;  %v5290_v45 = vadd.f32 %v5286_v46, %v10593_v48  ;;  %v5425_v48 = vld [vmem:[%s10702_s7] sm:$0xff]  ;;  %s8943_s7 = smov [#allocation2]  }
0x10f0   :  { %v5295_v10 = vmul.f32 0.125, %v5291_v62  ;;  %s5631_s9 = sshll.u32 %s8943_s7, 4  ;;  %s5632_s9 = int_to_ptr.vmem [resolvable:$true] %s5631_s9 }
0x10f1   :  { %8015 = vmatprep.subr.bf16.mxu1 %v8014_v20  ;;  %v5294_v33 = vmul.f32 0.125, %v5290_v45  ;;  %s8914_s20 = scalar_lea.vmem %s5632_s9, 32  ;;  %p8919_p1 = scmp.lt.s32.totalorder %s5632_s9, %s5632_s9 }
0x10f2   :  { %8017 = vmatpush3.bf16.msra.mxu1 %v8014_v20  ;;  %p8915_p0 = scmp.ne.s32.totalorder %s5632_s9, %s8914_s20  ;;  %p8920_p2 = scmp.lt.s32.totalorder %s8914_s20, %s8914_s20 }
0x10f3   :  { %v8018_v7 = vpack.c.bf16 %v5295_v10, %v5294_v33 }
0x10f4   :  { %p8921_p3 = por %p8920_p2, %p8919_p1 }
0x10f5   :  { %8019 = vmatprep.subr.bf16.mxu1 %v8018_v7 }
0x10f6   :  { %8021 = vmatpush3.bf16.msra.mxu1 %v8018_v7  ;;  %p8922_p4 = pnand %p8921_p3, %p8915_p0 }
0x10f9   :  { %7647 = vmatmul.mubr.msk.f32.vlgmr.msra.gmra.mrb[74].mxu1 %vm2483_vm12, %v5297_v61 }
0x10fa   :  { %7649 = vmatprep.mubr.msk.f32.mxu1 %vm2483_vm12, %v5298_v29 }
0x10fd   :  { %7650 = vmatmul.mubr.msk.f32.gmra.mrb[76].mxu1 %vm2483_vm12, %v5299_v26 }
0x10fe   :  { %7660 = vmatprep.mubr.msk.f32.mxu1 %vm2483_vm12, %v5425_v48 }
0x11cc   :  { %v7648_v8 = vpop.f32.mrb[74].mxu1 }
0x11cd   :  { %v5408_v23 = vadd.f32 %v7648_v8, %v5312_v6  ;;  %v5402_v28 = vpop.f32.mrb[75].mxu1 }
0x11ce   :  { %v5403_v41 = vadd.f32 %v5402_v28, %v5307_v4 }
0x11cf   :  { %v5422_v52 = vmax.f32 %v5408_v23, 0.0 }
0x11d0   :  { %v5421_v16 = vmax.f32 %v5403_v41, 0.0  ;;  %v7651_v53 = vpop.f32.mrb[76].mxu1 }
0x11d1   :  { %v5418_v43 = vadd.f32 %v7651_v53, %v5322_v27  ;;  %v5412_v19 = vpop.f32.mrb[77].mxu1 }
0x11d2   :  { %v8022_v38 = vpack.c.bf16 %v5422_v52, %v5421_v16  ;;  %v5413_v47 = vadd.f32 %v5412_v19, %v5317_v50 }
0x11d3   :  { %v5424_v35 = vmax.f32 %v5418_v43, 0.0 }
0x11d4   :  { %v5423_v51 = vmax.f32 %v5413_v47, 0.0  ;;  %8023 = vmatprep.subr.bf16.mxu1 %v8022_v38 }
0x11d5   :  { %8025 = vmatpush3.bf16.msra.mxu1 %v8022_v38 }
0x11d6   :  { %v8026_v3 = vpack.c.bf16 %v5424_v35, %v5423_v51 }
0x11d8   :  { %8027 = vmatprep.subr.bf16.mxu1 %v8026_v3 }
0x11d9   :  { %8029 = vmatpush3.bf16.msra.mxu1 %v8026_v3 }
0x11da   :  { %8030 = vmatprep.subr.bf16.mxu1 %v8941_v13 }
0x11dc   :  { %7661 = vmatmul.mubr.msk.f32.vlgmr.msra.gmra.mrb[78].mxu1 %vm2483_vm12, %v5426_v31 }
0x11dd   :  { %7667 = vmatprep.mubr.msk.f32.mxu1 %vm8942_vm13, %v10740_v1 }
0x12af   :  { %v7662_v17 = vpop.f32.mrb[78].mxu1 }
0x12b0   :  { %v5517_v36 = vadd.f32 %v7662_v17, %v5437_v49  ;;  %v5511_v12 = vpop.f32.mrb[79].mxu1 }
0x12b1   :  { %v5512_v44 = vadd.f32 %v5511_v12, %v5432_v57 }
0x12b2   :  { %v5521_v18 = vmax.f32 %v5517_v36, 0.0 }
0x12b3   :  { %v5520_v2 = vmax.f32 %v5512_v44, 0.0 }
0x12b5   :  { %v8031_v34 = vpack.c.bf16 %v5521_v18, %v5520_v2 }
0x12b7   :  { %8032 = vmatpush3.bf16.msra.mxu1 %v8031_v34 }
0x12ba   :  { %7668 = vmatmul.mubr.msk.f32.vlgmr.msra.gmra.mrb[80].mxu1 %vm378_vm8, %v5522_v37 }
0x138d   :  { %v5598_v58 = vpop.f32.mrb[80].mxu1 }
0x138e   :  { %v5599_v30 = vadd.f32 %v5598_v58, %v5527_v59  ;;  %v7669_v25 = vpop.f32.mrb[81].mxu1 }
0x1390   :  { %v5603_v14 = vsel %vm5602_vm14, %v5599_v30, -inf }
0x1391   :  { %v5604_v15 = vrot.slane %v5603_v14, 4 }
0x1393   :  { %v5605_v22 = vmax.f32 %v5603_v14, %v5604_v15 }
0x1395   :  { %v5606_v24 = vrot.slane %v5605_v22, 2 }
0x1397   :  { %v5607_v0 = vmax.f32 %v5605_v22, %v5606_v24 }
0x1399   :  { %v5608_v54 = vrot.slane %v5607_v0, 1 }
0x139b   :  { %v5609_v5 = vmax.f32 %v5607_v0, %v5608_v54 }
0x139d   :  { %v5610_v42 = vsub.f32 %v5599_v30, %v5609_v5 }
0x139f   :  { %v5611_v39 = vmul.f32 1.442695, %v5610_v42 }
0x13a1   :  { %8875 = vpow2.f32 %v5611_v39 }
0x13ab   :  { %v8876_v21 = vpop.eup %8875 }
0x13ac   :  { %v5613_v11 = vsel %vm5602_vm14, %v8876_v21, 0.0 }
0x13ad   :  { %v5614_v32 = vrot.slane %v5613_v11, 4 }
0x13af   :  { %v5615_v63 = vadd.f32 %v5614_v32, %v5613_v11 }
0x13b1   :  { %v5616_v40 = vrot.slane %v5615_v63, 2 }
0x13b3   :  { %v5617_v55 = vadd.f32 %v5616_v40, %v5615_v63 }
0x13b5   :  { %v5618_v56 = vrot.slane %v5617_v55, 1 }
0x13b7   :  { %v5619_v60 = vadd.f32 %v5618_v56, %v5617_v55 }
0x13b9   :  { %8877 = vlog2.f32 %v5619_v60 }
0x13c3   :  { %v8878_v9 = vpop.eup %8877 }
0x13c4   :  { %v5621_v46 = vmul.f32 0.6931472, %v8878_v9 }
0x13c6   :  { %v5622_v62 = vadd.f32 %v5621_v46, %v5609_v5 }
0x13c8   :  { %v5623_v20 = vsub.f32 %v5599_v30, %v5622_v62 }
0x13ca   :  { %5624 = vst.msk [vmem:[#allocation2] sm:$0x3] %vm5602_vm14, %v5623_v20 }
0x13cb   :  { %8925 = shalt.err (!%p8922_p4)
}
0x13cc   :  { %s8926_s23 = scalar_lea.hbm %s10706_s11, 32 }
0x13cd   :  { %p8927_p5 = scmp.ne.s32.totalorder %s10706_s11, %s8926_s23  ;;  %p8930_p6 = scmp.lt.u32.totalorder %s8926_s23, %s10706_s11 }
0x13cf   :  { %p8932_p7 = pnand %p8930_p6, %p8927_p5 }
0x13d1   :  { %8935 = shalt.err (!%p8932_p7)
}
0x13d2   :  { %5634 = dma.vmem_to_hbm [thread:$0]  %s5632_s9, 32, %s10706_s11, [#allocation3]  }
0x13d3   :  { %8936 = dma.done.wait [#allocation3], 32  }
0x13d4   :  { %8937 = vsyncadd [#allocation3], 4294967264 }
0x13d5   :  { %5638 = vsyncpa [#allocation3], 1 }

</bundles_post_ra>
